<compile_context>
chip_gen: v7x
topology: tpu7x:2x2x1
jax: 0.10.0
libtpu: 0.0.40
codegen_flags: <defaults>
</compile_context>

<pallas_src>
import functools
import numpy as np

import jax
import jax.numpy as jnp
from jax import lax
from jax.experimental import pallas as pl
from jax.experimental.pallas import tpu as pltpu

EPS = 1e-6      # nn.LayerNorm(d_model, eps=1e-06)
LANE = 128      # TPU vreg lane width


def _round_up(x, m):
    return ((x + m - 1) // m) * m


# ----------------------------- in-kernel helpers -----------------------------

def _layernorm(x, gamma, beta):
    # x: (M, D); gamma/beta: (1, D) — PyTorch LayerNorm (biased variance), f32 math.
    mu = jnp.mean(x, axis=-1, keepdims=True)
    var = jnp.mean(jnp.square(x - mu), axis=-1, keepdims=True)
    return (x - mu) * lax.rsqrt(var + EPS) * gamma + beta


def _softmax_lastdim(s):
    s = s - jnp.max(s, axis=-1, keepdims=True)
    e = jnp.exp(s)
    # divide -> EUP reciprocal + VPU multiply
    return e * pl.reciprocal(jnp.sum(e, axis=-1, keepdims=True), approx=True)


# ------------------------------ fused encoder kernel --------------------------

def _encoder_kernel(emb_ref, pos_ref, mask_ref, ln0_g_ref, ln0_b_ref,
                    wqkv_ref, wo_ref, ln1_g_ref, ln1_b_ref,
                    w1_ref, b1_ref, w2_ref, b2_ref, ln2_g_ref, ln2_b_ref,
                    o_ref, *, n_layers, n_head, d_k, d_v, dkp, dvp, scale):
    f32, bf16 = jnp.float32, jnp.bfloat16
    Bt, L, D = emb_ref.shape
    M = Bt * L                                   # fat matmul M dim (all blocked rows)

    # ---- prologue: scale_emb + positional encoding + LayerNorm ----
    x3 = emb_ref[...] * scale + pos_ref[...]     # (Bt, L, D), pos broadcast once
    x = _layernorm(x3.reshape(M, D), ln0_g_ref[...], ln0_b_ref[...])   # (M, D) f32

    # ---- additive key-padding bias, hoisted + pre-broadcast once per grid step ----
    bias = jnp.where(mask_ref[...] == 0, -1e9, 0.0).astype(f32)        # (Bt, 1, L)
    bias = jnp.broadcast_to(bias, (Bt, L, L))                          # (Bt, L, L)

    inv_temp = 1.0 / (float(d_k) ** 0.5)
    q_base = 0
    k_base = n_head * dkp
    v_base = 2 * n_head * dkp

    def layer_body(l, x):
        # ================== multi-head self-attention (post-LN) ============
        x_bf = x.astype(bf16)                                    # cast once, reused
        qkv = jnp.dot(x_bf, wqkv_ref[l],
                      preferred_element_type=f32)                # (M, 2*H*dkp + H*dvp)
        wo_l = wo_ref[l]                                         # (H*dvp, D) bf16
        attn = jnp.zeros((M, D), f32)
        # Head slots are padded to 128 lanes -> every slice below is a full-vreg,
        # lane-aligned slice; head contexts fold into the output projection by
        # accumulation (no concatenate).
        for h in range(n_head):
            q3 = (qkv[:, q_base + h * dkp: q_base + (h + 1) * dkp]
                  * inv_temp).reshape(Bt, L, dkp).astype(bf16)
            k3 = qkv[:, k_base + h * dkp: k_base + (h + 1) * dkp] \
                .reshape(Bt, L, dkp).astype(bf16)
            v3 = qkv[:, v_base + h * dvp: v_base + (h + 1) * dvp] \
                .reshape(Bt, L, dvp).astype(bf16)
            s = jnp.einsum('bqd,bkd->bqk', q3, k3,
                           preferred_element_type=f32)           # (Bt, L, L) f32
            p = _softmax_lastdim(s + bias)                       # f32 softmax
            ctx = jnp.einsum('bqk,bkd->bqd', p.astype(bf16), v3,
                             preferred_element_type=f32)         # (Bt, L, dvp)
            attn = attn + jnp.dot(ctx.reshape(M, dvp).astype(bf16),
                                  wo_l[h * dvp:(h + 1) * dvp, :],
                                  preferred_element_type=f32)    # (M, D)
        x = _layernorm(attn + x, ln1_g_ref[l], ln1_b_ref[l])

        # ========================= feed-forward (post-LN) ==================
        x_bf = x.astype(bf16)
        hid = jnp.dot(x_bf, w1_ref[l],
                      preferred_element_type=f32) + b1_ref[l]    # (M, d_inner)
        hid = jnp.maximum(hid, 0.0)                              # ReLU
        y = jnp.dot(hid.astype(bf16), w2_ref[l],
                    preferred_element_type=f32) + b2_ref[l]      # (M, D)
        return _layernorm(y + x, ln2_g_ref[l], ln2_b_ref[l])

    x = lax.fori_loop(0, n_layers, layer_body, x)
    o_ref[...] = x.reshape(Bt, L, D)


# -------------------------------- pallas_call glue ----------------------------

def _const_spec(shape, single_buffer):
    """Whole array, same block every grid step (resident in VMEM)."""
    ndim = len(shape)
    index_map = lambda b, _n=ndim: (0,) * _n
    if single_buffer:
        # Never re-fetched -> single-buffer to halve its VMEM footprint.
        return pl.BlockSpec(shape, index_map, pipeline_mode=pl.Buffered(1))
    return pl.BlockSpec(shape, index_map)


def _row_spec(shape):
    """Per-batch-row-block spec: leading dim indexed by the grid."""
    ndim = len(shape)
    return pl.BlockSpec(shape, lambda b, _n=ndim: (b,) + (0,) * (_n - 1))


def _pick_block_b(B, L, target_rows=256):
    """Largest divisor Bt of B with Bt*L close to target_rows (>=128 on v5e,
    >=256 on v6e/v7x when the batch allows). For v7x also prefer grid length >= 2
    when B is large enough so both TensorCores get work."""
    bt = max(1, min(B, target_rows // max(L, 1)))
    while B % bt:
        bt -= 1
    return bt


def encoder_forward(params, src_seq, src_mask, *, d_model, n_head, d_k, d_v,
                    n_layers, block_b=None, single_buffer_weights=True):
    # Embedding lookup (gather) stays in XLA glue; everything else is one kernel.
    emb = jnp.take(params["emb_table"], src_seq, axis=0)          # (B, L, D) f32
    B, L, D = emb.shape
    pos = params["pos_table"][:L, :]                              # (L, D)
    mask = src_mask.astype(jnp.int32).reshape(B, 1, L)            # int key mask

    dkp = _round_up(d_k, LANE)
    dvp = _round_up(d_v, LANE)
    Bt = block_b if block_b is not None else _pick_block_b(B, L)
    assert B % Bt == 0, "batch block must divide batch size"

    wqkv, wo = params["wqkv"], params["wo"]
    w1, w2 = params["w1"], params["w2"]
    assert wqkv.shape == (n_layers, D, 2 * n_head * dkp + n_head * dvp)
    assert wo.shape == (n_layers, n_head * dvp, D)

    kernel = functools.partial(
        _encoder_kernel, n_layers=n_layers, n_head=n_head, d_k=d_k, d_v=d_v,
        dkp=dkp, dvp=dvp, scale=float(d_model) ** 0.5)

    const_inputs = (pos, params["ln0_g"], params["ln0_b"], wqkv, wo,
                    params["ln1_g"], params["ln1_b"], w1, params["b1"],
                    w2, params["b2"], params["ln2_g"], params["ln2_b"])
    weight_bytes = sum(int(np.prod(a.shape)) * a.dtype.itemsize for a in const_inputs)
    act_bytes = Bt * L * D * 4
    # Explicit scoped-VMEM budget (defaults: 16 MiB v5e / 32 MiB v6e+v7x are too low
    # for the all-weights-resident strategy at realistic sizes).
    vmem_limit = int(max(32 << 20, min(100 << 20,
                                       2 * weight_bytes + 32 * act_bytes + (8 << 20))))

    sb = single_buffer_weights
    return pl.pallas_call(
        kernel,
        out_shape=jax.ShapeDtypeStruct((B, L, D), jnp.float32),
        grid=(B // Bt,),
        in_specs=[
            _row_spec((Bt, L, D)),                                # emb (blocked rows)
            _const_spec((L, D), sb),                              # positional table
            _row_spec((Bt, 1, L)),                                # key-padding mask
            _const_spec((1, D), sb), _const_spec((1, D), sb),     # ln0 gamma/beta
            _const_spec(wqkv.shape, sb),                          # fused padded QKV W
            _const_spec(wo.shape, sb),                            # per-head out-proj W
            _const_spec(params["ln1_g"].shape, sb),
            _const_spec(params["ln1_b"].shape, sb),
            _const_spec(w1.shape, sb), _const_spec(params["b1"].shape, sb),
            _const_spec(w2.shape, sb), _const_spec(params["b2"].shape, sb),
            _const_spec(params["ln2_g"].shape, sb),
            _const_spec(params["ln2_b"].shape, sb),
        ],
        out_specs=_row_spec((Bt, L, D)),
        input_output_aliases={0: 0},      # reuse embedding buffer for the output
        compiler_params=pltpu.CompilerParams(
            dimension_semantics=("parallel",),
            vmem_limit_bytes=vmem_limit),
    )(emb, pos, mask, params["ln0_g"], params["ln0_b"],
      wqkv, wo, params["ln1_g"], params["ln1_b"],
      w1, params["b1"], w2, params["b2"],
      params["ln2_g"], params["ln2_b"])


# ------------------------------ parameters / tables ---------------------------

def sinusoid_table(n_position, d_hid):
    pos = np.arange(n_position, dtype=np.float64)[:, None]
    hid = np.arange(d_hid, dtype=np.float64)[None, :]
    angle = pos / np.power(10000.0, 2.0 * (hid // 2) / d_hid)
    table = np.zeros((n_position, d_hid), dtype=np.float32)
    table[:, 0::2] = np.sin(angle[:, 0::2])
    table[:, 1::2] = np.cos(angle[:, 1::2])
    return jnp.asarray(table)


def pack_qkv_weights(wq, wk, wv, d_k, d_v):
    """wq/wk: (n_layers, D, H, d_k), wv: (n_layers, D, H, d_v) ->
    fused (n_layers, D, 2*H*dkp + H*dvp) with per-head slots zero-padded to 128 lanes."""
    n_layers, D, H, _ = wq.shape
    dkp, dvp = _round_up(d_k, LANE), _round_up(d_v, LANE)

    def pad_last(w, p):
        return jnp.pad(w, ((0, 0), (0, 0), (0, 0), (0, p - w.shape[-1])))

    q = pad_last(wq, dkp).reshape(n_layers, D, H * dkp)
    k = pad_last(wk, dkp).reshape(n_layers, D, H * dkp)
    v = pad_last(wv, dvp).reshape(n_layers, D, H * dvp)
    return jnp.concatenate([q, k, v], axis=-1)


def pack_out_weights(wo, d_v):
    """wo: (n_layers, H, d_v, D) -> (n_layers, H*dvp, D) with zero rows in the pad."""
    n_layers, H, dv, D = wo.shape
    dvp = _round_up(d_v, LANE)
    wo_p = jnp.pad(wo, ((0, 0), (0, 0), (0, dvp - dv), (0, 0)))
    return wo_p.reshape(n_layers, H * dvp, D)


def init_encoder_params(key, *, vocab_size, d_model, d_inner, n_head, d_k, d_v,
                        n_layers, n_position):
    ks = jax.random.split(key, 7)
    bf16 = jnp.bfloat16

    def nrm(k, shape, scale=0.05):
        return scale * jax.random.normal(k, shape, dtype=jnp.float32)

    wq = nrm(ks[1], (n_layers, d_model, n_head, d_k))
    wk = nrm(ks[2], (n_layers, d_model, n_head, d_k))
    wv = nrm(ks[3], (n_layers, d_model, n_head, d_v))
    wo = nrm(ks[4], (n_layers, n_head, d_v, d_model))

    return {
        "emb_table": nrm(ks[0], (vocab_size, d_model), 1.0 / (d_model ** 0.5)),
        "pos_table": sinusoid_table(n_position, d_model),
        "ln0_g": jnp.ones((1, d_model), jnp.float32),
        "ln0_b": jnp.zeros((1, d_model), jnp.float32),
        # fused, 128-lane-padded attention weights stacked on a leading layer axis
        "wqkv": pack_qkv_weights(wq, wk, wv, d_k, d_v).astype(bf16),
        "wo": pack_out_weights(wo, d_v).astype(bf16),
        "ln1_g": jnp.ones((n_layers, 1, d_model), jnp.float32),
        "ln1_b": jnp.zeros((n_layers, 1, d_model), jnp.float32),
        "w1": nrm(ks[5], (n_layers, d_model, d_inner)).astype(bf16),
        "b1": jnp.zeros((n_layers, 1, d_inner), jnp.float32),
        "w2": nrm(ks[6], (n_layers, d_inner, d_model)).astype(bf16),
        "b2": jnp.zeros((n_layers, 1, d_model), jnp.float32),
        "ln2_g": jnp.ones((n_layers, 1, d_model), jnp.float32),
        "ln2_b": jnp.zeros((n_layers, 1, d_model), jnp.float32),
    }


# ----------------------------------- main --------------------------------------

if __name__ == "__main__":
    B, L = 2, 8
    d_word_vec = d_model = 32
    n_head, d_k, d_v = 4, 8, 8
    d_inner = 64
    n_layers = 2
    vocab_size = 50
    n_position = 64

    key = jax.random.PRNGKey(0)
    kp, ks = jax.random.split(key)
    params = init_encoder_params(
        kp, vocab_size=vocab_size, d_model=d_model, d_inner=d_inner,
        n_head=n_head, d_k=d_k, d_v=d_v, n_layers=n_layers,
        n_position=n_position)

    src_seq = jax.random.randint(ks, (B, L), 1, vocab_size, dtype=jnp.int32)
    src_seq = src_seq.at[1, 6:].set(0)            # pad a couple of tokens
    src_mask = (src_seq != 0)                     # (B, L) key-padding mask

    def build_fwd(single_buffer):
        return jax.jit(functools.partial(
            encoder_forward, d_model=d_model, n_head=n_head, d_k=d_k, d_v=d_v,
            n_layers=n_layers, single_buffer_weights=single_buffer))

    try:
        out = jax.block_until_ready(build_fwd(True)(params, src_seq, src_mask))
    except Exception:
        # Fallback if this JAX build rejects pl.Buffered(1) single-buffering.
        out = jax.block_until_ready(build_fwd(False)(params, src_seq, src_mask))

    assert out.shape == (B, L, d_model) and out.dtype == jnp.float32
    assert bool(jnp.all(jnp.isfinite(out)))
    print("KERNEL_OK")
</pallas_src>

<mosaic_0001>
module attributes {stable_mosaic.version = 11 : i64} {
  func.func @_encoder_kernel(%arg0: i32, %arg1: memref<2x8x32xf32, #tpu.memory_space<vmem>>, %arg2: memref<8x32xf32, #tpu.memory_space<vmem>>, %arg3: memref<2x1x8xi32, #tpu.memory_space<vmem>>, %arg4: memref<1x32xf32, #tpu.memory_space<vmem>>, %arg5: memref<1x32xf32, #tpu.memory_space<vmem>>, %arg6: memref<2x32x1536xbf16, #tpu.memory_space<vmem>>, %arg7: memref<2x512x32xbf16, #tpu.memory_space<vmem>>, %arg8: memref<2x1x32xf32, #tpu.memory_space<vmem>>, %arg9: memref<2x1x32xf32, #tpu.memory_space<vmem>>, %arg10: memref<2x32x64xbf16, #tpu.memory_space<vmem>>, %arg11: memref<2x1x64xf32, #tpu.memory_space<vmem>>, %arg12: memref<2x64x32xbf16, #tpu.memory_space<vmem>>, %arg13: memref<2x1x32xf32, #tpu.memory_space<vmem>>, %arg14: memref<2x1x32xf32, #tpu.memory_space<vmem>>, %arg15: memref<2x1x32xf32, #tpu.memory_space<vmem>>, %arg16: memref<2x8x32xf32, #tpu.memory_space<vmem>>) attributes {dimension_semantics = [#tpu.dimension_semantics<parallel>], iteration_bounds = array<i64: 1>, scalar_prefetch = 0 : i64, scratch_operands = 0 : i64, tpu.core_type = #tpu.core_type<tc>, window_params = [{transform_indices = @transform_0, window_bounds = array<i64: 2, 8, 32>}, {pipeline_mode = #tpu.pipeline_mode<synchronous>, transform_indices = @transform_1, window_bounds = array<i64: 8, 32>}, {transform_indices = @transform_2, window_bounds = array<i64: 2, 1, 8>}, {pipeline_mode = #tpu.pipeline_mode<synchronous>, transform_indices = @transform_3, window_bounds = array<i64: 1, 32>}, {pipeline_mode = #tpu.pipeline_mode<synchronous>, transform_indices = @transform_4, window_bounds = array<i64: 1, 32>}, {pipeline_mode = #tpu.pipeline_mode<synchronous>, transform_indices = @transform_5, window_bounds = array<i64: 2, 32, 1536>}, {pipeline_mode = #tpu.pipeline_mode<synchronous>, transform_indices = @transform_6, window_bounds = array<i64: 2, 512, 32>}, {pipeline_mode = #tpu.pipeline_mode<synchronous>, transform_indices = @transform_7, window_bounds = array<i64: 2, 1, 32>}, {pipeline_mode = #tpu.pipeline_mode<synchronous>, transform_indices = @transform_8, window_bounds = array<i64: 2, 1, 32>}, {pipeline_mode = #tpu.pipeline_mode<synchronous>, transform_indices = @transform_9, window_bounds = array<i64: 2, 32, 64>}, {pipeline_mode = #tpu.pipeline_mode<synchronous>, transform_indices = @transform_10, window_bounds = array<i64: 2, 1, 64>}, {pipeline_mode = #tpu.pipeline_mode<synchronous>, transform_indices = @transform_11, window_bounds = array<i64: 2, 64, 32>}, {pipeline_mode = #tpu.pipeline_mode<synchronous>, transform_indices = @transform_12, window_bounds = array<i64: 2, 1, 32>}, {pipeline_mode = #tpu.pipeline_mode<synchronous>, transform_indices = @transform_13, window_bounds = array<i64: 2, 1, 32>}, {pipeline_mode = #tpu.pipeline_mode<synchronous>, transform_indices = @transform_14, window_bounds = array<i64: 2, 1, 32>}, {transform_indices = @transform_15, window_bounds = array<i64: 2, 8, 32>}]} {
    %c0 = arith.constant 0 : index
    %c0_0 = arith.constant 0 : index
    %c0_1 = arith.constant 0 : index
    %0 = vector.load %arg1[%c0, %c0_0, %c0_1] : memref<2x8x32xf32, #tpu.memory_space<vmem>>, vector<2x8x32xf32>
    %cst = arith.constant 5.65685415 : f32
    %1 = vector.broadcast %cst : f32 to vector<2x8x32xf32>
    %2 = arith.mulf %0, %1 : vector<2x8x32xf32>
    %c0_2 = arith.constant 0 : index
    %c0_3 = arith.constant 0 : index
    %3 = vector.load %arg2[%c0_2, %c0_3] : memref<8x32xf32, #tpu.memory_space<vmem>>, vector<8x32xf32>
    %4 = vector.shape_cast %3 : vector<8x32xf32> to vector<1x8x32xf32>
    %5 = vector.broadcast %4 : vector<1x8x32xf32> to vector<2x8x32xf32>
    %6 = arith.addf %2, %5 : vector<2x8x32xf32>
    %7 = vector.shape_cast %6 : vector<2x8x32xf32> to vector<16x32xf32>
    %c0_4 = arith.constant 0 : index
    %c0_5 = arith.constant 0 : index
    %8 = vector.load %arg4[%c0_4, %c0_5] : memref<1x32xf32, #tpu.memory_space<vmem>>, vector<1x32xf32>
    %c0_6 = arith.constant 0 : index
    %c0_7 = arith.constant 0 : index
    %9 = vector.load %arg5[%c0_6, %c0_7] : memref<1x32xf32, #tpu.memory_space<vmem>>, vector<1x32xf32>
    %cst_8 = arith.constant dense<0.000000e+00> : vector<16xf32>
    %10 = vector.multi_reduction <add>, %7, %cst_8 [1] : vector<16x32xf32> to vector<16xf32>
    %11 = vector.shape_cast %10 : vector<16xf32> to vector<16x1xf32>
    %cst_9 = arith.constant 3.200000e+01 : f32
    %12 = vector.broadcast %cst_9 : f32 to vector<16x1xf32>
    %13 = arith.divf %11, %12 : vector<16x1xf32>
    %14 = vector.broadcast %13 : vector<16x1xf32> to vector<16x32xf32>
    %15 = arith.subf %7, %14 : vector<16x32xf32>
    %16 = arith.mulf %15, %15 : vector<16x32xf32>
    %cst_10 = arith.constant dense<0.000000e+00> : vector<16xf32>
    %17 = vector.multi_reduction <add>, %16, %cst_10 [1] : vector<16x32xf32> to vector<16xf32>
    %18 = vector.shape_cast %17 : vector<16xf32> to vector<16x1xf32>
    %cst_11 = arith.constant 3.200000e+01 : f32
    %19 = vector.broadcast %cst_11 : f32 to vector<16x1xf32>
    %20 = arith.divf %18, %19 : vector<16x1xf32>
    %21 = vector.broadcast %13 : vector<16x1xf32> to vector<16x32xf32>
    %22 = arith.subf %7, %21 : vector<16x32xf32>
    %cst_12 = arith.constant 9.99999997E-7 : f32
    %23 = vector.broadcast %cst_12 : f32 to vector<16x1xf32>
    %24 = arith.addf %20, %23 : vector<16x1xf32>
    %25 = math.rsqrt %24 : vector<16x1xf32>
    %26 = vector.broadcast %25 : vector<16x1xf32> to vector<16x32xf32>
    %27 = arith.mulf %22, %26 : vector<16x32xf32>
    %28 = vector.broadcast %8 : vector<1x32xf32> to vector<16x32xf32>
    %29 = arith.mulf %27, %28 : vector<16x32xf32>
    %30 = vector.broadcast %9 : vector<1x32xf32> to vector<16x32xf32>
    %31 = arith.addf %29, %30 : vector<16x32xf32>
    %c0_13 = arith.constant 0 : index
    %c0_14 = arith.constant 0 : index
    %c0_15 = arith.constant 0 : index
    %32 = vector.load %arg3[%c0_13, %c0_14, %c0_15] : memref<2x1x8xi32, #tpu.memory_space<vmem>>, vector<2x1x8xi32>
    %c0_i32 = arith.constant 0 : i32
    %33 = vector.broadcast %c0_i32 : i32 to vector<2x1x8xi32>
    %34 = arith.cmpi eq, %32, %33 : vector<2x1x8xi32>
    %cst_16 = arith.constant -1.000000e+09 : f32
    %cst_17 = arith.constant 0.000000e+00 : f32
    %35 = vector.broadcast %cst_16 : f32 to vector<2x1x8xf32>
    %36 = vector.broadcast %cst_17 : f32 to vector<2x1x8xf32>
    %37 = arith.select %34, %35, %36 : vector<2x1x8xi1>, vector<2x1x8xf32>
    %38 = vector.shape_cast %37 : vector<2x1x8xf32> to vector<2x1x8xf32>
    %39 = vector.broadcast %38 : vector<2x1x8xf32> to vector<2x8x8xf32>
    %c0_i32_18 = arith.constant 0 : i32
    %c2_i32 = arith.constant 2 : i32
    %40 = arith.addi %c0_i32_18, %c2_i32 : i32
    %c1_i32 = arith.constant 1 : i32
    %41 = scf.for %arg17 = %c0_i32_18 to %40 step %c1_i32 iter_args(%arg18 = %31) -> (vector<16x32xf32>)  : i32 {
      %44 = arith.truncf %arg18 : vector<16x32xf32> to vector<16x32xbf16>
      %45 = arith.index_cast %arg17 : i32 to index
      %c0_23 = arith.constant 0 : index
      %c0_24 = arith.constant 0 : index
      %46 = vector.load %arg6[%45, %c0_23, %c0_24] : memref<2x32x1536xbf16, #tpu.memory_space<vmem>>, vector<1x32x1536xbf16>
      %47 = vector.shape_cast %46 : vector<1x32x1536xbf16> to vector<32x1536xbf16>
      %cst_25 = arith.constant dense<0.000000e+00> : vector<16x1536xf32>
      %48 = tpu.matmul %44, %47, %cst_25 {dimension_numbers = #tpu.dot_dimension_numbers<[1], [0], [0], [1], [0, 0, 1, 1], [], []>} : vector<16x32xbf16>, vector<32x1536xbf16>, vector<16x1536xf32> -> vector<16x1536xf32>
      %49 = arith.index_cast %arg17 : i32 to index
      %c0_26 = arith.constant 0 : index
      %c0_27 = arith.constant 0 : index
      %50 = vector.load %arg7[%49, %c0_26, %c0_27] : memref<2x512x32xbf16, #tpu.memory_space<vmem>>, vector<1x512x32xbf16>
      %51 = vector.shape_cast %50 : vector<1x512x32xbf16> to vector<512x32xbf16>
      %cst_28 = arith.constant 0.000000e+00 : f32
      %52 = vector.broadcast %cst_28 : f32 to vector<16x32xf32>
      %53 = vector.extract_strided_slice %48 {offsets = [0, 0], sizes = [16, 128], strides = [1, 1]} : vector<16x1536xf32> to vector<16x128xf32>
      %cst_29 = arith.constant 0.353553385 : f32
      %54 = vector.broadcast %cst_29 : f32 to vector<16x128xf32>
      %55 = arith.mulf %53, %54 : vector<16x128xf32>
      %56 = vector.shape_cast %55 : vector<16x128xf32> to vector<2x8x128xf32>
      %57 = arith.truncf %56 : vector<2x8x128xf32> to vector<2x8x128xbf16>
      %58 = vector.extract_strided_slice %48 {offsets = [0, 512], sizes = [16, 128], strides = [1, 1]} : vector<16x1536xf32> to vector<16x128xf32>
      %59 = vector.shape_cast %58 : vector<16x128xf32> to vector<2x8x128xf32>
      %60 = arith.truncf %59 : vector<2x8x128xf32> to vector<2x8x128xbf16>
      %61 = vector.extract_strided_slice %48 {offsets = [0, 1024], sizes = [16, 128], strides = [1, 1]} : vector<16x1536xf32> to vector<16x128xf32>
      %62 = vector.shape_cast %61 : vector<16x128xf32> to vector<2x8x128xf32>
      %63 = arith.truncf %62 : vector<2x8x128xf32> to vector<2x8x128xbf16>
      "tpu.trace_start"() <{level = 10 : i32, message = "bqd,bkd->bqk"}> : () -> ()
      %cst_30 = arith.constant dense<0.000000e+00> : vector<2x8x8xf32>
      %64 = tpu.matmul %57, %60, %cst_30 {dimension_numbers = #tpu.dot_dimension_numbers<[2], [2], [1], [1], [0, 0, 0, 1, 1, 1], [0], [0]>} : vector<2x8x128xbf16>, vector<2x8x128xbf16>, vector<2x8x8xf32> -> vector<2x8x8xf32>
      "tpu.trace_stop"() : () -> ()
      %65 = arith.addf %64, %39 : vector<2x8x8xf32>
      %cst_31 = arith.constant dense<0xFF800000> : vector<2x8xf32>
      %66 = vector.multi_reduction <maximumf>, %65, %cst_31 [2] : vector<2x8x8xf32> to vector<2x8xf32>
      %67 = vector.shape_cast %66 : vector<2x8xf32> to vector<2x8x1xf32>
      %68 = vector.broadcast %67 : vector<2x8x1xf32> to vector<2x8x8xf32>
      %69 = arith.subf %65, %68 : vector<2x8x8xf32>
      %70 = math.exp %69 : vector<2x8x8xf32>
      %cst_32 = arith.constant dense<0.000000e+00> : vector<2x8xf32>
      %71 = vector.multi_reduction <add>, %70, %cst_32 [2] : vector<2x8x8xf32> to vector<2x8xf32>
      %72 = vector.shape_cast %71 : vector<2x8xf32> to vector<2x8x1xf32>
      %73 = tpu.reciprocal %72 {approx = true} : vector<2x8x1xf32> -> vector<2x8x1xf32>
      %74 = vector.broadcast %73 : vector<2x8x1xf32> to vector<2x8x8xf32>
      %75 = arith.mulf %70, %74 : vector<2x8x8xf32>
      %76 = arith.truncf %75 : vector<2x8x8xf32> to vector<2x8x8xbf16>
      "tpu.trace_start"() <{level = 10 : i32, message = "bqk,bkd->bqd"}> : () -> ()
      %cst_33 = arith.constant dense<0.000000e+00> : vector<2x8x128xf32>
      %77 = tpu.matmul %76, %63, %cst_33 {dimension_numbers = #tpu.dot_dimension_numbers<[2], [1], [1], [2], [0, 0, 0, 1, 1, 2], [0], [0]>} : vector<2x8x8xbf16>, vector<2x8x128xbf16>, vector<2x8x128xf32> -> vector<2x8x128xf32>
      "tpu.trace_stop"() : () -> ()
      %78 = vector.shape_cast %77 : vector<2x8x128xf32> to vector<16x128xf32>
      %79 = arith.truncf %78 : vector<16x128xf32> to vector<16x128xbf16>
      %80 = vector.extract_strided_slice %51 {offsets = [0, 0], sizes = [128, 32], strides = [1, 1]} : vector<512x32xbf16> to vector<128x32xbf16>
      %cst_34 = arith.constant dense<0.000000e+00> : vector<16x32xf32>
      %81 = tpu.matmul %79, %80, %cst_34 {dimension_numbers = #tpu.dot_dimension_numbers<[1], [0], [0], [1], [0, 0, 1, 1], [], []>} : vector<16x128xbf16>, vector<128x32xbf16>, vector<16x32xf32> -> vector<16x32xf32>
      %82 = arith.addf %52, %81 : vector<16x32xf32>
      %83 = vector.extract_strided_slice %48 {offsets = [0, 128], sizes = [16, 128], strides = [1, 1]} : vector<16x1536xf32> to vector<16x128xf32>
      %cst_35 = arith.constant 0.353553385 : f32
      %84 = vector.broadcast %cst_35 : f32 to vector<16x128xf32>
      %85 = arith.mulf %83, %84 : vector<16x128xf32>
      %86 = vector.shape_cast %85 : vector<16x128xf32> to vector<2x8x128xf32>
      %87 = arith.truncf %86 : vector<2x8x128xf32> to vector<2x8x128xbf16>
      %88 = vector.extract_strided_slice %48 {offsets = [0, 640], sizes = [16, 128], strides = [1, 1]} : vector<16x1536xf32> to vector<16x128xf32>
      %89 = vector.shape_cast %88 : vector<16x128xf32> to vector<2x8x128xf32>
      %90 = arith.truncf %89 : vector<2x8x128xf32> to vector<2x8x128xbf16>
      %91 = vector.extract_strided_slice %48 {offsets = [0, 1152], sizes = [16, 128], strides = [1, 1]} : vector<16x1536xf32> to vector<16x128xf32>
      %92 = vector.shape_cast %91 : vector<16x128xf32> to vector<2x8x128xf32>
      %93 = arith.truncf %92 : vector<2x8x128xf32> to vector<2x8x128xbf16>
      "tpu.trace_start"() <{level = 10 : i32, message = "bqd,bkd->bqk"}> : () -> ()
      %cst_36 = arith.constant dense<0.000000e+00> : vector<2x8x8xf32>
      %94 = tpu.matmul %87, %90, %cst_36 {dimension_numbers = #tpu.dot_dimension_numbers<[2], [2], [1], [1], [0, 0, 0, 1, 1, 1], [0], [0]>} : vector<2x8x128xbf16>, vector<2x8x128xbf16>, vector<2x8x8xf32> -> vector<2x8x8xf32>
      "tpu.trace_stop"() : () -> ()
      %95 = arith.addf %94, %39 : vector<2x8x8xf32>
      %cst_37 = arith.constant dense<0xFF800000> : vector<2x8xf32>
      %96 = vector.multi_reduction <maximumf>, %95, %cst_37 [2] : vector<2x8x8xf32> to vector<2x8xf32>
      %97 = vector.shape_cast %96 : vector<2x8xf32> to vector<2x8x1xf32>
      %98 = vector.broadcast %97 : vector<2x8x1xf32> to vector<2x8x8xf32>
      %99 = arith.subf %95, %98 : vector<2x8x8xf32>
      %100 = math.exp %99 : vector<2x8x8xf32>
      %cst_38 = arith.constant dense<0.000000e+00> : vector<2x8xf32>
      %101 = vector.multi_reduction <add>, %100, %cst_38 [2] : vector<2x8x8xf32> to vector<2x8xf32>
      %102 = vector.shape_cast %101 : vector<2x8xf32> to vector<2x8x1xf32>
      %103 = tpu.reciprocal %102 {approx = true} : vector<2x8x1xf32> -> vector<2x8x1xf32>
      %104 = vector.broadcast %103 : vector<2x8x1xf32> to vector<2x8x8xf32>
      %105 = arith.mulf %100, %104 : vector<2x8x8xf32>
      %106 = arith.truncf %105 : vector<2x8x8xf32> to vector<2x8x8xbf16>
      "tpu.trace_start"() <{level = 10 : i32, message = "bqk,bkd->bqd"}> : () -> ()
      %cst_39 = arith.constant dense<0.000000e+00> : vector<2x8x128xf32>
      %107 = tpu.matmul %106, %93, %cst_39 {dimension_numbers = #tpu.dot_dimension_numbers<[2], [1], [1], [2], [0, 0, 0, 1, 1, 2], [0], [0]>} : vector<2x8x8xbf16>, vector<2x8x128xbf16>, vector<2x8x128xf32> -> vector<2x8x128xf32>
      "tpu.trace_stop"() : () -> ()
      %108 = vector.shape_cast %107 : vector<2x8x128xf32> to vector<16x128xf32>
      %109 = arith.truncf %108 : vector<16x128xf32> to vector<16x128xbf16>
      %110 = vector.extract_strided_slice %51 {offsets = [128, 0], sizes = [128, 32], strides = [1, 1]} : vector<512x32xbf16> to vector<128x32xbf16>
      %cst_40 = arith.constant dense<0.000000e+00> : vector<16x32xf32>
      %111 = tpu.matmul %109, %110, %cst_40 {dimension_numbers = #tpu.dot_dimension_numbers<[1], [0], [0], [1], [0, 0, 1, 1], [], []>} : vector<16x128xbf16>, vector<128x32xbf16>, vector<16x32xf32> -> vector<16x32xf32>
      %112 = arith.addf %82, %111 : vector<16x32xf32>
      %113 = vector.extract_strided_slice %48 {offsets = [0, 256], sizes = [16, 128], strides = [1, 1]} : vector<16x1536xf32> to vector<16x128xf32>
      %cst_41 = arith.constant 0.353553385 : f32
      %114 = vector.broadcast %cst_41 : f32 to vector<16x128xf32>
      %115 = arith.mulf %113, %114 : vector<16x128xf32>
      %116 = vector.shape_cast %115 : vector<16x128xf32> to vector<2x8x128xf32>
      %117 = arith.truncf %116 : vector<2x8x128xf32> to vector<2x8x128xbf16>
      %118 = vector.extract_strided_slice %48 {offsets = [0, 768], sizes = [16, 128], strides = [1, 1]} : vector<16x1536xf32> to vector<16x128xf32>
      %119 = vector.shape_cast %118 : vector<16x128xf32> to vector<2x8x128xf32>
      %120 = arith.truncf %119 : vector<2x8x128xf32> to vector<2x8x128xbf16>
      %121 = vector.extract_strided_slice %48 {offsets = [0, 1280], sizes = [16, 128], strides = [1, 1]} : vector<16x1536xf32> to vector<16x128xf32>
      %122 = vector.shape_cast %121 : vector<16x128xf32> to vector<2x8x128xf32>
      %123 = arith.truncf %122 : vector<2x8x128xf32> to vector<2x8x128xbf16>
      "tpu.trace_start"() <{level = 10 : i32, message = "bqd,bkd->bqk"}> : () -> ()
      %cst_42 = arith.constant dense<0.000000e+00> : vector<2x8x8xf32>
      %124 = tpu.matmul %117, %120, %cst_42 {dimension_numbers = #tpu.dot_dimension_numbers<[2], [2], [1], [1], [0, 0, 0, 1, 1, 1], [0], [0]>} : vector<2x8x128xbf16>, vector<2x8x128xbf16>, vector<2x8x8xf32> -> vector<2x8x8xf32>
      "tpu.trace_stop"() : () -> ()
      %125 = arith.addf %124, %39 : vector<2x8x8xf32>
      %cst_43 = arith.constant dense<0xFF800000> : vector<2x8xf32>
      %126 = vector.multi_reduction <maximumf>, %125, %cst_43 [2] : vector<2x8x8xf32> to vector<2x8xf32>
      %127 = vector.shape_cast %126 : vector<2x8xf32> to vector<2x8x1xf32>
      %128 = vector.broadcast %127 : vector<2x8x1xf32> to vector<2x8x8xf32>
      %129 = arith.subf %125, %128 : vector<2x8x8xf32>
      %130 = math.exp %129 : vector<2x8x8xf32>
      %cst_44 = arith.constant dense<0.000000e+00> : vector<2x8xf32>
      %131 = vector.multi_reduction <add>, %130, %cst_44 [2] : vector<2x8x8xf32> to vector<2x8xf32>
      %132 = vector.shape_cast %131 : vector<2x8xf32> to vector<2x8x1xf32>
      %133 = tpu.reciprocal %132 {approx = true} : vector<2x8x1xf32> -> vector<2x8x1xf32>
      %134 = vector.broadcast %133 : vector<2x8x1xf32> to vector<2x8x8xf32>
      %135 = arith.mulf %130, %134 : vector<2x8x8xf32>
      %136 = arith.truncf %135 : vector<2x8x8xf32> to vector<2x8x8xbf16>
      "tpu.trace_start"() <{level = 10 : i32, message = "bqk,bkd->bqd"}> : () -> ()
      %cst_45 = arith.constant dense<0.000000e+00> : vector<2x8x128xf32>
      %137 = tpu.matmul %136, %123, %cst_45 {dimension_numbers = #tpu.dot_dimension_numbers<[2], [1], [1], [2], [0, 0, 0, 1, 1, 2], [0], [0]>} : vector<2x8x8xbf16>, vector<2x8x128xbf16>, vector<2x8x128xf32> -> vector<2x8x128xf32>
      "tpu.trace_stop"() : () -> ()
      %138 = vector.shape_cast %137 : vector<2x8x128xf32> to vector<16x128xf32>
      %139 = arith.truncf %138 : vector<16x128xf32> to vector<16x128xbf16>
      %140 = vector.extract_strided_slice %51 {offsets = [256, 0], sizes = [128, 32], strides = [1, 1]} : vector<512x32xbf16> to vector<128x32xbf16>
      %cst_46 = arith.constant dense<0.000000e+00> : vector<16x32xf32>
      %141 = tpu.matmul %139, %140, %cst_46 {dimension_numbers = #tpu.dot_dimension_numbers<[1], [0], [0], [1], [0, 0, 1, 1], [], []>} : vector<16x128xbf16>, vector<128x32xbf16>, vector<16x32xf32> -> vector<16x32xf32>
      %142 = arith.addf %112, %141 : vector<16x32xf32>
      %143 = vector.extract_strided_slice %48 {offsets = [0, 384], sizes = [16, 128], strides = [1, 1]} : vector<16x1536xf32> to vector<16x128xf32>
      %cst_47 = arith.constant 0.353553385 : f32
      %144 = vector.broadcast %cst_47 : f32 to vector<16x128xf32>
      %145 = arith.mulf %143, %144 : vector<16x128xf32>
      %146 = vector.shape_cast %145 : vector<16x128xf32> to vector<2x8x128xf32>
      %147 = arith.truncf %146 : vector<2x8x128xf32> to vector<2x8x128xbf16>
      %148 = vector.extract_strided_slice %48 {offsets = [0, 896], sizes = [16, 128], strides = [1, 1]} : vector<16x1536xf32> to vector<16x128xf32>
      %149 = vector.shape_cast %148 : vector<16x128xf32> to vector<2x8x128xf32>
      %150 = arith.truncf %149 : vector<2x8x128xf32> to vector<2x8x128xbf16>
      %151 = vector.extract_strided_slice %48 {offsets = [0, 1408], sizes = [16, 128], strides = [1, 1]} : vector<16x1536xf32> to vector<16x128xf32>
      %152 = vector.shape_cast %151 : vector<16x128xf32> to vector<2x8x128xf32>
      %153 = arith.truncf %152 : vector<2x8x128xf32> to vector<2x8x128xbf16>
      "tpu.trace_start"() <{level = 10 : i32, message = "bqd,bkd->bqk"}> : () -> ()
      %cst_48 = arith.constant dense<0.000000e+00> : vector<2x8x8xf32>
      %154 = tpu.matmul %147, %150, %cst_48 {dimension_numbers = #tpu.dot_dimension_numbers<[2], [2], [1], [1], [0, 0, 0, 1, 1, 1], [0], [0]>} : vector<2x8x128xbf16>, vector<2x8x128xbf16>, vector<2x8x8xf32> -> vector<2x8x8xf32>
      "tpu.trace_stop"() : () -> ()
      %155 = arith.addf %154, %39 : vector<2x8x8xf32>
      %cst_49 = arith.constant dense<0xFF800000> : vector<2x8xf32>
      %156 = vector.multi_reduction <maximumf>, %155, %cst_49 [2] : vector<2x8x8xf32> to vector<2x8xf32>
      %157 = vector.shape_cast %156 : vector<2x8xf32> to vector<2x8x1xf32>
      %158 = vector.broadcast %157 : vector<2x8x1xf32> to vector<2x8x8xf32>
      %159 = arith.subf %155, %158 : vector<2x8x8xf32>
      %160 = math.exp %159 : vector<2x8x8xf32>
      %cst_50 = arith.constant dense<0.000000e+00> : vector<2x8xf32>
      %161 = vector.multi_reduction <add>, %160, %cst_50 [2] : vector<2x8x8xf32> to vector<2x8xf32>
      %162 = vector.shape_cast %161 : vector<2x8xf32> to vector<2x8x1xf32>
      %163 = tpu.reciprocal %162 {approx = true} : vector<2x8x1xf32> -> vector<2x8x1xf32>
      %164 = vector.broadcast %163 : vector<2x8x1xf32> to vector<2x8x8xf32>
      %165 = arith.mulf %160, %164 : vector<2x8x8xf32>
      %166 = arith.truncf %165 : vector<2x8x8xf32> to vector<2x8x8xbf16>
      "tpu.trace_start"() <{level = 10 : i32, message = "bqk,bkd->bqd"}> : () -> ()
      %cst_51 = arith.constant dense<0.000000e+00> : vector<2x8x128xf32>
      %167 = tpu.matmul %166, %153, %cst_51 {dimension_numbers = #tpu.dot_dimension_numbers<[2], [1], [1], [2], [0, 0, 0, 1, 1, 2], [0], [0]>} : vector<2x8x8xbf16>, vector<2x8x128xbf16>, vector<2x8x128xf32> -> vector<2x8x128xf32>
      "tpu.trace_stop"() : () -> ()
      %168 = vector.shape_cast %167 : vector<2x8x128xf32> to vector<16x128xf32>
      %169 = arith.truncf %168 : vector<16x128xf32> to vector<16x128xbf16>
      %170 = vector.extract_strided_slice %51 {offsets = [384, 0], sizes = [128, 32], strides = [1, 1]} : vector<512x32xbf16> to vector<128x32xbf16>
      %cst_52 = arith.constant dense<0.000000e+00> : vector<16x32xf32>
      %171 = tpu.matmul %169, %170, %cst_52 {dimension_numbers = #tpu.dot_dimension_numbers<[1], [0], [0], [1], [0, 0, 1, 1], [], []>} : vector<16x128xbf16>, vector<128x32xbf16>, vector<16x32xf32> -> vector<16x32xf32>
      %172 = arith.addf %142, %171 : vector<16x32xf32>
      %173 = arith.addf %172, %arg18 : vector<16x32xf32>
      %174 = arith.index_cast %arg17 : i32 to index
      %c0_53 = arith.constant 0 : index
      %c0_54 = arith.constant 0 : index
      %175 = vector.load %arg8[%174, %c0_53, %c0_54] : memref<2x1x32xf32, #tpu.memory_space<vmem>>, vector<1x1x32xf32>
      %176 = vector.shape_cast %175 : vector<1x1x32xf32> to vector<1x32xf32>
      %177 = arith.index_cast %arg17 : i32 to index
      %c0_55 = arith.constant 0 : index
      %c0_56 = arith.constant 0 : index
      %178 = vector.load %arg9[%177, %c0_55, %c0_56] : memref<2x1x32xf32, #tpu.memory_space<vmem>>, vector<1x1x32xf32>
      %179 = vector.shape_cast %178 : vector<1x1x32xf32> to vector<1x32xf32>
      %cst_57 = arith.constant dense<0.000000e+00> : vector<16xf32>
      %180 = vector.multi_reduction <add>, %173, %cst_57 [1] : vector<16x32xf32> to vector<16xf32>
      %181 = vector.shape_cast %180 : vector<16xf32> to vector<16x1xf32>
      %cst_58 = arith.constant 3.200000e+01 : f32
      %182 = vector.broadcast %cst_58 : f32 to vector<16x1xf32>
      %183 = arith.divf %181, %182 : vector<16x1xf32>
      %184 = vector.broadcast %183 : vector<16x1xf32> to vector<16x32xf32>
      %185 = arith.subf %173, %184 : vector<16x32xf32>
      %186 = arith.mulf %185, %185 : vector<16x32xf32>
      %cst_59 = arith.constant dense<0.000000e+00> : vector<16xf32>
      %187 = vector.multi_reduction <add>, %186, %cst_59 [1] : vector<16x32xf32> to vector<16xf32>
      %188 = vector.shape_cast %187 : vector<16xf32> to vector<16x1xf32>
      %cst_60 = arith.constant 3.200000e+01 : f32
      %189 = vector.broadcast %cst_60 : f32 to vector<16x1xf32>
      %190 = arith.divf %188, %189 : vector<16x1xf32>
      %191 = vector.broadcast %183 : vector<16x1xf32> to vector<16x32xf32>
      %192 = arith.subf %173, %191 : vector<16x32xf32>
      %cst_61 = arith.constant 9.99999997E-7 : f32
      %193 = vector.broadcast %cst_61 : f32 to vector<16x1xf32>
      %194 = arith.addf %190, %193 : vector<16x1xf32>
      %195 = math.rsqrt %194 : vector<16x1xf32>
      %196 = vector.broadcast %195 : vector<16x1xf32> to vector<16x32xf32>
      %197 = arith.mulf %192, %196 : vector<16x32xf32>
      %198 = vector.broadcast %176 : vector<1x32xf32> to vector<16x32xf32>
      %199 = arith.mulf %197, %198 : vector<16x32xf32>
      %200 = vector.broadcast %179 : vector<1x32xf32> to vector<16x32xf32>
      %201 = arith.addf %199, %200 : vector<16x32xf32>
      %202 = arith.truncf %201 : vector<16x32xf32> to vector<16x32xbf16>
      %203 = arith.index_cast %arg17 : i32 to index
      %c0_62 = arith.constant 0 : index
      %c0_63 = arith.constant 0 : index
      %204 = vector.load %arg10[%203, %c0_62, %c0_63] : memref<2x32x64xbf16, #tpu.memory_space<vmem>>, vector<1x32x64xbf16>
      %205 = vector.shape_cast %204 : vector<1x32x64xbf16> to vector<32x64xbf16>
      %cst_64 = arith.constant dense<0.000000e+00> : vector<16x64xf32>
      %206 = tpu.matmul %202, %205, %cst_64 {dimension_numbers = #tpu.dot_dimension_numbers<[1], [0], [0], [1], [0, 0, 1, 1], [], []>} : vector<16x32xbf16>, vector<32x64xbf16>, vector<16x64xf32> -> vector<16x64xf32>
      %207 = arith.index_cast %arg17 : i32 to index
      %c0_65 = arith.constant 0 : index
      %c0_66 = arith.constant 0 : index
      %208 = vector.load %arg11[%207, %c0_65, %c0_66] : memref<2x1x64xf32, #tpu.memory_space<vmem>>, vector<1x1x64xf32>
      %209 = vector.shape_cast %208 : vector<1x1x64xf32> to vector<1x64xf32>
      %210 = vector.broadcast %209 : vector<1x64xf32> to vector<16x64xf32>
      %211 = arith.addf %206, %210 : vector<16x64xf32>
      %cst_67 = arith.constant 0.000000e+00 : f32
      %212 = vector.broadcast %cst_67 : f32 to vector<16x64xf32>
      %213 = arith.maximumf %211, %212 : vector<16x64xf32>
      %214 = arith.truncf %213 : vector<16x64xf32> to vector<16x64xbf16>
      %215 = arith.index_cast %arg17 : i32 to index
      %c0_68 = arith.constant 0 : index
      %c0_69 = arith.constant 0 : index
      %216 = vector.load %arg12[%215, %c0_68, %c0_69] : memref<2x64x32xbf16, #tpu.memory_space<vmem>>, vector<1x64x32xbf16>
      %217 = vector.shape_cast %216 : vector<1x64x32xbf16> to vector<64x32xbf16>
      %cst_70 = arith.constant dense<0.000000e+00> : vector<16x32xf32>
      %218 = tpu.matmul %214, %217, %cst_70 {dimension_numbers = #tpu.dot_dimension_numbers<[1], [0], [0], [1], [0, 0, 1, 1], [], []>} : vector<16x64xbf16>, vector<64x32xbf16>, vector<16x32xf32> -> vector<16x32xf32>
      %219 = arith.index_cast %arg17 : i32 to index
      %c0_71 = arith.constant 0 : index
      %c0_72 = arith.constant 0 : index
      %220 = vector.load %arg13[%219, %c0_71, %c0_72] : memref<2x1x32xf32, #tpu.memory_space<vmem>>, vector<1x1x32xf32>
      %221 = vector.shape_cast %220 : vector<1x1x32xf32> to vector<1x32xf32>
      %222 = vector.broadcast %221 : vector<1x32xf32> to vector<16x32xf32>
      %223 = arith.addf %218, %222 : vector<16x32xf32>
      %224 = arith.addf %223, %201 : vector<16x32xf32>
      %225 = arith.index_cast %arg17 : i32 to index
      %c0_73 = arith.constant 0 : index
      %c0_74 = arith.constant 0 : index
      %226 = vector.load %arg14[%225, %c0_73, %c0_74] : memref<2x1x32xf32, #tpu.memory_space<vmem>>, vector<1x1x32xf32>
      %227 = vector.shape_cast %226 : vector<1x1x32xf32> to vector<1x32xf32>
      %228 = arith.index_cast %arg17 : i32 to index
      %c0_75 = arith.constant 0 : index
      %c0_76 = arith.constant 0 : index
      %229 = vector.load %arg15[%228, %c0_75, %c0_76] : memref<2x1x32xf32, #tpu.memory_space<vmem>>, vector<1x1x32xf32>
      %230 = vector.shape_cast %229 : vector<1x1x32xf32> to vector<1x32xf32>
      %cst_77 = arith.constant dense<0.000000e+00> : vector<16xf32>
      %231 = vector.multi_reduction <add>, %224, %cst_77 [1] : vector<16x32xf32> to vector<16xf32>
      %232 = vector.shape_cast %231 : vector<16xf32> to vector<16x1xf32>
      %cst_78 = arith.constant 3.200000e+01 : f32
      %233 = vector.broadcast %cst_78 : f32 to vector<16x1xf32>
      %234 = arith.divf %232, %233 : vector<16x1xf32>
      %235 = vector.broadcast %234 : vector<16x1xf32> to vector<16x32xf32>
      %236 = arith.subf %224, %235 : vector<16x32xf32>
      %237 = arith.mulf %236, %236 : vector<16x32xf32>
      %cst_79 = arith.constant dense<0.000000e+00> : vector<16xf32>
      %238 = vector.multi_reduction <add>, %237, %cst_79 [1] : vector<16x32xf32> to vector<16xf32>
      %239 = vector.shape_cast %238 : vector<16xf32> to vector<16x1xf32>
      %cst_80 = arith.constant 3.200000e+01 : f32
      %240 = vector.broadcast %cst_80 : f32 to vector<16x1xf32>
      %241 = arith.divf %239, %240 : vector<16x1xf32>
      %242 = vector.broadcast %234 : vector<16x1xf32> to vector<16x32xf32>
      %243 = arith.subf %224, %242 : vector<16x32xf32>
      %cst_81 = arith.constant 9.99999997E-7 : f32
      %244 = vector.broadcast %cst_81 : f32 to vector<16x1xf32>
      %245 = arith.addf %241, %244 : vector<16x1xf32>
      %246 = math.rsqrt %245 : vector<16x1xf32>
      %247 = vector.broadcast %246 : vector<16x1xf32> to vector<16x32xf32>
      %248 = arith.mulf %243, %247 : vector<16x32xf32>
      %249 = vector.broadcast %227 : vector<1x32xf32> to vector<16x32xf32>
      %250 = arith.mulf %248, %249 : vector<16x32xf32>
      %251 = vector.broadcast %230 : vector<1x32xf32> to vector<16x32xf32>
      %252 = arith.addf %250, %251 : vector<16x32xf32>
      scf.yield %252 : vector<16x32xf32>
    }
    %c2_i32_19 = arith.constant 2 : i32
    %42 = vector.shape_cast %41 : vector<16x32xf32> to vector<2x8x32xf32>
    %c0_20 = arith.constant 0 : index
    %c0_21 = arith.constant 0 : index
    %c0_22 = arith.constant 0 : index
    %43 = vector.load %arg16[%c0_20, %c0_21, %c0_22] : memref<2x8x32xf32, #tpu.memory_space<vmem>>, vector<2x8x32xf32>
    tpu.vector_store %arg16[%c0_20, %c0_21, %c0_22], %42 {strides = array<i32>} : memref<2x8x32xf32, #tpu.memory_space<vmem>>, vector<2x8x32xf32>,
    return
  }
  func.func @transform_0(%arg0: i32) -> (i32, i32, i32) {
    %c0_i32 = arith.constant 0 : i32
    %c0_i32_0 = arith.constant 0 : i32
    %c0_i32_1 = arith.constant 0 : i32
    return %arg0, %c0_i32, %c0_i32_0 : i32, i32, i32
  }
  func.func @transform_1(%arg0: i32) -> (i32, i32) {
    %c0_i32 = arith.constant 0 : i32
    %c0_i32_0 = arith.constant 0 : i32
    %c0_i32_1 = arith.constant 0 : i32
    return %c0_i32, %c0_i32_0 : i32, i32
  }
  func.func @transform_2(%arg0: i32) -> (i32, i32, i32) {
    %c0_i32 = arith.constant 0 : i32
    %c0_i32_0 = arith.constant 0 : i32
    %c0_i32_1 = arith.constant 0 : i32
    return %arg0, %c0_i32, %c0_i32_0 : i32, i32, i32
  }
  func.func @transform_3(%arg0: i32) -> (i32, i32) {
    %c0_i32 = arith.constant 0 : i32
    %c0_i32_0 = arith.constant 0 : i32
    %c0_i32_1 = arith.constant 0 : i32
    return %c0_i32, %c0_i32_0 : i32, i32
  }
  func.func @transform_4(%arg0: i32) -> (i32, i32) {
    %c0_i32 = arith.constant 0 : i32
    %c0_i32_0 = arith.constant 0 : i32
    %c0_i32_1 = arith.constant 0 : i32
    return %c0_i32, %c0_i32_0 : i32, i32
  }
  func.func @transform_5(%arg0: i32) -> (i32, i32, i32) {
    %c0_i32 = arith.constant 0 : i32
    %c0_i32_0 = arith.constant 0 : i32
    %c0_i32_1 = arith.constant 0 : i32
    %c0_i32_2 = arith.constant 0 : i32
    return %c0_i32, %c0_i32_0, %c0_i32_1 : i32, i32, i32
  }
  func.func @transform_6(%arg0: i32) -> (i32, i32, i32) {
    %c0_i32 = arith.constant 0 : i32
    %c0_i32_0 = arith.constant 0 : i32
    %c0_i32_1 = arith.constant 0 : i32
    %c0_i32_2 = arith.constant 0 : i32
    return %c0_i32, %c0_i32_0, %c0_i32_1 : i32, i32, i32
  }
  func.func @transform_7(%arg0: i32) -> (i32, i32, i32) {
    %c0_i32 = arith.constant 0 : i32
    %c0_i32_0 = arith.constant 0 : i32
    %c0_i32_1 = arith.constant 0 : i32
    %c0_i32_2 = arith.constant 0 : i32
    return %c0_i32, %c0_i32_0, %c0_i32_1 : i32, i32, i32
  }
  func.func @transform_8(%arg0: i32) -> (i32, i32, i32) {
    %c0_i32 = arith.constant 0 : i32
    %c0_i32_0 = arith.constant 0 : i32
    %c0_i32_1 = arith.constant 0 : i32
    %c0_i32_2 = arith.constant 0 : i32
    return %c0_i32, %c0_i32_0, %c0_i32_1 : i32, i32, i32
  }
  func.func @transform_9(%arg0: i32) -> (i32, i32, i32) {
    %c0_i32 = arith.constant 0 : i32
    %c0_i32_0 = arith.constant 0 : i32
    %c0_i32_1 = arith.constant 0 : i32
    %c0_i32_2 = arith.constant 0 : i32
    return %c0_i32, %c0_i32_0, %c0_i32_1 : i32, i32, i32
  }
  func.func @transform_10(%arg0: i32) -> (i32, i32, i32) {
    %c0_i32 = arith.constant 0 : i32
    %c0_i32_0 = arith.constant 0 : i32
    %c0_i32_1 = arith.constant 0 : i32
    %c0_i32_2 = arith.constant 0 : i32
    return %c0_i32, %c0_i32_0, %c0_i32_1 : i32, i32, i32
  }
  func.func @transform_11(%arg0: i32) -> (i32, i32, i32) {
    %c0_i32 = arith.constant 0 : i32
    %c0_i32_0 = arith.constant 0 : i32
    %c0_i32_1 = arith.constant 0 : i32
    %c0_i32_2 = arith.constant 0 : i32
    return %c0_i32, %c0_i32_0, %c0_i32_1 : i32, i32, i32
  }
  func.func @transform_12(%arg0: i32) -> (i32, i32, i32) {
    %c0_i32 = arith.constant 0 : i32
    %c0_i32_0 = arith.constant 0 : i32
    %c0_i32_1 = arith.constant 0 : i32
    %c0_i32_2 = arith.constant 0 : i32
    return %c0_i32, %c0_i32_0, %c0_i32_1 : i32, i32, i32
  }
  func.func @transform_13(%arg0: i32) -> (i32, i32, i32) {
    %c0_i32 = arith.constant 0 : i32
    %c0_i32_0 = arith.constant 0 : i32
    %c0_i32_1 = arith.constant 0 : i32
    %c0_i32_2 = arith.constant 0 : i32
    return %c0_i32, %c0_i32_0, %c0_i32_1 : i32, i32, i32
  }
  func.func @transform_14(%arg0: i32) -> (i32, i32, i32) {
    %c0_i32 = arith.constant 0 : i32
    %c0_i32_0 = arith.constant 0 : i32
    %c0_i32_1 = arith.constant 0 : i32
    %c0_i32_2 = arith.constant 0 : i32
    return %c0_i32, %c0_i32_0, %c0_i32_1 : i32, i32, i32
  }
  func.func @transform_15(%arg0: i32) -> (i32, i32, i32) {
    %c0_i32 = arith.constant 0 : i32
    %c0_i32_0 = arith.constant 0 : i32
    %c0_i32_1 = arith.constant 0 : i32
    return %arg0, %c0_i32, %c0_i32_0 : i32, i32, i32
  }
}

module attributes {stable_mosaic.version = 11 : i64} {
  func.func @_encoder_kernel(%arg0: i32, %arg1: memref<2x8x32xf32, #tpu.memory_space<vmem>>, %arg2: memref<8x32xf32, #tpu.memory_space<vmem>>, %arg3: memref<2x1x8xi32, #tpu.memory_space<vmem>>, %arg4: memref<1x32xf32, #tpu.memory_space<vmem>>, %arg5: memref<1x32xf32, #tpu.memory_space<vmem>>, %arg6: memref<2x32x1536xbf16, #tpu.memory_space<vmem>>, %arg7: memref<2x512x32xbf16, #tpu.memory_space<vmem>>, %arg8: memref<2x1x32xf32, #tpu.memory_space<vmem>>, %arg9: memref<2x1x32xf32, #tpu.memory_space<vmem>>, %arg10: memref<2x32x64xbf16, #tpu.memory_space<vmem>>, %arg11: memref<2x1x64xf32, #tpu.memory_space<vmem>>, %arg12: memref<2x64x32xbf16, #tpu.memory_space<vmem>>, %arg13: memref<2x1x32xf32, #tpu.memory_space<vmem>>, %arg14: memref<2x1x32xf32, #tpu.memory_space<vmem>>, %arg15: memref<2x1x32xf32, #tpu.memory_space<vmem>>, %arg16: memref<2x8x32xf32, #tpu.memory_space<vmem>>) attributes {dimension_semantics = [#tpu.dimension_semantics<parallel>], iteration_bounds = array<i64: 1>, scalar_prefetch = 0 : i64, scratch_operands = 0 : i64, tpu.core_type = #tpu.core_type<tc>, window_params = [{transform_indices = @transform_0, window_bounds = array<i64: 2, 8, 32>}, {pipeline_mode = #tpu.pipeline_mode<synchronous>, transform_indices = @transform_1, window_bounds = array<i64: 8, 32>}, {transform_indices = @transform_2, window_bounds = array<i64: 2, 1, 8>}, {pipeline_mode = #tpu.pipeline_mode<synchronous>, transform_indices = @transform_3, window_bounds = array<i64: 1, 32>}, {pipeline_mode = #tpu.pipeline_mode<synchronous>, transform_indices = @transform_4, window_bounds = array<i64: 1, 32>}, {pipeline_mode = #tpu.pipeline_mode<synchronous>, transform_indices = @transform_5, window_bounds = array<i64: 2, 32, 1536>}, {pipeline_mode = #tpu.pipeline_mode<synchronous>, transform_indices = @transform_6, window_bounds = array<i64: 2, 512, 32>}, {pipeline_mode = #tpu.pipeline_mode<synchronous>, transform_indices = @transform_7, window_bounds = array<i64: 2, 1, 32>}, {pipeline_mode = #tpu.pipeline_mode<synchronous>, transform_indices = @transform_8, window_bounds = array<i64: 2, 1, 32>}, {pipeline_mode = #tpu.pipeline_mode<synchronous>, transform_indices = @transform_9, window_bounds = array<i64: 2, 32, 64>}, {pipeline_mode = #tpu.pipeline_mode<synchronous>, transform_indices = @transform_10, window_bounds = array<i64: 2, 1, 64>}, {pipeline_mode = #tpu.pipeline_mode<synchronous>, transform_indices = @transform_11, window_bounds = array<i64: 2, 64, 32>}, {pipeline_mode = #tpu.pipeline_mode<synchronous>, transform_indices = @transform_12, window_bounds = array<i64: 2, 1, 32>}, {pipeline_mode = #tpu.pipeline_mode<synchronous>, transform_indices = @transform_13, window_bounds = array<i64: 2, 1, 32>}, {pipeline_mode = #tpu.pipeline_mode<synchronous>, transform_indices = @transform_14, window_bounds = array<i64: 2, 1, 32>}, {transform_indices = @transform_15, window_bounds = array<i64: 2, 8, 32>}]} {
    %c0 = arith.constant 0 : index
    %c0_0 = arith.constant 0 : index
    %c0_1 = arith.constant 0 : index
    %0 = vector.load %arg1[%c0, %c0_0, %c0_1] : memref<2x8x32xf32, #tpu.memory_space<vmem>>, vector<2x8x32xf32>
    %cst = arith.constant 5.65685415 : f32
    %1 = vector.broadcast %cst : f32 to vector<2x8x32xf32>
    %2 = arith.mulf %0, %1 : vector<2x8x32xf32>
    %c0_2 = arith.constant 0 : index
    %c0_3 = arith.constant 0 : index
    %3 = vector.load %arg2[%c0_2, %c0_3] : memref<8x32xf32, #tpu.memory_space<vmem>>, vector<8x32xf32>
    %4 = vector.shape_cast %3 : vector<8x32xf32> to vector<1x8x32xf32>
    %5 = vector.broadcast %4 : vector<1x8x32xf32> to vector<2x8x32xf32>
    %6 = arith.addf %2, %5 : vector<2x8x32xf32>
    %7 = vector.shape_cast %6 : vector<2x8x32xf32> to vector<16x32xf32>
    %c0_4 = arith.constant 0 : index
    %c0_5 = arith.constant 0 : index
    %8 = vector.load %arg4[%c0_4, %c0_5] : memref<1x32xf32, #tpu.memory_space<vmem>>, vector<1x32xf32>
    %c0_6 = arith.constant 0 : index
    %c0_7 = arith.constant 0 : index
    %9 = vector.load %arg5[%c0_6, %c0_7] : memref<1x32xf32, #tpu.memory_space<vmem>>, vector<1x32xf32>
    %cst_8 = arith.constant dense<0.000000e+00> : vector<16xf32>
    %10 = vector.multi_reduction <add>, %7, %cst_8 [1] : vector<16x32xf32> to vector<16xf32>
    %11 = vector.shape_cast %10 : vector<16xf32> to vector<16x1xf32>
    %cst_9 = arith.constant 3.200000e+01 : f32
    %12 = vector.broadcast %cst_9 : f32 to vector<16x1xf32>
    %13 = arith.divf %11, %12 : vector<16x1xf32>
    %14 = vector.broadcast %13 : vector<16x1xf32> to vector<16x32xf32>
    %15 = arith.subf %7, %14 : vector<16x32xf32>
    %16 = arith.mulf %15, %15 : vector<16x32xf32>
    %cst_10 = arith.constant dense<0.000000e+00> : vector<16xf32>
    %17 = vector.multi_reduction <add>, %16, %cst_10 [1] : vector<16x32xf32> to vector<16xf32>
    %18 = vector.shape_cast %17 : vector<16xf32> to vector<16x1xf32>
    %cst_11 = arith.constant 3.200000e+01 : f32
    %19 = vector.broadcast %cst_11 : f32 to vector<16x1xf32>
    %20 = arith.divf %18, %19 : vector<16x1xf32>
    %21 = vector.broadcast %13 : vector<16x1xf32> to vector<16x32xf32>
    %22 = arith.subf %7, %21 : vector<16x32xf32>
    %cst_12 = arith.constant 9.99999997E-7 : f32
    %23 = vector.broadcast %cst_12 : f32 to vector<16x1xf32>
    %24 = arith.addf %20, %23 : vector<16x1xf32>
    %25 = math.rsqrt %24 : vector<16x1xf32>
    %26 = vector.broadcast %25 : vector<16x1xf32> to vector<16x32xf32>
    %27 = arith.mulf %22, %26 : vector<16x32xf32>
    %28 = vector.broadcast %8 : vector<1x32xf32> to vector<16x32xf32>
    %29 = arith.mulf %27, %28 : vector<16x32xf32>
    %30 = vector.broadcast %9 : vector<1x32xf32> to vector<16x32xf32>
    %31 = arith.addf %29, %30 : vector<16x32xf32>
    %c0_13 = arith.constant 0 : index
    %c0_14 = arith.constant 0 : index
    %c0_15 = arith.constant 0 : index
    %32 = vector.load %arg3[%c0_13, %c0_14, %c0_15] : memref<2x1x8xi32, #tpu.memory_space<vmem>>, vector<2x1x8xi32>
    %c0_i32 = arith.constant 0 : i32
    %33 = vector.broadcast %c0_i32 : i32 to vector<2x1x8xi32>
    %34 = arith.cmpi eq, %32, %33 : vector<2x1x8xi32>
    %cst_16 = arith.constant -1.000000e+09 : f32
    %cst_17 = arith.constant 0.000000e+00 : f32
    %35 = vector.broadcast %cst_16 : f32 to vector<2x1x8xf32>
    %36 = vector.broadcast %cst_17 : f32 to vector<2x1x8xf32>
    %37 = arith.select %34, %35, %36 : vector<2x1x8xi1>, vector<2x1x8xf32>
    %38 = vector.shape_cast %37 : vector<2x1x8xf32> to vector<2x1x8xf32>
    %39 = vector.broadcast %38 : vector<2x1x8xf32> to vector<2x8x8xf32>
    %c0_i32_18 = arith.constant 0 : i32
    %c2_i32 = arith.constant 2 : i32
    %40 = arith.addi %c0_i32_18, %c2_i32 : i32
    %c1_i32 = arith.constant 1 : i32
    %41 = scf.for %arg17 = %c0_i32_18 to %40 step %c1_i32 iter_args(%arg18 = %31) -> (vector<16x32xf32>)  : i32 {
      %44 = arith.truncf %arg18 : vector<16x32xf32> to vector<16x32xbf16>
      %45 = arith.index_cast %arg17 : i32 to index
      %c0_23 = arith.constant 0 : index
      %c0_24 = arith.constant 0 : index
      %46 = vector.load %arg6[%45, %c0_23, %c0_24] : memref<2x32x1536xbf16, #tpu.memory_space<vmem>>, vector<1x32x1536xbf16>
      %47 = vector.shape_cast %46 : vector<1x32x1536xbf16> to vector<32x1536xbf16>
      %cst_25 = arith.constant dense<0.000000e+00> : vector<16x1536xf32>
      %48 = tpu.matmul %44, %47, %cst_25 {dimension_numbers = #tpu.dot_dimension_numbers<[1], [0], [0], [1], [0, 0, 1, 1], [], []>} : vector<16x32xbf16>, vector<32x1536xbf16>, vector<16x1536xf32> -> vector<16x1536xf32>
      %49 = arith.index_cast %arg17 : i32 to index
      %c0_26 = arith.constant 0 : index
      %c0_27 = arith.constant 0 : index
      %50 = vector.load %arg7[%49, %c0_26, %c0_27] : memref<2x512x32xbf16, #tpu.memory_space<vmem>>, vector<1x512x32xbf16>
      %51 = vector.shape_cast %50 : vector<1x512x32xbf16> to vector<512x32xbf16>
      %cst_28 = arith.constant 0.000000e+00 : f32
      %52 = vector.broadcast %cst_28 : f32 to vector<16x32xf32>
      %53 = vector.extract_strided_slice %48 {offsets = [0, 0], sizes = [16, 128], strides = [1, 1]} : vector<16x1536xf32> to vector<16x128xf32>
      %cst_29 = arith.constant 0.353553385 : f32
      %54 = vector.broadcast %cst_29 : f32 to vector<16x128xf32>
      %55 = arith.mulf %53, %54 : vector<16x128xf32>
      %56 = vector.shape_cast %55 : vector<16x128xf32> to vector<2x8x128xf32>
      %57 = arith.truncf %56 : vector<2x8x128xf32> to vector<2x8x128xbf16>
      %58 = vector.extract_strided_slice %48 {offsets = [0, 512], sizes = [16, 128], strides = [1, 1]} : vector<16x1536xf32> to vector<16x128xf32>
      %59 = vector.shape_cast %58 : vector<16x128xf32> to vector<2x8x128xf32>
      %60 = arith.truncf %59 : vector<2x8x128xf32> to vector<2x8x128xbf16>
      %61 = vector.extract_strided_slice %48 {offsets = [0, 1024], sizes = [16, 128], strides = [1, 1]} : vector<16x1536xf32> to vector<16x128xf32>
      %62 = vector.shape_cast %61 : vector<16x128xf32> to vector<2x8x128xf32>
      %63 = arith.truncf %62 : vector<2x8x128xf32> to vector<2x8x128xbf16>
      "tpu.trace_start"() <{level = 10 : i32, message = "bqd,bkd->bqk"}> : () -> ()
      %cst_30 = arith.constant dense<0.000000e+00> : vector<2x8x8xf32>
      %64 = tpu.matmul %57, %60, %cst_30 {dimension_numbers = #tpu.dot_dimension_numbers<[2], [2], [1], [1], [0, 0, 0, 1, 1, 1], [0], [0]>} : vector<2x8x128xbf16>, vector<2x8x128xbf16>, vector<2x8x8xf32> -> vector<2x8x8xf32>
      "tpu.trace_stop"() : () -> ()
      %65 = arith.addf %64, %39 : vector<2x8x8xf32>
      %cst_31 = arith.constant dense<0xFF800000> : vector<2x8xf32>
      %66 = vector.multi_reduction <maximumf>, %65, %cst_31 [2] : vector<2x8x8xf32> to vector<2x8xf32>
      %67 = vector.shape_cast %66 : vector<2x8xf32> to vector<2x8x1xf32>
      %68 = vector.broadcast %67 : vector<2x8x1xf32> to vector<2x8x8xf32>
      %69 = arith.subf %65, %68 : vector<2x8x8xf32>
      %70 = math.exp %69 : vector<2x8x8xf32>
      %cst_32 = arith.constant dense<0.000000e+00> : vector<2x8xf32>
      %71 = vector.multi_reduction <add>, %70, %cst_32 [2] : vector<2x8x8xf32> to vector<2x8xf32>
      %72 = vector.shape_cast %71 : vector<2x8xf32> to vector<2x8x1xf32>
      %73 = tpu.reciprocal %72 {approx = true} : vector<2x8x1xf32> -> vector<2x8x1xf32>
      %74 = vector.broadcast %73 : vector<2x8x1xf32> to vector<2x8x8xf32>
      %75 = arith.mulf %70, %74 : vector<2x8x8xf32>
      %76 = arith.truncf %75 : vector<2x8x8xf32> to vector<2x8x8xbf16>
      "tpu.trace_start"() <{level = 10 : i32, message = "bqk,bkd->bqd"}> : () -> ()
      %cst_33 = arith.constant dense<0.000000e+00> : vector<2x8x128xf32>
      %77 = tpu.matmul %76, %63, %cst_33 {dimension_numbers = #tpu.dot_dimension_numbers<[2], [1], [1], [2], [0, 0, 0, 1, 1, 2], [0], [0]>} : vector<2x8x8xbf16>, vector<2x8x128xbf16>, vector<2x8x128xf32> -> vector<2x8x128xf32>
      "tpu.trace_stop"() : () -> ()
      %78 = vector.shape_cast %77 : vector<2x8x128xf32> to vector<16x128xf32>
      %79 = arith.truncf %78 : vector<16x128xf32> to vector<16x128xbf16>
      %80 = vector.extract_strided_slice %51 {offsets = [0, 0], sizes = [128, 32], strides = [1, 1]} : vector<512x32xbf16> to vector<128x32xbf16>
      %cst_34 = arith.constant dense<0.000000e+00> : vector<16x32xf32>
      %81 = tpu.matmul %79, %80, %cst_34 {dimension_numbers = #tpu.dot_dimension_numbers<[1], [0], [0], [1], [0, 0, 1, 1], [], []>} : vector<16x128xbf16>, vector<128x32xbf16>, vector<16x32xf32> -> vector<16x32xf32>
      %82 = arith.addf %52, %81 : vector<16x32xf32>
      %83 = vector.extract_strided_slice %48 {offsets = [0, 128], sizes = [16, 128], strides = [1, 1]} : vector<16x1536xf32> to vector<16x128xf32>
      %cst_35 = arith.constant 0.353553385 : f32
      %84 = vector.broadcast %cst_35 : f32 to vector<16x128xf32>
      %85 = arith.mulf %83, %84 : vector<16x128xf32>
      %86 = vector.shape_cast %85 : vector<16x128xf32> to vector<2x8x128xf32>
      %87 = arith.truncf %86 : vector<2x8x128xf32> to vector<2x8x128xbf16>
      %88 = vector.extract_strided_slice %48 {offsets = [0, 640], sizes = [16, 128], strides = [1, 1]} : vector<16x1536xf32> to vector<16x128xf32>
      %89 = vector.shape_cast %88 : vector<16x128xf32> to vector<2x8x128xf32>
      %90 = arith.truncf %89 : vector<2x8x128xf32> to vector<2x8x128xbf16>
      %91 = vector.extract_strided_slice %48 {offsets = [0, 1152], sizes = [16, 128], strides = [1, 1]} : vector<16x1536xf32> to vector<16x128xf32>
      %92 = vector.shape_cast %91 : vector<16x128xf32> to vector<2x8x128xf32>
      %93 = arith.truncf %92 : vector<2x8x128xf32> to vector<2x8x128xbf16>
      "tpu.trace_start"() <{level = 10 : i32, message = "bqd,bkd->bqk"}> : () -> ()
      %cst_36 = arith.constant dense<0.000000e+00> : vector<2x8x8xf32>
      %94 = tpu.matmul %87, %90, %cst_36 {dimension_numbers = #tpu.dot_dimension_numbers<[2], [2], [1], [1], [0, 0, 0, 1, 1, 1], [0], [0]>} : vector<2x8x128xbf16>, vector<2x8x128xbf16>, vector<2x8x8xf32> -> vector<2x8x8xf32>
      "tpu.trace_stop"() : () -> ()
      %95 = arith.addf %94, %39 : vector<2x8x8xf32>
      %cst_37 = arith.constant dense<0xFF800000> : vector<2x8xf32>
      %96 = vector.multi_reduction <maximumf>, %95, %cst_37 [2] : vector<2x8x8xf32> to vector<2x8xf32>
      %97 = vector.shape_cast %96 : vector<2x8xf32> to vector<2x8x1xf32>
      %98 = vector.broadcast %97 : vector<2x8x1xf32> to vector<2x8x8xf32>
      %99 = arith.subf %95, %98 : vector<2x8x8xf32>
      %100 = math.exp %99 : vector<2x8x8xf32>
      %cst_38 = arith.constant dense<0.000000e+00> : vector<2x8xf32>
      %101 = vector.multi_reduction <add>, %100, %cst_38 [2] : vector<2x8x8xf32> to vector<2x8xf32>
      %102 = vector.shape_cast %101 : vector<2x8xf32> to vector<2x8x1xf32>
      %103 = tpu.reciprocal %102 {approx = true} : vector<2x8x1xf32> -> vector<2x8x1xf32>
      %104 = vector.broadcast %103 : vector<2x8x1xf32> to vector<2x8x8xf32>
      %105 = arith.mulf %100, %104 : vector<2x8x8xf32>
      %106 = arith.truncf %105 : vector<2x8x8xf32> to vector<2x8x8xbf16>
      "tpu.trace_start"() <{level = 10 : i32, message = "bqk,bkd->bqd"}> : () -> ()
      %cst_39 = arith.constant dense<0.000000e+00> : vector<2x8x128xf32>
      %107 = tpu.matmul %106, %93, %cst_39 {dimension_numbers = #tpu.dot_dimension_numbers<[2], [1], [1], [2], [0, 0, 0, 1, 1, 2], [0], [0]>} : vector<2x8x8xbf16>, vector<2x8x128xbf16>, vector<2x8x128xf32> -> vector<2x8x128xf32>
      "tpu.trace_stop"() : () -> ()
      %108 = vector.shape_cast %107 : vector<2x8x128xf32> to vector<16x128xf32>
      %109 = arith.truncf %108 : vector<16x128xf32> to vector<16x128xbf16>
      %110 = vector.extract_strided_slice %51 {offsets = [128, 0], sizes = [128, 32], strides = [1, 1]} : vector<512x32xbf16> to vector<128x32xbf16>
      %cst_40 = arith.constant dense<0.000000e+00> : vector<16x32xf32>
      %111 = tpu.matmul %109, %110, %cst_40 {dimension_numbers = #tpu.dot_dimension_numbers<[1], [0], [0], [1], [0, 0, 1, 1], [], []>} : vector<16x128xbf16>, vector<128x32xbf16>, vector<16x32xf32> -> vector<16x32xf32>
      %112 = arith.addf %82, %111 : vector<16x32xf32>
      %113 = vector.extract_strided_slice %48 {offsets = [0, 256], sizes = [16, 128], strides = [1, 1]} : vector<16x1536xf32> to vector<16x128xf32>
      %cst_41 = arith.constant 0.353553385 : f32
      %114 = vector.broadcast %cst_41 : f32 to vector<16x128xf32>
      %115 = arith.mulf %113, %114 : vector<16x128xf32>
      %116 = vector.shape_cast %115 : vector<16x128xf32> to vector<2x8x128xf32>
      %117 = arith.truncf %116 : vector<2x8x128xf32> to vector<2x8x128xbf16>
      %118 = vector.extract_strided_slice %48 {offsets = [0, 768], sizes = [16, 128], strides = [1, 1]} : vector<16x1536xf32> to vector<16x128xf32>
      %119 = vector.shape_cast %118 : vector<16x128xf32> to vector<2x8x128xf32>
      %120 = arith.truncf %119 : vector<2x8x128xf32> to vector<2x8x128xbf16>
      %121 = vector.extract_strided_slice %48 {offsets = [0, 1280], sizes = [16, 128], strides = [1, 1]} : vector<16x1536xf32> to vector<16x128xf32>
      %122 = vector.shape_cast %121 : vector<16x128xf32> to vector<2x8x128xf32>
      %123 = arith.truncf %122 : vector<2x8x128xf32> to vector<2x8x128xbf16>
      "tpu.trace_start"() <{level = 10 : i32, message = "bqd,bkd->bqk"}> : () -> ()
      %cst_42 = arith.constant dense<0.000000e+00> : vector<2x8x8xf32>
      %124 = tpu.matmul %117, %120, %cst_42 {dimension_numbers = #tpu.dot_dimension_numbers<[2], [2], [1], [1], [0, 0, 0, 1, 1, 1], [0], [0]>} : vector<2x8x128xbf16>, vector<2x8x128xbf16>, vector<2x8x8xf32> -> vector<2x8x8xf32>
      "tpu.trace_stop"() : () -> ()
      %125 = arith.addf %124, %39 : vector<2x8x8xf32>
      %cst_43 = arith.constant dense<0xFF800000> : vector<2x8xf32>
      %126 = vector.multi_reduction <maximumf>, %125, %cst_43 [2] : vector<2x8x8xf32> to vector<2x8xf32>
      %127 = vector.shape_cast %126 : vector<2x8xf32> to vector<2x8x1xf32>
      %128 = vector.broadcast %127 : vector<2x8x1xf32> to vector<2x8x8xf32>
      %129 = arith.subf %125, %128 : vector<2x8x8xf32>
      %130 = math.exp %129 : vector<2x8x8xf32>
      %cst_44 = arith.constant dense<0.000000e+00> : vector<2x8xf32>
      %131 = vector.multi_reduction <add>, %130, %cst_44 [2] : vector<2x8x8xf32> to vector<2x8xf32>
      %132 = vector.shape_cast %131 : vector<2x8xf32> to vector<2x8x1xf32>
      %133 = tpu.reciprocal %132 {approx = true} : vector<2x8x1xf32> -> vector<2x8x1xf32>
      %134 = vector.broadcast %133 : vector<2x8x1xf32> to vector<2x8x8xf32>
      %135 = arith.mulf %130, %134 : vector<2x8x8xf32>
      %136 = arith.truncf %135 : vector<2x8x8xf32> to vector<2x8x8xbf16>
      "tpu.trace_start"() <{level = 10 : i32, message = "bqk,bkd->bqd"}> : () -> ()
      %cst_45 = arith.constant dense<0.000000e+00> : vector<2x8x128xf32>
      %137 = tpu.matmul %136, %123, %cst_45 {dimension_numbers = #tpu.dot_dimension_numbers<[2], [1], [1], [2], [0, 0, 0, 1, 1, 2], [0], [0]>} : vector<2x8x8xbf16>, vector<2x8x128xbf16>, vector<2x8x128xf32> -> vector<2x8x128xf32>
      "tpu.trace_stop"() : () -> ()
      %138 = vector.shape_cast %137 : vector<2x8x128xf32> to vector<16x128xf32>
      %139 = arith.truncf %138 : vector<16x128xf32> to vector<16x128xbf16>
      %140 = vector.extract_strided_slice %51 {offsets = [256, 0], sizes = [128, 32], strides = [1, 1]} : vector<512x32xbf16> to vector<128x32xbf16>
      %cst_46 = arith.constant dense<0.000000e+00> : vector<16x32xf32>
      %141 = tpu.matmul %139, %140, %cst_46 {dimension_numbers = #tpu.dot_dimension_numbers<[1], [0], [0], [1], [0, 0, 1, 1], [], []>} : vector<16x128xbf16>, vector<128x32xbf16>, vector<16x32xf32> -> vector<16x32xf32>
      %142 = arith.addf %112, %141 : vector<16x32xf32>
      %143 = vector.extract_strided_slice %48 {offsets = [0, 384], sizes = [16, 128], strides = [1, 1]} : vector<16x1536xf32> to vector<16x128xf32>
      %cst_47 = arith.constant 0.353553385 : f32
      %144 = vector.broadcast %cst_47 : f32 to vector<16x128xf32>
      %145 = arith.mulf %143, %144 : vector<16x128xf32>
      %146 = vector.shape_cast %145 : vector<16x128xf32> to vector<2x8x128xf32>
      %147 = arith.truncf %146 : vector<2x8x128xf32> to vector<2x8x128xbf16>
      %148 = vector.extract_strided_slice %48 {offsets = [0, 896], sizes = [16, 128], strides = [1, 1]} : vector<16x1536xf32> to vector<16x128xf32>
      %149 = vector.shape_cast %148 : vector<16x128xf32> to vector<2x8x128xf32>
      %150 = arith.truncf %149 : vector<2x8x128xf32> to vector<2x8x128xbf16>
      %151 = vector.extract_strided_slice %48 {offsets = [0, 1408], sizes = [16, 128], strides = [1, 1]} : vector<16x1536xf32> to vector<16x128xf32>
      %152 = vector.shape_cast %151 : vector<16x128xf32> to vector<2x8x128xf32>
      %153 = arith.truncf %152 : vector<2x8x128xf32> to vector<2x8x128xbf16>
      "tpu.trace_start"() <{level = 10 : i32, message = "bqd,bkd->bqk"}> : () -> ()
      %cst_48 = arith.constant dense<0.000000e+00> : vector<2x8x8xf32>
      %154 = tpu.matmul %147, %150, %cst_48 {dimension_numbers = #tpu.dot_dimension_numbers<[2], [2], [1], [1], [0, 0, 0, 1, 1, 1], [0], [0]>} : vector<2x8x128xbf16>, vector<2x8x128xbf16>, vector<2x8x8xf32> -> vector<2x8x8xf32>
      "tpu.trace_stop"() : () -> ()
      %155 = arith.addf %154, %39 : vector<2x8x8xf32>
      %cst_49 = arith.constant dense<0xFF800000> : vector<2x8xf32>
      %156 = vector.multi_reduction <maximumf>, %155, %cst_49 [2] : vector<2x8x8xf32> to vector<2x8xf32>
      %157 = vector.shape_cast %156 : vector<2x8xf32> to vector<2x8x1xf32>
      %158 = vector.broadcast %157 : vector<2x8x1xf32> to vector<2x8x8xf32>
      %159 = arith.subf %155, %158 : vector<2x8x8xf32>
      %160 = math.exp %159 : vector<2x8x8xf32>
      %cst_50 = arith.constant dense<0.000000e+00> : vector<2x8xf32>
      %161 = vector.multi_reduction <add>, %160, %cst_50 [2] : vector<2x8x8xf32> to vector<2x8xf32>
      %162 = vector.shape_cast %161 : vector<2x8xf32> to vector<2x8x1xf32>
      %163 = tpu.reciprocal %162 {approx = true} : vector<2x8x1xf32> -> vector<2x8x1xf32>
      %164 = vector.broadcast %163 : vector<2x8x1xf32> to vector<2x8x8xf32>
      %165 = arith.mulf %160, %164 : vector<2x8x8xf32>
      %166 = arith.truncf %165 : vector<2x8x8xf32> to vector<2x8x8xbf16>
      "tpu.trace_start"() <{level = 10 : i32, message = "bqk,bkd->bqd"}> : () -> ()
      %cst_51 = arith.constant dense<0.000000e+00> : vector<2x8x128xf32>
      %167 = tpu.matmul %166, %153, %cst_51 {dimension_numbers = #tpu.dot_dimension_numbers<[2], [1], [1], [2], [0, 0, 0, 1, 1, 2], [0], [0]>} : vector<2x8x8xbf16>, vector<2x8x128xbf16>, vector<2x8x128xf32> -> vector<2x8x128xf32>
      "tpu.trace_stop"() : () -> ()
      %168 = vector.shape_cast %167 : vector<2x8x128xf32> to vector<16x128xf32>
      %169 = arith.truncf %168 : vector<16x128xf32> to vector<16x128xbf16>
      %170 = vector.extract_strided_slice %51 {offsets = [384, 0], sizes = [128, 32], strides = [1, 1]} : vector<512x32xbf16> to vector<128x32xbf16>
      %cst_52 = arith.constant dense<0.000000e+00> : vector<16x32xf32>
      %171 = tpu.matmul %169, %170, %cst_52 {dimension_numbers = #tpu.dot_dimension_numbers<[1], [0], [0], [1], [0, 0, 1, 1], [], []>} : vector<16x128xbf16>, vector<128x32xbf16>, vector<16x32xf32> -> vector<16x32xf32>
      %172 = arith.addf %142, %171 : vector<16x32xf32>
      %173 = arith.addf %172, %arg18 : vector<16x32xf32>
      %174 = arith.index_cast %arg17 : i32 to index
      %c0_53 = arith.constant 0 : index
      %c0_54 = arith.constant 0 : index
      %175 = vector.load %arg8[%174, %c0_53, %c0_54] : memref<2x1x32xf32, #tpu.memory_space<vmem>>, vector<1x1x32xf32>
      %176 = vector.shape_cast %175 : vector<1x1x32xf32> to vector<1x32xf32>
      %177 = arith.index_cast %arg17 : i32 to index
      %c0_55 = arith.constant 0 : index
      %c0_56 = arith.constant 0 : index
      %178 = vector.load %arg9[%177, %c0_55, %c0_56] : memref<2x1x32xf32, #tpu.memory_space<vmem>>, vector<1x1x32xf32>
      %179 = vector.shape_cast %178 : vector<1x1x32xf32> to vector<1x32xf32>
      %cst_57 = arith.constant dense<0.000000e+00> : vector<16xf32>
      %180 = vector.multi_reduction <add>, %173, %cst_57 [1] : vector<16x32xf32> to vector<16xf32>
      %181 = vector.shape_cast %180 : vector<16xf32> to vector<16x1xf32>
      %cst_58 = arith.constant 3.200000e+01 : f32
      %182 = vector.broadcast %cst_58 : f32 to vector<16x1xf32>
      %183 = arith.divf %181, %182 : vector<16x1xf32>
      %184 = vector.broadcast %183 : vector<16x1xf32> to vector<16x32xf32>
      %185 = arith.subf %173, %184 : vector<16x32xf32>
      %186 = arith.mulf %185, %185 : vector<16x32xf32>
      %cst_59 = arith.constant dense<0.000000e+00> : vector<16xf32>
      %187 = vector.multi_reduction <add>, %186, %cst_59 [1] : vector<16x32xf32> to vector<16xf32>
      %188 = vector.shape_cast %187 : vector<16xf32> to vector<16x1xf32>
      %cst_60 = arith.constant 3.200000e+01 : f32
      %189 = vector.broadcast %cst_60 : f32 to vector<16x1xf32>
      %190 = arith.divf %188, %189 : vector<16x1xf32>
      %191 = vector.broadcast %183 : vector<16x1xf32> to vector<16x32xf32>
      %192 = arith.subf %173, %191 : vector<16x32xf32>
      %cst_61 = arith.constant 9.99999997E-7 : f32
      %193 = vector.broadcast %cst_61 : f32 to vector<16x1xf32>
      %194 = arith.addf %190, %193 : vector<16x1xf32>
      %195 = math.rsqrt %194 : vector<16x1xf32>
      %196 = vector.broadcast %195 : vector<16x1xf32> to vector<16x32xf32>
      %197 = arith.mulf %192, %196 : vector<16x32xf32>
      %198 = vector.broadcast %176 : vector<1x32xf32> to vector<16x32xf32>
      %199 = arith.mulf %197, %198 : vector<16x32xf32>
      %200 = vector.broadcast %179 : vector<1x32xf32> to vector<16x32xf32>
      %201 = arith.addf %199, %200 : vector<16x32xf32>
      %202 = arith.truncf %201 : vector<16x32xf32> to vector<16x32xbf16>
      %203 = arith.index_cast %arg17 : i32 to index
      %c0_62 = arith.constant 0 : index
      %c0_63 = arith.constant 0 : index
      %204 = vector.load %arg10[%203, %c0_62, %c0_63] : memref<2x32x64xbf16, #tpu.memory_space<vmem>>, vector<1x32x64xbf16>
      %205 = vector.shape_cast %204 : vector<1x32x64xbf16> to vector<32x64xbf16>
      %cst_64 = arith.constant dense<0.000000e+00> : vector<16x64xf32>
      %206 = tpu.matmul %202, %205, %cst_64 {dimension_numbers = #tpu.dot_dimension_numbers<[1], [0], [0], [1], [0, 0, 1, 1], [], []>} : vector<16x32xbf16>, vector<32x64xbf16>, vector<16x64xf32> -> vector<16x64xf32>
      %207 = arith.index_cast %arg17 : i32 to index
      %c0_65 = arith.constant 0 : index
      %c0_66 = arith.constant 0 : index
      %208 = vector.load %arg11[%207, %c0_65, %c0_66] : memref<2x1x64xf32, #tpu.memory_space<vmem>>, vector<1x1x64xf32>
      %209 = vector.shape_cast %208 : vector<1x1x64xf32> to vector<1x64xf32>
      %210 = vector.broadcast %209 : vector<1x64xf32> to vector<16x64xf32>
      %211 = arith.addf %206, %210 : vector<16x64xf32>
      %cst_67 = arith.constant 0.000000e+00 : f32
      %212 = vector.broadcast %cst_67 : f32 to vector<16x64xf32>
      %213 = arith.maximumf %211, %212 : vector<16x64xf32>
      %214 = arith.truncf %213 : vector<16x64xf32> to vector<16x64xbf16>
      %215 = arith.index_cast %arg17 : i32 to index
      %c0_68 = arith.constant 0 : index
      %c0_69 = arith.constant 0 : index
      %216 = vector.load %arg12[%215, %c0_68, %c0_69] : memref<2x64x32xbf16, #tpu.memory_space<vmem>>, vector<1x64x32xbf16>
      %217 = vector.shape_cast %216 : vector<1x64x32xbf16> to vector<64x32xbf16>
      %cst_70 = arith.constant dense<0.000000e+00> : vector<16x32xf32>
      %218 = tpu.matmul %214, %217, %cst_70 {dimension_numbers = #tpu.dot_dimension_numbers<[1], [0], [0], [1], [0, 0, 1, 1], [], []>} : vector<16x64xbf16>, vector<64x32xbf16>, vector<16x32xf32> -> vector<16x32xf32>
      %219 = arith.index_cast %arg17 : i32 to index
      %c0_71 = arith.constant 0 : index
      %c0_72 = arith.constant 0 : index
      %220 = vector.load %arg13[%219, %c0_71, %c0_72] : memref<2x1x32xf32, #tpu.memory_space<vmem>>, vector<1x1x32xf32>
      %221 = vector.shape_cast %220 : vector<1x1x32xf32> to vector<1x32xf32>
      %222 = vector.broadcast %221 : vector<1x32xf32> to vector<16x32xf32>
      %223 = arith.addf %218, %222 : vector<16x32xf32>
      %224 = arith.addf %223, %201 : vector<16x32xf32>
      %225 = arith.index_cast %arg17 : i32 to index
      %c0_73 = arith.constant 0 : index
      %c0_74 = arith.constant 0 : index
      %226 = vector.load %arg14[%225, %c0_73, %c0_74] : memref<2x1x32xf32, #tpu.memory_space<vmem>>, vector<1x1x32xf32>
      %227 = vector.shape_cast %226 : vector<1x1x32xf32> to vector<1x32xf32>
      %228 = arith.index_cast %arg17 : i32 to index
      %c0_75 = arith.constant 0 : index
      %c0_76 = arith.constant 0 : index
      %229 = vector.load %arg15[%228, %c0_75, %c0_76] : memref<2x1x32xf32, #tpu.memory_space<vmem>>, vector<1x1x32xf32>
      %230 = vector.shape_cast %229 : vector<1x1x32xf32> to vector<1x32xf32>
      %cst_77 = arith.constant dense<0.000000e+00> : vector<16xf32>
      %231 = vector.multi_reduction <add>, %224, %cst_77 [1] : vector<16x32xf32> to vector<16xf32>
      %232 = vector.shape_cast %231 : vector<16xf32> to vector<16x1xf32>
      %cst_78 = arith.constant 3.200000e+01 : f32
      %233 = vector.broadcast %cst_78 : f32 to vector<16x1xf32>
      %234 = arith.divf %232, %233 : vector<16x1xf32>
      %235 = vector.broadcast %234 : vector<16x1xf32> to vector<16x32xf32>
      %236 = arith.subf %224, %235 : vector<16x32xf32>
      %237 = arith.mulf %236, %236 : vector<16x32xf32>
      %cst_79 = arith.constant dense<0.000000e+00> : vector<16xf32>
      %238 = vector.multi_reduction <add>, %237, %cst_79 [1] : vector<16x32xf32> to vector<16xf32>
      %239 = vector.shape_cast %238 : vector<16xf32> to vector<16x1xf32>
      %cst_80 = arith.constant 3.200000e+01 : f32
      %240 = vector.broadcast %cst_80 : f32 to vector<16x1xf32>
      %241 = arith.divf %239, %240 : vector<16x1xf32>
      %242 = vector.broadcast %234 : vector<16x1xf32> to vector<16x32xf32>
      %243 = arith.subf %224, %242 : vector<16x32xf32>
      %cst_81 = arith.constant 9.99999997E-7 : f32
      %244 = vector.broadcast %cst_81 : f32 to vector<16x1xf32>
      %245 = arith.addf %241, %244 : vector<16x1xf32>
      %246 = math.rsqrt %245 : vector<16x1xf32>
      %247 = vector.broadcast %246 : vector<16x1xf32> to vector<16x32xf32>
      %248 = arith.mulf %243, %247 : vector<16x32xf32>
      %249 = vector.broadcast %227 : vector<1x32xf32> to vector<16x32xf32>
      %250 = arith.mulf %248, %249 : vector<16x32xf32>
      %251 = vector.broadcast %230 : vector<1x32xf32> to vector<16x32xf32>
      %252 = arith.addf %250, %251 : vector<16x32xf32>
      scf.yield %252 : vector<16x32xf32>
    }
    %c2_i32_19 = arith.constant 2 : i32
    %42 = vector.shape_cast %41 : vector<16x32xf32> to vector<2x8x32xf32>
    %c0_20 = arith.constant 0 : index
    %c0_21 = arith.constant 0 : index
    %c0_22 = arith.constant 0 : index
    %43 = vector.load %arg16[%c0_20, %c0_21, %c0_22] : memref<2x8x32xf32, #tpu.memory_space<vmem>>, vector<2x8x32xf32>
    tpu.vector_store %arg16[%c0_20, %c0_21, %c0_22], %42 {strides = array<i32>} : memref<2x8x32xf32, #tpu.memory_space<vmem>>, vector<2x8x32xf32>,
    return
  }
  func.func @transform_0(%arg0: i32) -> (i32, i32, i32) {
    %c0_i32 = arith.constant 0 : i32
    %c0_i32_0 = arith.constant 0 : i32
    %c0_i32_1 = arith.constant 0 : i32
    return %arg0, %c0_i32, %c0_i32_0 : i32, i32, i32
  }
  func.func @transform_1(%arg0: i32) -> (i32, i32) {
    %c0_i32 = arith.constant 0 : i32
    %c0_i32_0 = arith.constant 0 : i32
    %c0_i32_1 = arith.constant 0 : i32
    return %c0_i32, %c0_i32_0 : i32, i32
  }
  func.func @transform_2(%arg0: i32) -> (i32, i32, i32) {
    %c0_i32 = arith.constant 0 : i32
    %c0_i32_0 = arith.constant 0 : i32
    %c0_i32_1 = arith.constant 0 : i32
    return %arg0, %c0_i32, %c0_i32_0 : i32, i32, i32
  }
  func.func @transform_3(%arg0: i32) -> (i32, i32) {
    %c0_i32 = arith.constant 0 : i32
    %c0_i32_0 = arith.constant 0 : i32
    %c0_i32_1 = arith.constant 0 : i32
    return %c0_i32, %c0_i32_0 : i32, i32
  }
  func.func @transform_4(%arg0: i32) -> (i32, i32) {
    %c0_i32 = arith.constant 0 : i32
    %c0_i32_0 = arith.constant 0 : i32
    %c0_i32_1 = arith.constant 0 : i32
    return %c0_i32, %c0_i32_0 : i32, i32
  }
  func.func @transform_5(%arg0: i32) -> (i32, i32, i32) {
    %c0_i32 = arith.constant 0 : i32
    %c0_i32_0 = arith.constant 0 : i32
    %c0_i32_1 = arith.constant 0 : i32
    %c0_i32_2 = arith.constant 0 : i32
    return %c0_i32, %c0_i32_0, %c0_i32_1 : i32, i32, i32
  }
  func.func @transform_6(%arg0: i32) -> (i32, i32, i32) {
    %c0_i32 = arith.constant 0 : i32
    %c0_i32_0 = arith.constant 0 : i32
    %c0_i32_1 = arith.constant 0 : i32
    %c0_i32_2 = arith.constant 0 : i32
    return %c0_i32, %c0_i32_0, %c0_i32_1 : i32, i32, i32
  }
  func.func @transform_7(%arg0: i32) -> (i32, i32, i32) {
    %c0_i32 = arith.constant 0 : i32
    %c0_i32_0 = arith.constant 0 : i32
    %c0_i32_1 = arith.constant 0 : i32
    %c0_i32_2 = arith.constant 0 : i32
    return %c0_i32, %c0_i32_0, %c0_i32_1 : i32, i32, i32
  }
  func.func @transform_8(%arg0: i32) -> (i32, i32, i32) {
    %c0_i32 = arith.constant 0 : i32
    %c0_i32_0 = arith.constant 0 : i32
    %c0_i32_1 = arith.constant 0 : i32
    %c0_i32_2 = arith.constant 0 : i32
    return %c0_i32, %c0_i32_0, %c0_i32_1 : i32, i32, i32
  }
  func.func @transform_9(%arg0: i32) -> (i32, i32, i32) {
    %c0_i32 = arith.constant 0 : i32
    %c0_i32_0 = arith.constant 0 : i32
    %c0_i32_1 = arith.constant 0 : i32
    %c0_i32_2 = arith.constant 0 : i32
    return %c0_i32, %c0_i32_0, %c0_i32_1 : i32, i32, i32
  }
  func.func @transform_10(%arg0: i32) -> (i32, i32, i32) {
    %c0_i32 = arith.constant 0 : i32
    %c0_i32_0 = arith.constant 0 : i32
    %c0_i32_1 = arith.constant 0 : i32
    %c0_i32_2 = arith.constant 0 : i32
    return %c0_i32, %c0_i32_0, %c0_i32_1 : i32, i32, i32
  }
  func.func @transform_11(%arg0: i32) -> (i32, i32, i32) {
    %c0_i32 = arith.constant 0 : i32
    %c0_i32_0 = arith.constant 0 : i32
    %c0_i32_1 = arith.constant 0 : i32
    %c0_i32_2 = arith.constant 0 : i32
    return %c0_i32, %c0_i32_0, %c0_i32_1 : i32, i32, i32
  }
  func.func @transform_12(%arg0: i32) -> (i32, i32, i32) {
    %c0_i32 = arith.constant 0 : i32
    %c0_i32_0 = arith.constant 0 : i32
    %c0_i32_1 = arith.constant 0 : i32
    %c0_i32_2 = arith.constant 0 : i32
    return %c0_i32, %c0_i32_0, %c0_i32_1 : i32, i32, i32
  }
  func.func @transform_13(%arg0: i32) -> (i32, i32, i32) {
    %c0_i32 = arith.constant 0 : i32
    %c0_i32_0 = arith.constant 0 : i32
    %c0_i32_1 = arith.constant 0 : i32
    %c0_i32_2 = arith.constant 0 : i32
    return %c0_i32, %c0_i32_0, %c0_i32_1 : i32, i32, i32
  }
  func.func @transform_14(%arg0: i32) -> (i32, i32, i32) {
    %c0_i32 = arith.constant 0 : i32
    %c0_i32_0 = arith.constant 0 : i32
    %c0_i32_1 = arith.constant 0 : i32
    %c0_i32_2 = arith.constant 0 : i32
    return %c0_i32, %c0_i32_0, %c0_i32_1 : i32, i32, i32
  }
  func.func @transform_15(%arg0: i32) -> (i32, i32, i32) {
    %c0_i32 = arith.constant 0 : i32
    %c0_i32_0 = arith.constant 0 : i32
    %c0_i32_1 = arith.constant 0 : i32
    return %arg0, %c0_i32, %c0_i32_0 : i32, i32, i32
  }
}

</mosaic_0001>

<bundles_post_ra>
// kernel: encoder_forward.1
= control target key start
LH: loop header
LB: loop body
LE: loop exit
PB: predicated region body
PF: predicated region fallthrough
CT: control target
= control target key end

     0   :  { %20 = vsyncpa [#allocation3], 0  ;;  %s3200_s0 = inlined_call_operand.hbm [shape: f32[2,8,32], index: 0, kind: input, shape index: {}, may-alias: {0,15}]   ;;  %s3201_s1 = inlined_call_operand.vmem [shape: f32[8,32], index: 1, kind: input, shape index: {}]   ;;  %s3202_s2 = inlined_call_operand.vmem [shape: s32[2,1,8], index: 2, kind: input, shape index: {}]   ;;  %s3203_s3 = inlined_call_operand.vmem [shape: f32[1,32], index: 3, kind: input, shape index: {}]   ;;  %s3204_s4 = inlined_call_operand.vmem [shape: f32[1,32], index: 4, kind: input, shape index: {}]   ;;  %s3205_s5 = inlined_call_operand.vmem [shape: bf16[2,32,1536], index: 5, kind: input, shape index: {}]   ;;  %s3206_s6 = inlined_call_operand.vmem [shape: bf16[2,512,32], index: 6, kind: input, shape index: {}]   ;;  %s3207_s7 = inlined_call_operand.vmem [shape: f32[2,1,32], index: 7, kind: input, shape index: {}]   ;;  %s3208_s8 = inlined_call_operand.vmem [shape: f32[2,1,32], index: 8, kind: input, shape index: {}]   ;;  %s3209_s9 = inlined_call_operand.vmem [shape: bf16[2,32,64], index: 9, kind: input, shape index: {}]   ;;  %s3210_s10 = inlined_call_operand.vmem [shape: f32[2,1,64], index: 10, kind: input, shape index: {}]   ;;  %s3211_s11 = inlined_call_operand.vmem [shape: bf16[2,64,32], index: 11, kind: input, shape index: {}]   ;;  %s3212_s12 = inlined_call_operand.vmem [shape: f32[2,1,32], index: 12, kind: input, shape index: {}]   ;;  %s3213_s13 = inlined_call_operand.vmem [shape: f32[2,1,32], index: 13, kind: input, shape index: {}]   ;;  %s3214_s14 = inlined_call_operand.vmem [shape: f32[2,1,32], index: 14, kind: input, shape index: {}]   ;;  %s3215_s15 = inlined_call_operand.hbm [shape: f32[2,8,32], index: 15, kind: output, shape index: {}, may-alias: {0,15}]  }
   0x1   :  { %21 = vsyncpa [#allocation4], 0  ;;  %s2697_s18 = smov [#allocation2]   ;;  %s2625_s22 = scalar_lea.hbm %s3200_s0, 256 }
   0x2   :  { %s27_s19 = sshll.u32 %s2697_s18, 4  ;;  %p2626_p0 = scmp.ne.s32.totalorder %s3200_s0, %s2625_s22  ;;  %s28_s19 = int_to_ptr.vmem [resolvable:$true] %s27_s19 }
   0x3   :  { %p2629_p1 = scmp.lt.u32.totalorder %s2625_s22, %s3200_s0 }
   0x5   :  { %p2631_p2 = pnand %p2629_p1, %p2626_p0 }
   0x7   :  { %2634 = shalt.err (!%p2631_p2)
}
   0x8   :  { %s2635_s27 = scalar_lea.vmem %s28_s19, 256  ;;  %p2640_p4 = scmp.lt.s32.totalorder %s28_s19, %s28_s19 }
   0x9   :  { %p2636_p3 = scmp.ne.s32.totalorder %s28_s19, %s2635_s27  ;;  %p2641_p5 = scmp.lt.s32.totalorder %s2635_s27, %s2635_s27 }
   0xb   :  { %p2642_p6 = por %p2641_p5, %p2640_p4 }
   0xd   :  { %p2643_p7 = pnand %p2642_p6, %p2636_p3 }
   0xf   :  { %2646 = shalt.err (!%p2643_p7)
}
  0x10   :  { %s2698_s28 = smov 128   ;;  %s2699_s29 = smov 8  }
  0x11   :  { %33 = dma.hbm_to_vmem [thread:$0]  %s3200_s0, 256, %s28_s19, [#allocation3], %s2698_s28, %s2698_s28, %s2699_s29  }
  0x12   :  { %2681 = dma.done.wait [#allocation3], 256  }
  0x13   :  { %2682 = vsyncadd [#allocation3], 4294967040  ;;  %v127_v0 = vlaneseq  ;;  %v119_v3 = vld [vmem:[%s3202_s2] sm:$0x1]  ;;  %v120_v4 = vld [vmem:[%s3202_s2 + $0x1] sm:$0x1] }
  0x14   :  { %v66_v5 = vld [vmem:[#allocation2] sm:$0xff]  ;;  %vm75_vm0 = vcmask 261120   ;;  %vm121_vm1 = vcmp.eq.s32.totalorder %v119_v3, 0  ;;  %vm122_vm2 = vcmp.eq.s32.totalorder %v120_v4, 0  ;;  %v67_v8 = vld [vmem:[#allocation2 + $0x8] sm:$0xff]  ;;  %v2700_v9 = vmov 0.0  }
  0x15   :  { %v128_v1 = vshrl.u32 %v127_v0, 7  ;;  %v68_v6 = vmul.f32 5.656854, %v66_v5  ;;  %v70_v7 = vld [vmem:[%s3201_s1] sm:$0xff]  ;;  %v123_v10 = vsel %vm121_vm1, -1e+09, %v2700_v9 }
  0x16   :  { %v124_v11 = vsel %vm122_vm2, -1e+09, %v2700_v9  ;;  %v69_v12 = vmul.f32 5.656854, %v67_v8  ;;  %v2106_v36 = vld [vmem:[%s3203_s3] ss:$0 sm:$0xff] }
  0x17   :  { %v129_v2 = vsub.s32 0, %v128_v1  ;;  %v71_v15 = vadd.f32 %v70_v7, %v68_v6  ;;  %v2107_v38 = vld [vmem:[%s3204_s4] ss:$0 sm:$0xff]  ;;  %s2827_s24 = smov 0  }
  0x18   :  { %v72_v16 = vadd.f32 %v70_v7, %v69_v12 }
  0x19   :  { %v2809_v13 = vrot.slane %v123_v10, %v129_v2  ;;  %v2811_v14 = vrot.slane %v124_v11, %v129_v2  ;;  %v76_v17 = vsel %vm75_vm0, %v71_v15, 0.0 }
  0x1a   :  { %77 = vadd.xlane.f32.xlu0 %v76_v17  ;;  %v79_v18 = vsel %vm75_vm0, %v72_v16, 0.0 }
  0x1e   :  { %80 = vadd.xlane.f32.xlu0 %v79_v18 }
  0xa7   :  { %v78_v19 = vpop.xlane.xlu0 %77 }
  0xa8   :  { %v83_v20 = vmul.f32 0.03125, %v78_v19 }
  0xaa   :  { %v85_v21 = vsub.f32 %v71_v15, %v83_v20 }
  0xab   :  { %v81_v22 = vpop.xlane.xlu0 %80 }
  0xac   :  { %v84_v23 = vmul.f32 0.03125, %v81_v22  ;;  %v87_v24 = vmul.f32 %v85_v21, %v85_v21 }
  0xae   :  { %v86_v25 = vsub.f32 %v72_v16, %v84_v23  ;;  %v89_v26 = vsel %vm75_vm0, %v87_v24, 0.0 }
  0xaf   :  { %90 = vadd.xlane.f32.xlu1 %v89_v26 }
  0xb0   :  { %v88_v27 = vmul.f32 %v86_v25, %v86_v25 }
  0xb2   :  { %v92_v28 = vsel %vm75_vm0, %v88_v27, 0.0 }
  0xb3   :  { %93 = vadd.xlane.f32.xlu1 %v92_v28 }
 0x13c   :  { %v91_v29 = vpop.xlane.xlu1 %90 }
 0x13d   :  { %v95_v30 = vmul.f32 0.03125, %v91_v29 }
 0x13f   :  { %v97_v31 = vadd.f32 1e-06, %v95_v30 }
 0x140   :  { %v94_v32 = vpop.xlane.xlu1 %93 }
 0x141   :  { %2507 = vrsqrt.f32 %v97_v31  ;;  %v96_v33 = vmul.f32 0.03125, %v94_v32 }
 0x143   :  { %v98_v34 = vadd.f32 1e-06, %v96_v33 }
 0x145   :  { %2509 = vrsqrt.f32 %v98_v34 }
 0x14b   :  { %v2508_v35 = vpop.eup %2507 }
 0x14c   :  { %v101_v37 = vmul.f32 %v2508_v35, %v85_v21 }
 0x14e   :  { %v109_v39 = vmul.f32 %v2106_v36, %v101_v37 }
 0x14f   :  { %v2510_v40 = vpop.eup %2509 }
 0x150   :  { %v117_v41 = vadd.f32 %v2107_v38, %v109_v39   ;;  %v102_v42 = vmul.f32 %v2510_v40, %v86_v25 }
 0x152   :  { %v110_v43 = vmul.f32 %v2106_v36, %v102_v42 }
 0x154   :  { %v118_v44 = vadd.f32 %v2107_v38, %v110_v43  }
 0x155 LB: > { %v2701_v45 = vmov 0   ;;  %s2199_s3 = smul.u32 192, %s2695_s24  ;;  %s2200_s4 = sshll.u32 %s2695_s24, 8  ;;  %v145_v51 = vpack.c.bf16 %v2687_v44, %v2691_v41  ;;  %v2702_v7 = vmov 0.0   ;;  %vm2703_vm3 = vmmov 0   ;;  %s2695_s24 = sphi %s2827_s24, %s142_s24   ;;  %v2691_v41 = vphi %v117_v41, %v3217_v41   ;;  %v2687_v44 = vphi %v118_v44, %v3216_v44  }
 0x156   : > { %328 = vmatprep.mubr.bf16.mxu0 %v2701_v45  ;;  %371 = vmatprep.mubr.bf16.mxu1 %v2701_v45  ;;  %s2843_s27 = scalar_lea.vmem %s3206_s6, %s2200_s4  ;;  %vm737_vm4 = vcmask 1043456   ;;  %vm709_vm5 = vcmask 64512   ;;  %s2201_s18 = sshll.u32 %s2695_s24, 4  ;;  %vm1969_vm6 = vcmask 523264  }
 0x157   : > { %s2848_s17 = scalar_lea.vmem %s3205_s5, %s2199_s3  ;;  %s1854_s22 = scalar_lea.vmem %s3209_s9, %s2201_s18 }
 0x158   : > { %v2511_v46 = vld [vmem:[%s2848_s17 + $0x4] ss:$48 sps:$4 sm:$0xff]   ;;  %v2513_v47 = vld [vmem:[%s2848_s17] ss:$48 sps:$4 sm:$0xff]   ;;  %v2523_v52 = vld [vmem:[%s2848_s17 + $0xc] ss:$48 sps:$4 sm:$0xff]   ;;  %s1805_s4 = scalar_lea.vmem %s3207_s7, %s2695_s24  ;;  %s1937_s21 = scalar_lea.vmem %s3212_s12, %s2695_s24 }
 0x159   : > { %296 = vmatprep.subr.bf16.mxu0 %v2511_v46  ;;  %v2514_v48 = vld [vmem:[%s2848_s17 + $0x64] ss:$48 sps:$4 sm:$0xff]   ;;  %v2516_v49 = vld [vmem:[%s2848_s17 + $0x60] ss:$48 sps:$4 sm:$0xff]   ;;  %v2525_v53 = vld [vmem:[%s2848_s17 + $0x8] ss:$48 sps:$4 sm:$0xff]   ;;  %339 = vmatprep.subr.bf16.mxu1 %v2523_v52  ;;  %s2016_s1 = scalar_lea.vmem %s3213_s13, %s2695_s24  ;;  %s2018_s23 = scalar_lea.vmem %s3214_s14, %s2695_s24 }
 0x15a   : > { %297 = vmatpush1.bf16.msra.mxu0 %v2513_v47  ;;  %v2519_v50 = vld [vmem:[%s2848_s17 + $0x14] ss:$48 sps:$4 sm:$0xff]   ;;  %v2517_v54 = vld [vmem:[%s2848_s17 + $0x10] ss:$48 sps:$4 sm:$0xff]   ;;  %v2526_v55 = vld [vmem:[%s2848_s17 + $0x6c] ss:$48 sps:$4 sm:$0xff]   ;;  %340 = vmatpush1.bf16.msra.mxu1 %v2525_v53 }
 0x15b   : > { %298 = vmatprep.subr.bf16.mxu0 %v2514_v48  ;;  %v2522_v56 = vld [vmem:[%s2848_s17 + $0x74] ss:$48 sps:$4 sm:$0xff]   ;;  %v2528_v57 = vld [vmem:[%s2848_s17 + $0x68] ss:$48 sps:$4 sm:$0xff]   ;;  %341 = vmatprep.subr.bf16.mxu1 %v2526_v55  ;;  %v2531_v58 = vld [vmem:[%s2848_s17 + $0x1c] ss:$48 sps:$4 sm:$0xff]  }
 0x15c   : > { %v2520_v59 = vld [vmem:[%s2848_s17 + $0x70] ss:$48 sps:$4 sm:$0xff]   ;;  %v2529_v60 = vld [vmem:[%s2848_s17 + $0x18] ss:$48 sps:$4 sm:$0xff]   ;;  %v2534_v61 = vld [vmem:[%s2848_s17 + $0x7c] ss:$48 sps:$4 sm:$0xff]  }
 0x15d   : > { %v2537_v62 = vld [vmem:[%s2848_s17 + $0x24] ss:$48 sps:$4 sm:$0xff]   ;;  %v2535_v63 = vld [vmem:[%s2848_s17 + $0x20] ss:$48 sps:$4 sm:$0xff]   ;;  %v2532_v0 = vld [vmem:[%s2848_s17 + $0x78] ss:$48 sps:$4 sm:$0xff]  }
 0x15e   : > { %299 = vmatpush1.bf16.msra.mxu0 %v2516_v49  ;;  %342 = vmatpush1.bf16.msra.mxu1 %v2528_v57  ;;  %v2540_v1 = vld [vmem:[%s2848_s17 + $0x2c] ss:$48 sps:$4 sm:$0xff]   ;;  %v2538_v2 = vld [vmem:[%s2848_s17 + $0x28] ss:$48 sps:$4 sm:$0xff]   ;;  %v2543_v3 = vld [vmem:[%s2848_s17 + $0x84] ss:$48 sps:$4 sm:$0xff]  }
 0x15f   : > { %382 = vmatprep.subr.bf16.mxu0 %v2519_v50  ;;  %425 = vmatprep.subr.bf16.mxu1 %v2531_v58  ;;  %v2541_v4 = vld [vmem:[%s2848_s17 + $0x80] ss:$48 sps:$4 sm:$0xff]   ;;  %v2546_v5 = vld [vmem:[%s2848_s17 + $0x8c] ss:$48 sps:$4 sm:$0xff]   ;;  %v2544_v6 = vld [vmem:[%s2848_s17 + $0x88] ss:$48 sps:$4 sm:$0xff]   ;;  %s1859_s17 = scalar_lea.vmem %s3210_s10, %s2695_s24 }
 0x160   : > { %s2202_s0 = sshll.u32 %s2695_s24, 5 }
 0x161   : > { %2133 = vmatmul.mubr.msk.bf16.vlgmr.msra.gmra.mrb[0].mxu0 %vm75_vm0, %v145_v51  ;;  %2134 = vmatmul.mubr.msk.bf16.vlgmr.msra.gmra.mrb[0].mxu1 %vm75_vm0, %v145_v51  ;;  %s3136_s19 = scalar_lea.vmem %s3211_s11, %s2202_s0 }
 0x162   : > { %383 = vmatpush1.bf16.msra.mxu0 %v2517_v54  ;;  %414 = vmatprep.mubr.bf16.mxu0 %v2701_v45 }
 0x163   : > { %384 = vmatprep.subr.bf16.mxu0 %v2522_v56  ;;  %426 = vmatpush1.bf16.msra.mxu1 %v2529_v60 }
 0x164   : > { %457 = vmatprep.mubr.bf16.mxu1 %v2701_v45  ;;  %427 = vmatprep.subr.bf16.mxu1 %v2534_v61 }
 0x166   : > { %385 = vmatpush1.bf16.msra.mxu0 %v2520_v59 }
 0x167   : > { %468 = vmatprep.subr.bf16.mxu0 %v2537_v62  ;;  %428 = vmatpush1.bf16.msra.mxu1 %v2532_v0 }
 0x168   : > { %511 = vmatprep.subr.bf16.mxu1 %v2540_v1 }
 0x169   : > { %2135 = vmatmul.mubr.msk.bf16.vlgmr.msra.gmra.mrb[4].mxu0 %vm75_vm0, %v145_v51 }
 0x16a   : > { %469 = vmatpush1.bf16.msra.mxu0 %v2535_v63  ;;  %500 = vmatprep.mubr.bf16.mxu0 %v2701_v45 }
 0x16b   : > { %2136 = vmatmul.mubr.msk.bf16.vlgmr.msra.gmra.mrb[4].mxu1 %vm75_vm0, %v145_v51  ;;  %470 = vmatprep.subr.bf16.mxu0 %v2543_v3 }
 0x16c   : > { %512 = vmatpush1.bf16.msra.mxu1 %v2538_v2  ;;  %543 = vmatprep.mubr.bf16.mxu1 %v2701_v45 }
 0x16d   : > { %513 = vmatprep.subr.bf16.mxu1 %v2546_v5 }
 0x16e   : > { %471 = vmatpush1.bf16.msra.mxu0 %v2541_v4 }
 0x16f   : > { %2279 = vmatprep.subr.bf16.mxu0 %v2702_v7 }
 0x170   : > { %514 = vmatpush1.bf16.msra.mxu1 %v2544_v6 }
 0x171   : > { %2137 = vmatmul.mubr.msk.bf16.vlgmr.msra.gmra.mrb[8].mxu0 %vm75_vm0, %v145_v51  ;;  %2285 = vmatprep.subr.bf16.mxu1 %v2702_v7 }
 0x172   : > { %2281 = vmatprep.mubr.msk.bf16.mxu0 %vm2703_vm3, %v2702_v7 }
 0x173   : > { %2138 = vmatmul.mubr.msk.bf16.vlgmr.msra.gmra.mrb[8].mxu1 %vm75_vm0, %v145_v51 }
 0x174   : > { %2287 = vmatprep.mubr.msk.bf16.mxu1 %vm2703_vm3, %v2702_v7 }
 0x234   : > { %v330_v8 = vpop.f32.mrb[0].mxu0  ;;  %v2892_v12 = vpop.f32.mrb[0].mxu1 }
 0x235   : > { %v2888_v9 = vpop.f32.mrb[1].mxu0  ;;  %v2894_v15 = vpop.f32.mrb[1].mxu1  ;;  %v621_v24 = vmul.f32 0.35355338, %v330_v8 }
 0x236   : > { %v334_v10 = vpop.f32.mrb[2].mxu0  ;;  %v2896_v17 = vpop.f32.mrb[2].mxu1 }
 0x237   : > { %v2890_v11 = vpop.f32.mrb[3].mxu0  ;;  %v2900_v20 = vpop.f32.mrb[3].mxu1  ;;  %v622_v25 = vmul.f32 0.35355338, %v334_v10  ;;  %v623_v28 = vpack.c.bf16 %v621_v24, %v621_v24 }
 0x239   : > { %v624_v31 = vpack.c.bf16 %v622_v25, %v622_v25 }
 0x23c   : > { %v416_v16 = vpop.f32.mrb[4].mxu0 }
 0x23d   : > { %v625_v18 = vpack.c.bf16 %v416_v16, %v416_v16  ;;  %v2898_v19 = vpop.f32.mrb[5].mxu0 }
 0x23e   : > { %v420_v21 = vpop.f32.mrb[6].mxu0  ;;  %v2905_v26 = vpop.f32.mrb[4].mxu1 }
 0x23f   : > { %v626_v22 = vpack.c.bf16 %v420_v21, %v420_v21  ;;  %v2902_v23 = vpop.f32.mrb[7].mxu0  ;;  %2280 = vmatpush3.bf16.xpose.msra.mxu0 %v625_v18  ;;  %v2908_v27 = vpop.f32.mrb[5].mxu1 }
 0x240   : > { %2291 = vmatprep.subr.bf16.mxu0 %v2702_v7  ;;  %v2910_v29 = vpop.f32.mrb[6].mxu1 }
 0x241   : > { %2286 = vmatpush3.bf16.xpose.msra.mxu1 %v626_v22  ;;  %v2912_v30 = vpop.f32.mrb[7].mxu1 }
 0x242   : > { %2297 = vmatprep.subr.bf16.mxu1 %v2702_v7 }
 0x244   : > { %v502_v32 = vpop.f32.mrb[8].mxu0 }
 0x245   : > { %v627_v33 = vpack.c.bf16 %v502_v32, %v502_v32  ;;  %v504_v34 = vpop.f32.mrb[9].mxu0 }
 0x246   : > { %2282 = vmatmul.mubr.bf16.vlgmr.msra.gmra.mrb[12].mxu0 %v623_v28  ;;  %v545_v35 = vpop.f32.mrb[8].mxu1  ;;  %v834_v36 = vpack.c.bf16 %v504_v34, %v504_v34  ;;  %v506_v37 = vpop.f32.mrb[10].mxu0 }
 0x247   : > { %2293 = vmatprep.mubr.msk.bf16.mxu0 %vm2703_vm3, %v2702_v7  ;;  %v1217_v38 = vpack.c.bf16 %v545_v35, %v545_v35  ;;  %v547_v39 = vpop.f32.mrb[9].mxu1  ;;  %v739_v40 = vsel %vm737_vm4, %v627_v33, 0  ;;  %v628_v42 = vpack.c.bf16 %v506_v37, %v506_v37  ;;  %v508_v43 = vpop.f32.mrb[11].mxu0 }
 0x248   : > { %2288 = vmatmul.mubr.bf16.vlgmr.msra.gmra.mrb[12].mxu1 %v624_v31  ;;  %v1513_v45 = vpack.c.bf16 %v547_v39, %v547_v39  ;;  %v549_v46 = vpop.f32.mrb[10].mxu1  ;;  %v2920_v47 = vsel %vm737_vm4, %v834_v36, 0  ;;  %v835_v48 = vpack.c.bf16 %v508_v43, %v508_v43  ;;  %2292 = vmatpush3.bf16.msra.mxu0 %v739_v40  ;;  %v833_v40 = vpack.c.bf16 %v2902_v23, %v2902_v23 }
 0x249   : > { %2299 = vmatprep.mubr.msk.bf16.mxu1 %vm2703_vm3, %v2702_v7  ;;  %v2923_v49 = vsel %vm737_vm4, %v1217_v38, 0  ;;  %v1218_v50 = vpack.c.bf16 %v549_v46, %v549_v46  ;;  %v551_v51 = vpop.f32.mrb[11].mxu1  ;;  %v785_v52 = vsel %vm737_vm4, %v628_v42, 0  ;;  %2303 = vmatprep.subr.bf16.mxu0 %v2702_v7  ;;  %v832_v38 = vpack.c.bf16 %v2898_v19, %v2898_v19 }
 0x24a   : > { %v2928_v53 = vsel %vm737_vm4, %v1513_v45, 0  ;;  %v1514_v54 = vpack.c.bf16 %v551_v51, %v551_v51  ;;  %v990_v55 = vsel %vm737_vm4, %v835_v48, 0  ;;  %2298 = vmatpush3.bf16.msra.mxu1 %v785_v52  ;;  %v828_v42 = vmul.f32 0.35355338, %v2888_v9 }
 0x24b   : > { %v2932_v56 = vsel %vm737_vm4, %v1218_v50, 0  ;;  %2309 = vmatprep.subr.bf16.mxu1 %v2702_v7  ;;  %v829_v19 = vmul.f32 0.35355338, %v2890_v11 }
 0x24c   : > { %v2936_v57 = vsel %vm737_vm4, %v1514_v54, 0  ;;  %v830_v43 = vpack.c.bf16 %v828_v42, %v828_v42  ;;  %v2556_v42 = vld [vmem:[%s2843_s27 + $0x48] sm:$0xff]  }
 0x24d   : > { %v831_v23 = vpack.c.bf16 %v829_v19, %v829_v19  ;;  %v2550_v19 = vld [vmem:[%s2843_s27 + $0x18] sm:$0xff]  }
 0x319   : > { %v663_v58 = vpop.f32.mrb[12].mxu0 }
 0x31a   : > { %v664_v59 = vadd.f32 %v663_v58, %v2809_v13  ;;  %v2283_v60 = vpop.f32.mrb[13].mxu0 }
 0x31b   : > { %v666_v61 = vpop.f32.mrb[14].mxu0  ;;  %v703_v62 = vpop.f32.mrb[12].mxu1 }
 0x31c   : > { %v704_v63 = vadd.f32 %v703_v62, %v2811_v14  ;;  %v2284_v0 = vpop.f32.mrb[15].mxu0  ;;  %v2289_v1 = vpop.f32.mrb[13].mxu1  ;;  %v710_v2 = vsel %vm709_vm5, %v664_v59, -inf }
 0x31d   : > { %v706_v3 = vpop.f32.mrb[14].mxu1  ;;  %711 = vmax.xlane.f32.xlu1 %v710_v2 }
 0x31e   : > { %v2290_v4 = vpop.f32.mrb[15].mxu1  ;;  %v713_v5 = vsel %vm709_vm5, %v704_v63, -inf }
 0x31f   : > { %714 = vmax.xlane.f32.xlu0 %v713_v5 }
 0x3aa   : > { %v712_v6 = vpop.xlane.xlu1 %711 }
 0x3ab   : > { %v716_v8 = vsub.f32 %v664_v59, %v712_v6 }
 0x3ac   : > { %v715_v10 = vpop.xlane.xlu0 %714 }
 0x3ad   : > { %v718_v16 = vmul.f32 1.442695, %v716_v8  ;;  %v717_v18 = vsub.f32 %v704_v63, %v715_v10 }
 0x3af   : > { %2585 = vpow2.f32 %v718_v16  ;;  %v720_v21 = vmul.f32 1.442695, %v717_v18 }
 0x3b1   : > { %2587 = vpow2.f32 %v720_v21 }
 0x3b9   : > { %v2586_v22 = vpop.eup %2585 }
 0x3ba   : > { %v722_v24 = vsel %vm709_vm5, %v2586_v22, 0.0 }
 0x3bb   : > { %v2588_v25 = vpop.eup %2587  ;;  %723 = vadd.xlane.f32.xlu1 %v722_v24 }
 0x3bc   : > { %v725_v28 = vsel %vm709_vm5, %v2588_v25, 0.0 }
 0x3bd   : > { %726 = vadd.xlane.f32.xlu0 %v725_v28 }
 0x448   : > { %v724_v31 = vpop.xlane.xlu1 %723 }
 0x449   : > { %2589 = vrcp.f32 %v724_v31 }
 0x44a   : > { %v727_v32 = vpop.xlane.xlu0 %726 }
 0x44b   : > { %2591 = vrcp.f32 %v727_v32 }
 0x453   : > { %v2590_v33 = vpop.eup %2589 }
 0x454   : > { %v730_v34 = vmul.f32 %v2590_v33, %v2586_v22  ;;  %v2547_v33 = vld [vmem:[%s2843_s27] sm:$0xff]  }
 0x455   : > { %v2592_v35 = vpop.eup %2591 }
 0x456   : > { %v731_v36 = vmul.f32 %v2592_v35, %v2588_v25  ;;  %v732_v37 = vpack.c.bf16 %v730_v34, %v730_v34 }
 0x458   : > { %2294 = vmatmul.mubr.msk.bf16.vlgmr.msra.gmra.mrb[16].mxu0 %vm709_vm5, %v732_v37  ;;  %v733_v39 = vpack.c.bf16 %v731_v36, %v731_v36  ;;  %v2548_v37 = vld [vmem:[%s2843_s27 + $0x8] sm:$0xff]  }
 0x459   : > { %2304 = vmatpush3.bf16.xpose.msra.mxu0 %v832_v38  ;;  %2305 = vmatprep.mubr.msk.bf16.mxu0 %vm2703_vm3, %v2702_v7  ;;  %v2555_v38 = vld [vmem:[%s2843_s27 + $0x40] sm:$0xff]  }
 0x45a   : > { %2300 = vmatmul.mubr.msk.bf16.vlgmr.msra.gmra.mrb[16].mxu1 %vm709_vm5, %v733_v39  ;;  %2315 = vmatprep.subr.bf16.mxu0 %v2702_v7 }
 0x45b   : > { %2310 = vmatpush3.bf16.xpose.msra.mxu1 %v833_v40  ;;  %2311 = vmatprep.mubr.msk.bf16.mxu1 %vm2703_vm3, %v2702_v7  ;;  %v2549_v40 = vld [vmem:[%s2843_s27 + $0x10] sm:$0xff]  }
 0x45c   : > { %2321 = vmatprep.subr.bf16.mxu1 %v2702_v7 }
 0x460   : > { %2306 = vmatmul.mubr.bf16.vlgmr.msra.gmra.mrb[20].mxu0 %v830_v43  ;;  %v2557_v43 = vld [vmem:[%s2843_s27 + $0x50] sm:$0xff]  }
 0x461   : > { %2316 = vmatpush3.bf16.msra.mxu0 %v2920_v47  ;;  %2317 = vmatprep.mubr.msk.bf16.mxu0 %vm2703_vm3, %v2702_v7 }
 0x462   : > { %2312 = vmatmul.mubr.bf16.vlgmr.msra.gmra.mrb[20].mxu1 %v831_v23  ;;  %2327 = vmatprep.subr.bf16.mxu0 %v2702_v7  ;;  %v2551_v23 = vld [vmem:[%s2843_s27 + $0x20] sm:$0xff]  }
 0x463   : > { %2322 = vmatpush3.bf16.msra.mxu1 %v990_v55  ;;  %2323 = vmatprep.mubr.msk.bf16.mxu1 %vm2703_vm3, %v2702_v7 }
 0x464   : > { %2347 = vmatprep.subr.bf16.mxu1 %v2702_v7 }
 0x52b   : > { %v2965_v9 = vpop.f32.mrb[16].mxu0 }
 0x52c   : > { %v2295_v11 = vpop.f32.mrb[17].mxu0 }
 0x52d   : > { %v778_v45 = vpop.f32.mrb[18].mxu0  ;;  %v2967_v46 = vpop.f32.mrb[16].mxu1  ;;  %v2558_v11 = vld [vmem:[%s2843_s27 + $0x58] sm:$0xff]  }
 0x52e   : > { %v827_v47 = vpack.c.bf16 %v2967_v46, %v2965_v9  ;;  %v2296_v48 = vpop.f32.mrb[19].mxu0  ;;  %v2301_v50 = vpop.f32.mrb[17].mxu1  ;;  %v2552_v45 = vld [vmem:[%s2843_s27 + $0x28] sm:$0xff]  }
 0x52f   : > { %v824_v51 = vpop.f32.mrb[18].mxu1  ;;  %v2559_v48 = vld [vmem:[%s2843_s27 + $0x60] sm:$0xff]   ;;  %v2553_v50 = vld [vmem:[%s2843_s27 + $0x30] sm:$0xff]  }
 0x530   : > { %v2302_v52 = vpop.f32.mrb[19].mxu1  ;;  %v2560_v51 = vld [vmem:[%s2843_s27 + $0x68] sm:$0xff]  }
 0x531   : > { %v2554_v52 = vld [vmem:[%s2843_s27 + $0x38] sm:$0xff]  }
 0x533   : > { %v870_v54 = vpop.f32.mrb[20].mxu0 }
 0x534   : > { %v2307_v55 = vpop.f32.mrb[21].mxu0  ;;  %v871_v0 = vadd.f32 %v870_v54, %v2809_v13  ;;  %v2561_v54 = vld [vmem:[%s2843_s27 + $0x70] sm:$0xff]  }
 0x535   : > { %v873_v58 = vpop.f32.mrb[22].mxu0  ;;  %v910_v59 = vpop.f32.mrb[20].mxu1  ;;  %v2562_v55 = vld [vmem:[%s2843_s27 + $0x78] sm:$0xff]  }
 0x536   : > { %v911_v60 = vadd.f32 %v910_v59, %v2811_v14  ;;  %v2308_v61 = vpop.f32.mrb[23].mxu0  ;;  %v2313_v62 = vpop.f32.mrb[21].mxu1  ;;  %v916_v3 = vsel %vm709_vm5, %v871_v0, -inf  ;;  %v1216_v58 = vpack.c.bf16 %v2910_v29, %v2910_v29  ;;  %v1212_v59 = vmul.f32 0.35355338, %v2896_v17 }
 0x537   : > { %v913_v63 = vpop.f32.mrb[22].mxu1  ;;  %v1215_v17 = vpack.c.bf16 %v2905_v26, %v2905_v26 }
 0x538   : > { %v2314_v1 = vpop.f32.mrb[23].mxu1  ;;  %v919_v2 = vsel %vm709_vm5, %v911_v60, -inf }
 0x539   : > { %920 = vmax.xlane.f32.xlu0 %v919_v2 }
 0x53d   : > { %917 = vmax.xlane.f32.xlu0 %v916_v3 }
 0x5c6   : > { %v921_v4 = vpop.xlane.xlu0 %920 }
 0x5c7   : > { %v923_v5 = vsub.f32 %v911_v60, %v921_v4  ;;  %v1214_v60 = vpack.c.bf16 %v1212_v59, %v1212_v59 }
 0x5c9   : > { %v926_v6 = vmul.f32 1.442695, %v923_v5 }
 0x5ca   : > { %v918_v8 = vpop.xlane.xlu0 %917 }
 0x5cb   : > { %2593 = vpow2.f32 %v926_v6  ;;  %v922_v10 = vsub.f32 %v871_v0, %v918_v8 }
 0x5cd   : > { %v924_v16 = vmul.f32 1.442695, %v922_v10 }
 0x5cf   : > { %2595 = vpow2.f32 %v924_v16 }
 0x5d5   : > { %v2594_v18 = vpop.eup %2593 }
 0x5d6   : > { %v931_v21 = vsel %vm709_vm5, %v2594_v18, 0.0 }
 0x5d7   : > { %932 = vadd.xlane.f32.xlu1 %v931_v21 }
 0x5d9   : > { %v2596_v22 = vpop.eup %2595 }
 0x5da   : > { %v928_v24 = vsel %vm709_vm5, %v2596_v22, 0.0 }
 0x5db   : > { %929 = vadd.xlane.f32.xlu1 %v928_v24 }
 0x664   : > { %v933_v25 = vpop.xlane.xlu1 %932 }
 0x665   : > { %2597 = vrcp.f32 %v933_v25 }
 0x668   : > { %v930_v28 = vpop.xlane.xlu1 %929 }
 0x669   : > { %2599 = vrcp.f32 %v930_v28 }
 0x66f   : > { %v2598_v31 = vpop.eup %2597 }
 0x670   : > { %v937_v32 = vmul.f32 %v2598_v31, %v2594_v18 }
 0x672   : > { %v939_v34 = vpack.c.bf16 %v937_v32, %v937_v32 }
 0x673   : > { %v2600_v35 = vpop.eup %2599 }
 0x674   : > { %v936_v36 = vmul.f32 %v2600_v35, %v2596_v22  ;;  %2324 = vmatmul.mubr.msk.bf16.vlgmr.msra.gmra.mrb[24].mxu1 %vm709_vm5, %v939_v34 }
 0x675   : > { %2348 = vmatpush3.bf16.msra.mxu1 %v2547_v33  ;;  %2363 = vmatprep.mubr.msk.bf16.mxu1 %vm2703_vm3, %v2702_v7 }
 0x676   : > { %2349 = vmatprep.subr.bf16.mxu1 %v2702_v7  ;;  %v938_v39 = vpack.c.bf16 %v936_v36, %v936_v36 }
 0x678   : > { %2318 = vmatmul.mubr.msk.bf16.vlgmr.msra.gmra.mrb[24].mxu0 %vm709_vm5, %v938_v39 }
 0x679   : > { %2350 = vmatpush3.bf16.msra.mxu1 %v2548_v37  ;;  %2328 = vmatpush3.bf16.msra.mxu0 %v2555_v38 }
 0x67a   : > { %2351 = vmatprep.subr.bf16.mxu1 %v2702_v7  ;;  %2329 = vmatprep.subr.bf16.mxu0 %v2702_v7 }
 0x67b   : > { %2343 = vmatprep.mubr.msk.bf16.mxu0 %vm2703_vm3, %v2702_v7 }
 0x67d   : > { %2352 = vmatpush3.bf16.msra.mxu1 %v2549_v40  ;;  %2330 = vmatpush3.bf16.msra.mxu0 %v2556_v42 }
 0x67e   : > { %2353 = vmatprep.subr.bf16.mxu1 %v2702_v7  ;;  %2331 = vmatprep.subr.bf16.mxu0 %v2702_v7 }
 0x681   : > { %2354 = vmatpush3.bf16.msra.mxu1 %v2550_v19  ;;  %2332 = vmatpush3.bf16.msra.mxu0 %v2557_v43 }
 0x682   : > { %2355 = vmatprep.subr.bf16.mxu1 %v2702_v7  ;;  %2333 = vmatprep.subr.bf16.mxu0 %v2702_v7 }
 0x685   : > { %2356 = vmatpush3.bf16.msra.mxu1 %v2551_v23  ;;  %2334 = vmatpush3.bf16.msra.mxu0 %v2558_v11 }
 0x686   : > { %2357 = vmatprep.subr.bf16.mxu1 %v2702_v7  ;;  %2335 = vmatprep.subr.bf16.mxu0 %v2702_v7 }
 0x689   : > { %2358 = vmatpush3.bf16.msra.mxu1 %v2552_v45  ;;  %2336 = vmatpush3.bf16.msra.mxu0 %v2559_v48  ;;  %v1511_v45 = vpack.c.bf16 %v2908_v27, %v2908_v27  ;;  %v1507_v48 = vmul.f32 0.35355338, %v2894_v15  ;;  %v1508_v27 = vmul.f32 0.35355338, %v2900_v20 }
 0x68a   : > { %2359 = vmatprep.subr.bf16.mxu1 %v2702_v7  ;;  %2337 = vmatprep.subr.bf16.mxu0 %v2702_v7 }
 0x68d   : > { %2360 = vmatpush3.bf16.msra.mxu1 %v2553_v50  ;;  %2338 = vmatpush3.bf16.msra.mxu0 %v2560_v51  ;;  %v1509_v50 = vpack.c.bf16 %v1507_v48, %v1507_v48  ;;  %v1512_v51 = vpack.c.bf16 %v2912_v30, %v2912_v30 }
 0x68e   : > { %2361 = vmatprep.subr.bf16.mxu1 %v2702_v7  ;;  %2339 = vmatprep.subr.bf16.mxu0 %v2702_v7 }
 0x691   : > { %2362 = vmatpush3.bf16.msra.mxu1 %v2554_v52  ;;  %2340 = vmatpush3.bf16.msra.mxu0 %v2561_v54  ;;  %v1510_v52 = vpack.c.bf16 %v1508_v27, %v1508_v27 }
 0x692   : > { %2373 = vmatprep.subr.bf16.mxu1 %v2702_v7  ;;  %2341 = vmatprep.subr.bf16.mxu0 %v2702_v7 }
 0x694   : > { %2364 = vmatmul.mubr.bf16.vlgmr.msra.gmra.mrb[28].mxu1 %v827_v47 }
 0x695   : > { %2375 = vmatprep.mubr.msk.bf16.mxu1 %vm2703_vm3, %v2702_v7  ;;  %2342 = vmatpush3.bf16.msra.mxu0 %v2562_v55 }
 0x696   : > { %2367 = vmatprep.subr.bf16.mxu0 %v2702_v7 }
 0x69a   : > { %2374 = vmatpush3.bf16.xpose.msra.mxu1 %v1216_v58 }
 0x69b   : > { %2385 = vmatprep.subr.bf16.mxu1 %v2702_v7 }
 0x6a1   : > { %2376 = vmatmul.mubr.bf16.vlgmr.msra.gmra.mrb[32].mxu1 %v1214_v60 }
 0x6a2   : > { %2386 = vmatpush3.bf16.msra.mxu1 %v2932_v56  ;;  %2387 = vmatprep.mubr.msk.bf16.mxu1 %vm2703_vm3, %v2702_v7  ;;  %v1211_v56 = vmul.f32 0.35355338, %v2892_v12 }
 0x6a3   : > { %2411 = vmatprep.subr.bf16.mxu1 %v2702_v7 }
 0x6a4   : > { %v1213_v2 = vpack.c.bf16 %v1211_v56, %v1211_v56 }
 0x747   : > { %v1026_v9 = vpop.f32.mrb[24].mxu1 }
 0x748   : > { %v2325_v46 = vpop.f32.mrb[25].mxu1 }
 0x749   : > { %v1029_v47 = vpop.f32.mrb[26].mxu1 }
 0x74a   : > { %v2326_v61 = vpop.f32.mrb[27].mxu1 }
 0x74b   : > { %v980_v62 = vpop.f32.mrb[24].mxu0 }
 0x74c   : > { %v1032_v29 = vpack.c.bf16 %v1026_v9, %v980_v62  ;;  %v2319_v63 = vpop.f32.mrb[25].mxu0 }
 0x74d   : > { %v983_v0 = vpop.f32.mrb[26].mxu0 }
 0x74e   : > { %v2320_v1 = vpop.f32.mrb[27].mxu0  ;;  %2344 = vmatmul.mubr.bf16.vlgmr.msra.gmra.mrb[28].mxu0 %v1032_v29 }
 0x74f   : > { %2368 = vmatpush3.bf16.xpose.msra.mxu0 %v1215_v17  ;;  %2369 = vmatprep.mubr.msk.bf16.mxu0 %vm2703_vm3, %v2702_v7 }
 0x750   : > { %2379 = vmatprep.subr.bf16.mxu0 %v2702_v7 }
 0x756   : > { %2370 = vmatmul.mubr.bf16.vlgmr.msra.gmra.mrb[32].mxu0 %v1213_v2 }
 0x757   : > { %2380 = vmatpush3.bf16.msra.mxu0 %v2923_v49  ;;  %2381 = vmatprep.mubr.msk.bf16.mxu0 %vm2703_vm3, %v2702_v7 }
 0x758   : > { %2391 = vmatprep.subr.bf16.mxu0 %v2702_v7 }
 0x767   : > { %v1204_v26 = vpop.f32.mrb[28].mxu1 }
 0x768   : > { %v2365_v3 = vpop.f32.mrb[29].mxu1 }
 0x769   : > { %v1207_v4 = vpop.f32.mrb[30].mxu1 }
 0x76a   : > { %v2366_v5 = vpop.f32.mrb[31].mxu1 }
 0x774   : > { %v1293_v6 = vpop.f32.mrb[32].mxu1 }
 0x775   : > { %v1294_v8 = vadd.f32 %v1293_v6, %v2811_v14  ;;  %v2377_v10 = vpop.f32.mrb[33].mxu1 }
 0x776   : > { %v1296_v12 = vpop.f32.mrb[34].mxu1 }
 0x777   : > { %v2378_v16 = vpop.f32.mrb[35].mxu1  ;;  %v1302_v18 = vsel %vm709_vm5, %v1294_v8, -inf }
 0x778   : > { %1303 = vmax.xlane.f32.xlu0 %v1302_v18 }
 0x805   : > { %v1304_v21 = vpop.xlane.xlu0 %1303 }
 0x806   : > { %v1306_v49 = vsub.f32 %v1294_v8, %v1304_v21 }
 0x808   : > { %v1309_v22 = vmul.f32 1.442695, %v1306_v49 }
 0x80a   : > { %2601 = vpow2.f32 %v1309_v22 }
 0x814   : > { %v2602_v24 = vpop.eup %2601 }
 0x815   : > { %v1314_v25 = vsel %vm709_vm5, %v2602_v24, 0.0 }
 0x816   : > { %1315 = vadd.xlane.f32.xlu1 %v1314_v25  ;;  %v2563_v25 = vld [vmem:[%s2843_s27 + $0x80] sm:$0xff]  }
 0x821   : > { %v1115_v28 = vpop.f32.mrb[28].mxu0 }
 0x822   : > { %v3041_v31 = vadd.f32 %v1204_v26, %v1115_v28  ;;  %v2345_v32 = vpop.f32.mrb[29].mxu0  ;;  %v2564_v28 = vld [vmem:[%s2843_s27 + $0x88] sm:$0xff]  }
 0x823   : > { %v1118_v33 = vpop.f32.mrb[30].mxu0  ;;  %v2565_v32 = vld [vmem:[%s2843_s27 + $0x90] sm:$0xff]  }
 0x824   : > { %v3043_v34 = vadd.f32 %v1207_v4, %v1118_v33  ;;  %v2346_v35 = vpop.f32.mrb[31].mxu0  ;;  %v2566_v33 = vld [vmem:[%s2843_s27 + $0x98] sm:$0xff]  }
 0x825   : > { %v2567_v35 = vld [vmem:[%s2843_s27 + $0xa0] sm:$0xff]  }
 0x829   : > { %v1253_v36 = vpop.f32.mrb[32].mxu0 }
 0x82a   : > { %v1254_v37 = vadd.f32 %v1253_v36, %v2809_v13  ;;  %v2371_v38 = vpop.f32.mrb[33].mxu0  ;;  %v2568_v36 = vld [vmem:[%s2843_s27 + $0xa8] sm:$0xff]  }
 0x82b   : > { %v1256_v39 = vpop.f32.mrb[34].mxu0  ;;  %v2570_v38 = vld [vmem:[%s2843_s27 + $0xb8] sm:$0xff]  }
 0x82c   : > { %v2372_v40 = vpop.f32.mrb[35].mxu0  ;;  %v1299_v42 = vsel %vm709_vm5, %v1254_v37, -inf }
 0x82d   : > { %1300 = vmax.xlane.f32.xlu0 %v1299_v42 }
 0x8a3   : > { %v1316_v19 = vpop.xlane.xlu1 %1315 }
 0x8a4   : > { %2603 = vrcp.f32 %v1316_v19 }
 0x8ae   : > { %v2604_v43 = vpop.eup %2603 }
 0x8af   : > { %v1320_v23 = vmul.f32 %v2604_v43, %v2602_v24 }
 0x8b1   : > { %v1322_v11 = vpack.c.bf16 %v1320_v23, %v1320_v23 }
 0x8b3   : > { %2388 = vmatmul.mubr.msk.bf16.vlgmr.msra.gmra.mrb[36].mxu1 %vm709_vm5, %v1322_v11 }
 0x8b4   : > { %2412 = vmatpush3.bf16.xpose.msra.mxu1 %v1511_v45  ;;  %2413 = vmatprep.mubr.msk.bf16.mxu1 %vm2703_vm3, %v2702_v7 }
 0x8b5   : > { %2417 = vmatprep.subr.bf16.mxu1 %v2702_v7 }
 0x8ba   : > { %v1301_v15 = vpop.xlane.xlu0 %1300 }
 0x8bb   : > { %2414 = vmatmul.mubr.bf16.vlgmr.msra.gmra.mrb[40].mxu1 %v1509_v50  ;;  %v1305_v30 = vsub.f32 %v1254_v37, %v1301_v15  ;;  %v2569_v37 = vld [vmem:[%s2843_s27 + $0xb0] sm:$0xff]   ;;  %v2571_v50 = vld [vmem:[%s2843_s27 + $0xc0] sm:$0xff]   ;;  %v2572_v15 = vld [vmem:[%s2843_s27 + $0xc8] sm:$0xff]  }
 0x8bc   : > { %2418 = vmatpush3.bf16.xpose.msra.mxu1 %v1512_v51  ;;  %2419 = vmatprep.mubr.msk.bf16.mxu1 %vm2703_vm3, %v2702_v7 }
 0x8bd   : > { %2423 = vmatprep.subr.bf16.mxu1 %v2702_v7  ;;  %v1307_v54 = vmul.f32 1.442695, %v1305_v30  ;;  %v2573_v30 = vld [vmem:[%s2843_s27 + $0xd0] sm:$0xff]  }
 0x8bf   : > { %2605 = vpow2.f32 %v1307_v54  ;;  %v2574_v54 = vld [vmem:[%s2843_s27 + $0xd8] sm:$0xff]  }
 0x8c3   : > { %2420 = vmatmul.mubr.bf16.vlgmr.msra.gmra.mrb[44].mxu1 %v1510_v52 }
 0x8c4   : > { %2424 = vmatpush3.bf16.msra.mxu1 %v2928_v53  ;;  %2425 = vmatprep.mubr.msk.bf16.mxu1 %vm2703_vm3, %v2702_v7 }
 0x8c5   : > { %2429 = vmatprep.subr.bf16.mxu1 %v2702_v7 }
 0x8c9   : > { %v2606_v62 = vpop.eup %2605 }
 0x8ca   : > { %v1311_v29 = vsel %vm709_vm5, %v2606_v62, 0.0 }
 0x986   : > { %v3064_v55 = vpop.f32.mrb[36].mxu1 }
 0x987   : > { %v2389_v58 = vpop.f32.mrb[37].mxu1 }
 0x988   : > { %v1412_v59 = vpop.f32.mrb[38].mxu1  ;;  %v2576_v58 = vld [vmem:[%s2843_s27 + $0xe8] sm:$0xff]  }
 0x989   : > { %v2390_v20 = vpop.f32.mrb[39].mxu1  ;;  %v2577_v59 = vld [vmem:[%s2843_s27 + $0xf0] sm:$0xff]  }
 0x98a   : > { %v2578_v20 = vld [vmem:[%s2843_s27 + $0xf8] sm:$0xff]  }
 0x98e   : > { %v1549_v60 = vpop.f32.mrb[40].mxu1 }
 0x98f   : > { %v1550_v9 = vadd.f32 %v1549_v60, %v2809_v13  ;;  %v2415_v46 = vpop.f32.mrb[41].mxu1 }
 0x990   : > { %v1552_v47 = vpop.f32.mrb[42].mxu1 }
 0x991   : > { %v2416_v53 = vpop.f32.mrb[43].mxu1  ;;  %v1595_v61 = vsel %vm709_vm5, %v1550_v9, -inf }
 0x992   : > { %1596 = vmax.xlane.f32.xlu1 %v1595_v61 }
 0x996   : > { %v1589_v63 = vpop.f32.mrb[44].mxu1  ;;  %1312 = vadd.xlane.f32.xlu1 %v1311_v29 }
 0x997   : > { %v1590_v17 = vadd.f32 %v1589_v63, %v2811_v14  ;;  %v2421_v0 = vpop.f32.mrb[45].mxu1 }
 0x998   : > { %v1592_v1 = vpop.f32.mrb[46].mxu1 }
 0x999   : > { %v2422_v56 = vpop.f32.mrb[47].mxu1  ;;  %v1598_v2 = vsel %vm709_vm5, %v1590_v17, -inf }
 0x99a   : > { %1599 = vmax.xlane.f32.xlu0 %v1598_v2 }
 0xa1f   : > { %v1597_v26 = vpop.xlane.xlu1 %1596 }
 0xa20   : > { %v1601_v3 = vsub.f32 %v1550_v9, %v1597_v26 }
 0xa22   : > { %v1603_v4 = vmul.f32 1.442695, %v1601_v3 }
 0xa23   : > { %v1313_v5 = vpop.xlane.xlu1 %1312 }
 0xa24   : > { %2607 = vpow2.f32 %v1603_v4 }
 0xa25   : > { %2609 = vrcp.f32 %v1313_v5 }
 0xa27   : > { %v1600_v6 = vpop.xlane.xlu0 %1599 }
 0xa28   : > { %v1602_v8 = vsub.f32 %v1590_v17, %v1600_v6 }
 0xa2a   : > { %v1605_v10 = vmul.f32 1.442695, %v1602_v8 }
 0xa2c   : > { %2611 = vpow2.f32 %v1605_v10 }
 0xa2e   : > { %v2608_v12 = vpop.eup %2607 }
 0xa2f   : > { %v2610_v16 = vpop.eup %2609  ;;  %v1607_v18 = vsel %vm709_vm5, %v2608_v12, 0.0 }
 0xa30   : > { %v1319_v21 = vmul.f32 %v2610_v16, %v2606_v62  ;;  %1608 = vadd.xlane.f32.xlu0 %v1607_v18 }
 0xa32   : > { %v1321_v49 = vpack.c.bf16 %v1319_v21, %v1319_v21 }
 0xa34   : > { %2382 = vmatmul.mubr.msk.bf16.vlgmr.msra.gmra.mrb[36].mxu0 %vm709_vm5, %v1321_v49 }
 0xa35   : > { %2407 = vmatprep.mubr.msk.bf16.mxu0 %vm2703_vm3, %v2702_v7  ;;  %2392 = vmatpush3.bf16.msra.mxu0 %v2563_v25 }
 0xa36   : > { %v2612_v22 = vpop.eup %2611  ;;  %2393 = vmatprep.subr.bf16.mxu0 %v2702_v7 }
 0xa37   : > { %v1610_v24 = vsel %vm709_vm5, %v2612_v22, 0.0 }
 0xa38   : > { %1611 = vadd.xlane.f32.xlu1 %v1610_v24 }
 0xa39   : > { %2394 = vmatpush3.bf16.msra.mxu0 %v2564_v28 }
 0xa3a   : > { %2395 = vmatprep.subr.bf16.mxu0 %v2702_v7 }
 0xa3d   : > { %2396 = vmatpush3.bf16.msra.mxu0 %v2565_v32 }
 0xa3e   : > { %2397 = vmatprep.subr.bf16.mxu0 %v2702_v7 }
 0xa41   : > { %2398 = vmatpush3.bf16.msra.mxu0 %v2566_v33 }
 0xa42   : > { %2399 = vmatprep.subr.bf16.mxu0 %v2702_v7 }
 0xa45   : > { %2400 = vmatpush3.bf16.msra.mxu0 %v2567_v35  ;;  %v2580_v35 = vld [vmem:[%s1854_s22 + $0x8] sm:$0xff]  }
 0xa46   : > { %2401 = vmatprep.subr.bf16.mxu0 %v2702_v7 }
 0xa49   : > { %2402 = vmatpush3.bf16.msra.mxu0 %v2568_v36 }
 0xa4a   : > { %2403 = vmatprep.subr.bf16.mxu0 %v2702_v7 }
 0xa4d   : > { %2404 = vmatpush3.bf16.msra.mxu0 %v2569_v37 }
 0xa4e   : > { %2405 = vmatprep.subr.bf16.mxu0 %v2702_v7 }
 0xa51   : > { %2406 = vmatpush3.bf16.msra.mxu0 %v2570_v38 }
 0xa52   : > { %2435 = vmatprep.subr.bf16.mxu0 %v2702_v7 }
 0xabd   : > { %v1609_v39 = vpop.xlane.xlu0 %1608 }
 0xabe   : > { %2613 = vrcp.f32 %v1609_v39 }
 0xac5   : > { %v1612_v40 = vpop.xlane.xlu1 %1611 }
 0xac6   : > { %2615 = vrcp.f32 %v1612_v40 }
 0xac8   : > { %v2614_v42 = vpop.eup %2613 }
 0xac9   : > { %v1615_v19 = vmul.f32 %v2614_v42, %v2608_v12 }
 0xacb   : > { %v1617_v43 = vpack.c.bf16 %v1615_v19, %v1615_v19 }
 0xacd   : > { %2426 = vmatmul.mubr.msk.bf16.vlgmr.msra.gmra.mrb[48].mxu1 %vm709_vm5, %v1617_v43  ;;  %v2181_v43 = vld [vmem:[%s1805_s4] ss:$0 sm:$0xff] }
 0xace   : > { %2430 = vmatpush3.bf16.msra.mxu1 %v2936_v57  ;;  %2431 = vmatprep.mubr.msk.bf16.mxu1 %vm2703_vm3, %v2702_v7 }
 0xacf   : > { %2455 = vmatprep.subr.bf16.mxu1 %v2702_v7 }
 0xad0   : > { %v2616_v23 = vpop.eup %2615 }
 0xad1   : > { %v1616_v11 = vmul.f32 %v2616_v23, %v2612_v22 }
 0xad3   : > { %v1618_v45 = vpack.c.bf16 %v1616_v11, %v1616_v11 }
 0xad5   : > { %2432 = vmatmul.mubr.msk.bf16.vlgmr.msra.gmra.mrb[52].mxu1 %vm709_vm5, %v1618_v45 }
 0xad6   : > { %2459 = vmatprep.mubr.msk.bf16.mxu1 %vm2703_vm3, %v2702_v7 }
 0xb07   : > { %v1363_v48 = vpop.f32.mrb[36].mxu0 }
 0xb08   : > { %v1415_v57 = vpack.c.bf16 %v3064_v55, %v1363_v48  ;;  %v2383_v51 = vpop.f32.mrb[37].mxu0  ;;  %v2575_v55 = vld [vmem:[%s2843_s27 + $0xe0] sm:$0xff]   ;;  %s1807_s27 = scalar_lea.vmem %s3208_s8, %s2695_s24  ;;  %s142_s24 = sadd.s32 1, %s2695_s24  }
 0xb09   : > { %v1366_v27 = vpop.f32.mrb[38].mxu0  ;;  %p139_p8 = scmp.ge.s32.totalorder %s142_s24, 2  }
 0xb0a   : > { %v2384_v52 = vpop.f32.mrb[39].mxu0  ;;  %2408 = vmatmul.mubr.bf16.vlgmr.msra.gmra.mrb[40].mxu0 %v1415_v57  ;;  %s2704_s3 = smov (%p139_p8), [#allocation5]  }
 0xb0b   : > { %2436 = vmatpush3.bf16.msra.mxu0 %v2571_v50  ;;  %2451 = vmatprep.mubr.msk.bf16.mxu0 %vm2703_vm3, %v2702_v7  ;;  %v2182_v50 = vld [vmem:[%s1807_s27] ss:$0 sm:$0xff]  ;;  %s2069_s4 = sshll.u32 (%p139_p8), %s2704_s3, 4  ;;  %s2070_s4 = int_to_ptr.vmem [resolvable:$true] %s2069_s4 }
 0xb0c   : > { %2437 = vmatprep.subr.bf16.mxu0 %v2702_v7  ;;  %v2581_v52 = vld [vmem:[%s3136_s19] sm:$0xff]   ;;  %s2647_s25 = scalar_lea.vmem (%p139_p8), %s2070_s4, 256  ;;  %p2652_p10 = scmp.lt.s32.totalorder (%p139_p8), %s2070_s4, %s2070_s4 }
 0xb0d   :  { %p2648_p9 = scmp.ne.s32.totalorder (%p139_p8), %s2070_s4, %s2647_s25  ;;  %p2653_p11 = scmp.lt.s32.totalorder (%p139_p8), %s2647_s25, %s2647_s25 }
 0xb0f   : > { %2438 = vmatpush3.bf16.msra.mxu0 %v2572_v15  ;;  %p2654_p12 = por (%p139_p8), %p2653_p11, %p2652_p10 }
 0xb10   : > { %2439 = vmatprep.subr.bf16.mxu0 %v2702_v7 }
 0xb11   :  { %p2655_p13 = pnand (%p139_p8), %p2654_p12, %p2648_p9 }
 0xb13   : > { %2440 = vmatpush3.bf16.msra.mxu0 %v2573_v30  ;;  %v2582_v30 = vld [vmem:[%s3136_s19 + $0x8] sm:$0xff]  }
 0xb14   : > { %2441 = vmatprep.subr.bf16.mxu0 %v2702_v7 }
 0xb17   : > { %2442 = vmatpush3.bf16.msra.mxu0 %v2574_v54  ;;  %v2583_v54 = vld [vmem:[%s3136_s19 + $0x10] sm:$0xff]  }
 0xb18   : > { %2443 = vmatprep.subr.bf16.mxu0 %v2702_v7 }
 0xb1b   : > { %2444 = vmatpush3.bf16.msra.mxu0 %v2575_v55  ;;  %v2584_v55 = vld [vmem:[%s3136_s19 + $0x18] sm:$0xff]  }
 0xb1c   : > { %2445 = vmatprep.subr.bf16.mxu0 %v2702_v7 }
 0xb1f   : > { %2446 = vmatpush3.bf16.msra.mxu0 %v2576_v58  ;;  %v2185_v58 = vld [vmem:[%s1859_s17] ss:$0 sm:$0xff] }
 0xb20   : > { %2447 = vmatprep.subr.bf16.mxu0 %v2702_v7 }
 0xb23   : > { %2448 = vmatpush3.bf16.msra.mxu0 %v2577_v59 }
 0xb24   : > { %2449 = vmatprep.subr.bf16.mxu0 %v2702_v7 }
 0xb27   : > { %2450 = vmatpush3.bf16.msra.mxu0 %v2578_v20 }
 0xba0   : > { %v1659_v60 = vpop.f32.mrb[48].mxu1 }
 0xba1   : > { %v2427_v9 = vpop.f32.mrb[49].mxu1 }
 0xba2   : > { %v1662_v46 = vpop.f32.mrb[50].mxu1 }
 0xba3   : > { %v2428_v47 = vpop.f32.mrb[51].mxu1 }
 0xba8   : > { %v1705_v53 = vpop.f32.mrb[52].mxu1 }
 0xba9   : > { %v1711_v61 = vpack.c.bf16 %v1705_v53, %v1659_v60  ;;  %v2433_v62 = vpop.f32.mrb[53].mxu1 }
 0xbaa   : > { %v1708_v29 = vpop.f32.mrb[54].mxu1 }
 0xbab   : > { %v2434_v63 = vpop.f32.mrb[55].mxu1  ;;  %2452 = vmatmul.mubr.bf16.vlgmr.msra.gmra.mrb[44].mxu0 %v1711_v61 }
 0xbdd   : > { %v1498_v17 = vpop.f32.mrb[40].mxu0 }
 0xbde   : > { %v1505_v0 = vadd.f32 %v1498_v17, %v3041_v31  ;;  %v2409_v1 = vpop.f32.mrb[41].mxu0 }
 0xbdf   : > { %v1501_v56 = vpop.f32.mrb[42].mxu0 }
 0xbe0   : > { %v1506_v2 = vadd.f32 %v1501_v56, %v3043_v34  ;;  %v2410_v26 = vpop.f32.mrb[43].mxu0 }
 0xc7e   : > { %v1794_v3 = vpop.f32.mrb[44].mxu0 }
 0xc7f   : > { %v1801_v4 = vadd.f32 %v1794_v3, %v1505_v0  ;;  %v2453_v5 = vpop.f32.mrb[45].mxu0 }
 0xc80   : > { %v1797_v6 = vpop.f32.mrb[46].mxu0 }
 0xc81   : > { %v1802_v8 = vadd.f32 %v1797_v6, %v1506_v2  ;;  %v2454_v10 = vpop.f32.mrb[47].mxu0  ;;  %v1803_v12 = vadd.f32 %v2691_v41, %v1801_v4 }
 0xc83   : > { %v1809_v16 = vsel %vm75_vm0, %v1803_v12, 0.0  ;;  %v1804_v18 = vadd.f32 %v2687_v44, %v1802_v8  ;;  %v2579_v44 = vld [vmem:[%s1854_s22] sm:$0xff]  }
 0xc84   : > { %1810 = vadd.xlane.f32.xlu0 %v1809_v16  ;;  %2456 = vmatpush3.bf16.msra.mxu1 %v2579_v44 }
 0xc85   : > { %v1812_v31 = vsel %vm75_vm0, %v1804_v18, 0.0  ;;  %2457 = vmatprep.subr.bf16.mxu1 %v2702_v7 }
 0xc86   : > { %1813 = vadd.xlane.f32.xlu1 %v1812_v31 }
 0xc88   : > { %2458 = vmatpush3.bf16.msra.mxu1 %v2580_v35 }
 0xc89   : > { %2463 = vmatprep.subr.bf16.mxu1 %v2702_v7 }
 0xd11   : > { %v1811_v21 = vpop.xlane.xlu0 %1810 }
 0xd12   : > { %v1815_v34 = vmul.f32 0.03125, %v1811_v21 }
 0xd13   : > { %v1814_v49 = vpop.xlane.xlu1 %1813 }
 0xd14   : > { %v1817_v22 = vsub.f32 %v1803_v12, %v1815_v34  ;;  %v1816_v24 = vmul.f32 0.03125, %v1814_v49 }
 0xd16   : > { %v1818_v25 = vsub.f32 %v1804_v18, %v1816_v24  ;;  %v1819_v28 = vmul.f32 %v1817_v22, %v1817_v22 }
 0xd18   : > { %v1821_v32 = vsel %vm75_vm0, %v1819_v28, 0.0  ;;  %v1820_v41 = vmul.f32 %v1818_v25, %v1818_v25 }
 0xd19   : > { %1822 = vadd.xlane.f32.xlu0 %v1821_v32 }
 0xd1a   : > { %v1824_v33 = vsel %vm75_vm0, %v1820_v41, 0.0 }
 0xd1b   : > { %1825 = vadd.xlane.f32.xlu1 %v1824_v33  ;;  %v2197_v33 = vld [vmem:[%s2016_s1] ss:$0 sm:$0xff] }
 0xda6   : > { %v1823_v36 = vpop.xlane.xlu0 %1822 }
 0xda7   : > { %v1827_v37 = vmul.f32 0.03125, %v1823_v36  ;;  %v2198_v36 = vld [vmem:[%s2018_s23] ss:$0 sm:$0xff] }
 0xda8   : > { %v1826_v38 = vpop.xlane.xlu1 %1825 }
 0xda9   : > { %v1829_v39 = vadd.f32 1e-06, %v1827_v37  ;;  %v1828_v40 = vmul.f32 0.03125, %v1826_v38 }
 0xdab   : > { %2617 = vrsqrt.f32 %v1829_v39  ;;  %v1830_v42 = vadd.f32 1e-06, %v1828_v40 }
 0xdad   : > { %2619 = vrsqrt.f32 %v1830_v42 }
 0xdb5   : > { %v2618_v19 = vpop.eup %2617 }
 0xdb6   : > { %v1833_v23 = vmul.f32 %v2618_v19, %v1817_v22 }
 0xdb7   : > { %v2620_v11 = vpop.eup %2619 }
 0xdb8   : > { %v1834_v45 = vmul.f32 %v2620_v11, %v1818_v25  ;;  %v1841_v48 = vmul.f32 %v2181_v43, %v1833_v23 }
 0xdba   : > { %v1842_v57 = vmul.f32 %v2181_v43, %v1834_v45  ;;  %v1849_v51 = vadd.f32 %v2182_v50, %v1841_v48 }
 0xdbc   : > { %v1850_v27 = vadd.f32 %v2182_v50, %v1842_v57 }
 0xdbe   : > { %v1851_v15 = vpack.c.bf16 %v1850_v27, %v1849_v51 }
 0xdc0   : > { %2460 = vmatmul.mubr.msk.bf16.vlgmr.msra.gmra.mrb[56].mxu1 %vm75_vm0, %v1851_v15 }
 0xdc1   : > { %2464 = vmatpush3.bf16.msra.mxu1 %v2581_v52  ;;  %2471 = vmatprep.mubr.msk.bf16.mxu1 %vm2703_vm3, %v2702_v7 }
 0xdc2   : > { %2465 = vmatprep.subr.bf16.mxu1 %v2702_v7 }
 0xdc5   : > { %2466 = vmatpush3.bf16.msra.mxu1 %v2582_v30 }
 0xdc6   : > { %2467 = vmatprep.subr.bf16.mxu1 %v2702_v7 }
 0xdc9   : > { %2468 = vmatpush3.bf16.msra.mxu1 %v2583_v54 }
 0xdca   : > { %2469 = vmatprep.subr.bf16.mxu1 %v2702_v7  ;;  %v2191_v7 = vld [vmem:[%s1937_s21] ss:$0 sm:$0xff] }
 0xdcd   : > { %2470 = vmatpush3.bf16.msra.mxu1 %v2584_v55 }
 0xe93   : > { %v1916_v59 = vpop.f32.mrb[56].mxu1 }
 0xe94   : > { %v1917_v20 = vadd.f32 %v2185_v58, %v1916_v59  ;;  %v2461_v60 = vpop.f32.mrb[57].mxu1 }
 0xe95   : > { %v1919_v9 = vpop.f32.mrb[58].mxu1 }
 0xe96   : > { %v1920_v46 = vadd.f32 %v2185_v58, %v1919_v9  ;;  %v2462_v47 = vpop.f32.mrb[59].mxu1  ;;  %v1923_v53 = vmax.f32 %v1917_v20, 0.0 }
 0xe98   : > { %v1924_v61 = vmax.f32 %v1920_v46, 0.0 }
 0xe9a   : > { %v1925_v62 = vpack.c.bf16 %v1924_v61, %v1923_v53 }
 0xe9c   : > { %2472 = vmatmul.mubr.msk.bf16.vlgmr.msra.gmra.mrb[60].mxu1 %vm1969_vm6, %v1925_v62 }
 0xf6f   : > { %v2007_v29 = vpop.f32.mrb[60].mxu1 }
 0xf70   : > { %v2008_v63 = vadd.f32 %v2191_v7, %v2007_v29  ;;  %v2473_v17 = vpop.f32.mrb[61].mxu1 }
 0xf71   : > { %v2010_v0 = vpop.f32.mrb[62].mxu1 }
 0xf72   : > { %v2011_v1 = vadd.f32 %v2191_v7, %v2010_v0  ;;  %v2474_v56 = vpop.f32.mrb[63].mxu1  ;;  %v2014_v2 = vadd.f32 %v2008_v63, %v1849_v51 }
 0xf74   : > { %v2020_v26 = vsel %vm75_vm0, %v2014_v2, 0.0  ;;  %v2015_v3 = vadd.f32 %v2011_v1, %v1850_v27 }
 0xf75   : > { %2021 = vadd.xlane.f32.xlu0 %v2020_v26 }
 0xf76   : > { %v2023_v4 = vsel %vm75_vm0, %v2015_v3, 0.0 }
 0xf77   : > { %2024 = vadd.xlane.f32.xlu1 %v2023_v4 }
0x1002   : > { %v2022_v5 = vpop.xlane.xlu0 %2021 }
0x1003   : > { %v2026_v6 = vmul.f32 0.03125, %v2022_v5 }
0x1004   : > { %v2025_v8 = vpop.xlane.xlu1 %2024 }
0x1005   : > { %v2028_v10 = vsub.f32 %v2014_v2, %v2026_v6  ;;  %v2027_v12 = vmul.f32 0.03125, %v2025_v8 }
0x1007   : > { %v2029_v16 = vsub.f32 %v2015_v3, %v2027_v12  ;;  %v2030_v18 = vmul.f32 %v2028_v10, %v2028_v10 }
0x1009   : > { %v2032_v31 = vsel %vm75_vm0, %v2030_v18, 0.0  ;;  %v2031_v21 = vmul.f32 %v2029_v16, %v2029_v16 }
0x100a   : > { %2033 = vadd.xlane.f32.xlu0 %v2032_v31 }
0x100b   : > { %v2035_v34 = vsel %vm75_vm0, %v2031_v21, 0.0 }
0x100c   : > { %2036 = vadd.xlane.f32.xlu1 %v2035_v34 }
0x1097   : > { %v2034_v49 = vpop.xlane.xlu0 %2033 }
0x1098   : > { %v2038_v22 = vmul.f32 0.03125, %v2034_v49 }
0x1099   : > { %v2037_v24 = vpop.xlane.xlu1 %2036 }
0x109a   : > { %v2040_v25 = vadd.f32 1e-06, %v2038_v22  ;;  %v2039_v28 = vmul.f32 0.03125, %v2037_v24 }
0x109c   : > { %2621 = vrsqrt.f32 %v2040_v25  ;;  %v2041_v32 = vadd.f32 1e-06, %v2039_v28 }
0x109e   : > { %2623 = vrsqrt.f32 %v2041_v32 }
0x10a6   : > { %v2622_v41 = vpop.eup %2621 }
0x10a7   : > { %v2044_v44 = vmul.f32 %v2622_v41, %v2028_v10 }
0x10a8   : > { %v2624_v35 = vpop.eup %2623 }
0x10a9   : > { %v2052_v37 = vmul.f32 %v2197_v33, %v2044_v44  ;;  %v2045_v38 = vmul.f32 %v2624_v35, %v2029_v16  ;;  %141 = sbr.rel (!%p139_p8) target bundleno = 341 (0x155), region = 101 }
0x10ab   : > { %v2060_v39 = vadd.f32 %v2198_v36, %v2052_v37   ;;  %v2053_v40 = vmul.f32 %v2197_v33, %v2045_v38 }
0x10ad   : > { %v2061_v42 = vadd.f32 %v2198_v36, %v2053_v40   ;;  %v3217_v41 = vmov %v2060_v39  ;;  %2062 = vst.msk [vmem:[#allocation5] sm:$0xff] (%p139_p8), %vm75_vm0, %v2060_v39 }
0x10af   : > { %v3216_v44 = vmov %v2061_v42  ;;  %2063 = vst.msk [vmem:[#allocation5 + $0x8] sm:$0xff] (%p139_p8), %vm75_vm0, %v2061_v42 }
0x10b0   :  { %2658 = shalt.err (!%p2655_p13)
}
0x10b1   :  { %s2659_s30 = scalar_lea.hbm %s3215_s15, 256 }
0x10b2   :  { %p2660_p0 = scmp.ne.s32.totalorder %s3215_s15, %s2659_s30  ;;  %p2663_p1 = scmp.lt.u32.totalorder %s2659_s30, %s3215_s15 }
0x10b4   :  { %p2665_p2 = pnand %p2663_p1, %p2660_p0 }
0x10b6   :  { %2668 = shalt.err (!%p2665_p2)
}
0x10b7   :  { %2075 = dma.vmem_to_hbm [thread:$0]  %s2070_s4, 256, %s3215_s15, [#allocation4], %s2698_s28, %s2698_s28, %s2699_s29  }
0x10b8   :  { %2683 = dma.done.wait [#allocation4], 256  }
0x10b9   :  { %2684 = vsyncadd [#allocation4], 4294967040 }
0x10ba   :  { %2079 = vsyncpa [#allocation3], 1 }
0x10bb   :  { %2080 = vsyncpa [#allocation4], 1 }

// kernel: encoder_forward.1
= control target key start
LH: loop header
LB: loop body
LE: loop exit
PB: predicated region body
PF: predicated region fallthrough
CT: control target
= control target key end

     0   :  { %20 = vsyncpa [#allocation3], 0  ;;  %s3200_s0 = inlined_call_operand.hbm [shape: f32[2,8,32], index: 0, kind: input, shape index: {}, may-alias: {0,15}]   ;;  %s3201_s1 = inlined_call_operand.vmem [shape: f32[8,32], index: 1, kind: input, shape index: {}]   ;;  %s3202_s2 = inlined_call_operand.vmem [shape: s32[2,1,8], index: 2, kind: input, shape index: {}]   ;;  %s3203_s3 = inlined_call_operand.vmem [shape: f32[1,32], index: 3, kind: input, shape index: {}]   ;;  %s3204_s4 = inlined_call_operand.vmem [shape: f32[1,32], index: 4, kind: input, shape index: {}]   ;;  %s3205_s5 = inlined_call_operand.vmem [shape: bf16[2,32,1536], index: 5, kind: input, shape index: {}]   ;;  %s3206_s6 = inlined_call_operand.vmem [shape: bf16[2,512,32], index: 6, kind: input, shape index: {}]   ;;  %s3207_s7 = inlined_call_operand.vmem [shape: f32[2,1,32], index: 7, kind: input, shape index: {}]   ;;  %s3208_s8 = inlined_call_operand.vmem [shape: f32[2,1,32], index: 8, kind: input, shape index: {}]   ;;  %s3209_s9 = inlined_call_operand.vmem [shape: bf16[2,32,64], index: 9, kind: input, shape index: {}]   ;;  %s3210_s10 = inlined_call_operand.vmem [shape: f32[2,1,64], index: 10, kind: input, shape index: {}]   ;;  %s3211_s11 = inlined_call_operand.vmem [shape: bf16[2,64,32], index: 11, kind: input, shape index: {}]   ;;  %s3212_s12 = inlined_call_operand.vmem [shape: f32[2,1,32], index: 12, kind: input, shape index: {}]   ;;  %s3213_s13 = inlined_call_operand.vmem [shape: f32[2,1,32], index: 13, kind: input, shape index: {}]   ;;  %s3214_s14 = inlined_call_operand.vmem [shape: f32[2,1,32], index: 14, kind: input, shape index: {}]   ;;  %s3215_s15 = inlined_call_operand.hbm [shape: f32[2,8,32], index: 15, kind: output, shape index: {}, may-alias: {0,15}]  }
   0x1   :  { %21 = vsyncpa [#allocation4], 0  ;;  %s2697_s18 = smov [#allocation2]   ;;  %s2625_s22 = scalar_lea.hbm %s3200_s0, 256 }
   0x2   :  { %s27_s19 = sshll.u32 %s2697_s18, 4  ;;  %p2626_p0 = scmp.ne.s32.totalorder %s3200_s0, %s2625_s22  ;;  %s28_s19 = int_to_ptr.vmem [resolvable:$true] %s27_s19 }
   0x3   :  { %p2629_p1 = scmp.lt.u32.totalorder %s2625_s22, %s3200_s0 }
   0x5   :  { %p2631_p2 = pnand %p2629_p1, %p2626_p0 }
   0x7   :  { %2634 = shalt.err (!%p2631_p2)
}
   0x8   :  { %s2635_s27 = scalar_lea.vmem %s28_s19, 256  ;;  %p2640_p4 = scmp.lt.s32.totalorder %s28_s19, %s28_s19 }
   0x9   :  { %p2636_p3 = scmp.ne.s32.totalorder %s28_s19, %s2635_s27  ;;  %p2641_p5 = scmp.lt.s32.totalorder %s2635_s27, %s2635_s27 }
   0xb   :  { %p2642_p6 = por %p2641_p5, %p2640_p4 }
   0xd   :  { %p2643_p7 = pnand %p2642_p6, %p2636_p3 }
   0xf   :  { %2646 = shalt.err (!%p2643_p7)
}
  0x10   :  { %s2698_s28 = smov 128   ;;  %s2699_s29 = smov 8  }
  0x11   :  { %33 = dma.hbm_to_vmem [thread:$0]  %s3200_s0, 256, %s28_s19, [#allocation3], %s2698_s28, %s2698_s28, %s2699_s29  }
  0x12   :  { %2681 = dma.done.wait [#allocation3], 256  }
  0x13   :  { %2682 = vsyncadd [#allocation3], 4294967040  ;;  %v127_v0 = vlaneseq  ;;  %v119_v3 = vld [vmem:[%s3202_s2] sm:$0x1]  ;;  %v120_v4 = vld [vmem:[%s3202_s2 + $0x1] sm:$0x1] }
  0x14   :  { %v66_v5 = vld [vmem:[#allocation2] sm:$0xff]  ;;  %vm75_vm0 = vcmask 261120   ;;  %vm121_vm1 = vcmp.eq.s32.totalorder %v119_v3, 0  ;;  %vm122_vm2 = vcmp.eq.s32.totalorder %v120_v4, 0  ;;  %v67_v8 = vld [vmem:[#allocation2 + $0x8] sm:$0xff]  ;;  %v2700_v9 = vmov 0.0  }
  0x15   :  { %v128_v1 = vshrl.u32 %v127_v0, 7  ;;  %v68_v6 = vmul.f32 5.656854, %v66_v5  ;;  %v70_v7 = vld [vmem:[%s3201_s1] sm:$0xff]  ;;  %v123_v10 = vsel %vm121_vm1, -1e+09, %v2700_v9 }
  0x16   :  { %v124_v11 = vsel %vm122_vm2, -1e+09, %v2700_v9  ;;  %v69_v12 = vmul.f32 5.656854, %v67_v8  ;;  %v2106_v36 = vld [vmem:[%s3203_s3] ss:$0 sm:$0xff] }
  0x17   :  { %v129_v2 = vsub.s32 0, %v128_v1  ;;  %v71_v15 = vadd.f32 %v70_v7, %v68_v6  ;;  %v2107_v38 = vld [vmem:[%s3204_s4] ss:$0 sm:$0xff]  ;;  %s2827_s24 = smov 0  }
  0x18   :  { %v72_v16 = vadd.f32 %v70_v7, %v69_v12 }
  0x19   :  { %v2809_v13 = vrot.slane %v123_v10, %v129_v2  ;;  %v2811_v14 = vrot.slane %v124_v11, %v129_v2  ;;  %v76_v17 = vsel %vm75_vm0, %v71_v15, 0.0 }
  0x1a   :  { %77 = vadd.xlane.f32.xlu0 %v76_v17  ;;  %v79_v18 = vsel %vm75_vm0, %v72_v16, 0.0 }
  0x1e   :  { %80 = vadd.xlane.f32.xlu0 %v79_v18 }
  0xa7   :  { %v78_v19 = vpop.xlane.xlu0 %77 }
  0xa8   :  { %v83_v20 = vmul.f32 0.03125, %v78_v19 }
  0xaa   :  { %v85_v21 = vsub.f32 %v71_v15, %v83_v20 }
  0xab   :  { %v81_v22 = vpop.xlane.xlu0 %80 }
  0xac   :  { %v84_v23 = vmul.f32 0.03125, %v81_v22  ;;  %v87_v24 = vmul.f32 %v85_v21, %v85_v21 }
  0xae   :  { %v86_v25 = vsub.f32 %v72_v16, %v84_v23  ;;  %v89_v26 = vsel %vm75_vm0, %v87_v24, 0.0 }
  0xaf   :  { %90 = vadd.xlane.f32.xlu1 %v89_v26 }
  0xb0   :  { %v88_v27 = vmul.f32 %v86_v25, %v86_v25 }
  0xb2   :  { %v92_v28 = vsel %vm75_vm0, %v88_v27, 0.0 }
  0xb3   :  { %93 = vadd.xlane.f32.xlu1 %v92_v28 }
 0x13c   :  { %v91_v29 = vpop.xlane.xlu1 %90 }
 0x13d   :  { %v95_v30 = vmul.f32 0.03125, %v91_v29 }
 0x13f   :  { %v97_v31 = vadd.f32 1e-06, %v95_v30 }
 0x140   :  { %v94_v32 = vpop.xlane.xlu1 %93 }
 0x141   :  { %2507 = vrsqrt.f32 %v97_v31  ;;  %v96_v33 = vmul.f32 0.03125, %v94_v32 }
 0x143   :  { %v98_v34 = vadd.f32 1e-06, %v96_v33 }
 0x145   :  { %2509 = vrsqrt.f32 %v98_v34 }
 0x14b   :  { %v2508_v35 = vpop.eup %2507 }
 0x14c   :  { %v101_v37 = vmul.f32 %v2508_v35, %v85_v21 }
 0x14e   :  { %v109_v39 = vmul.f32 %v2106_v36, %v101_v37 }
 0x14f   :  { %v2510_v40 = vpop.eup %2509 }
 0x150   :  { %v117_v41 = vadd.f32 %v2107_v38, %v109_v39   ;;  %v102_v42 = vmul.f32 %v2510_v40, %v86_v25 }
 0x152   :  { %v110_v43 = vmul.f32 %v2106_v36, %v102_v42 }
 0x154   :  { %v118_v44 = vadd.f32 %v2107_v38, %v110_v43  }
 0x155 LB: > { %v2701_v45 = vmov 0   ;;  %s2199_s3 = smul.u32 192, %s2695_s24  ;;  %s2200_s4 = sshll.u32 %s2695_s24, 8  ;;  %v145_v51 = vpack.c.bf16 %v2687_v44, %v2691_v41  ;;  %v2702_v7 = vmov 0.0   ;;  %vm2703_vm3 = vmmov 0   ;;  %s2695_s24 = sphi %s2827_s24, %s142_s24   ;;  %v2691_v41 = vphi %v117_v41, %v3217_v41   ;;  %v2687_v44 = vphi %v118_v44, %v3216_v44  }
 0x156   : > { %328 = vmatprep.mubr.bf16.mxu0 %v2701_v45  ;;  %371 = vmatprep.mubr.bf16.mxu1 %v2701_v45  ;;  %s2843_s27 = scalar_lea.vmem %s3206_s6, %s2200_s4  ;;  %vm737_vm4 = vcmask 1043456   ;;  %vm709_vm5 = vcmask 64512   ;;  %s2201_s18 = sshll.u32 %s2695_s24, 4  ;;  %vm1969_vm6 = vcmask 523264  }
 0x157   : > { %s2848_s17 = scalar_lea.vmem %s3205_s5, %s2199_s3  ;;  %s1854_s22 = scalar_lea.vmem %s3209_s9, %s2201_s18 }
 0x158   : > { %v2511_v46 = vld [vmem:[%s2848_s17 + $0x4] ss:$48 sps:$4 sm:$0xff]   ;;  %v2513_v47 = vld [vmem:[%s2848_s17] ss:$48 sps:$4 sm:$0xff]   ;;  %v2523_v52 = vld [vmem:[%s2848_s17 + $0xc] ss:$48 sps:$4 sm:$0xff]   ;;  %s1805_s4 = scalar_lea.vmem %s3207_s7, %s2695_s24  ;;  %s1937_s21 = scalar_lea.vmem %s3212_s12, %s2695_s24 }
 0x159   : > { %296 = vmatprep.subr.bf16.mxu0 %v2511_v46  ;;  %v2514_v48 = vld [vmem:[%s2848_s17 + $0x64] ss:$48 sps:$4 sm:$0xff]   ;;  %v2516_v49 = vld [vmem:[%s2848_s17 + $0x60] ss:$48 sps:$4 sm:$0xff]   ;;  %v2525_v53 = vld [vmem:[%s2848_s17 + $0x8] ss:$48 sps:$4 sm:$0xff]   ;;  %339 = vmatprep.subr.bf16.mxu1 %v2523_v52  ;;  %s2016_s1 = scalar_lea.vmem %s3213_s13, %s2695_s24  ;;  %s2018_s23 = scalar_lea.vmem %s3214_s14, %s2695_s24 }
 0x15a   : > { %297 = vmatpush1.bf16.msra.mxu0 %v2513_v47  ;;  %v2519_v50 = vld [vmem:[%s2848_s17 + $0x14] ss:$48 sps:$4 sm:$0xff]   ;;  %v2517_v54 = vld [vmem:[%s2848_s17 + $0x10] ss:$48 sps:$4 sm:$0xff]   ;;  %v2526_v55 = vld [vmem:[%s2848_s17 + $0x6c] ss:$48 sps:$4 sm:$0xff]   ;;  %340 = vmatpush1.bf16.msra.mxu1 %v2525_v53 }
 0x15b   : > { %298 = vmatprep.subr.bf16.mxu0 %v2514_v48  ;;  %v2522_v56 = vld [vmem:[%s2848_s17 + $0x74] ss:$48 sps:$4 sm:$0xff]   ;;  %v2528_v57 = vld [vmem:[%s2848_s17 + $0x68] ss:$48 sps:$4 sm:$0xff]   ;;  %341 = vmatprep.subr.bf16.mxu1 %v2526_v55  ;;  %v2531_v58 = vld [vmem:[%s2848_s17 + $0x1c] ss:$48 sps:$4 sm:$0xff]  }
 0x15c   : > { %v2520_v59 = vld [vmem:[%s2848_s17 + $0x70] ss:$48 sps:$4 sm:$0xff]   ;;  %v2529_v60 = vld [vmem:[%s2848_s17 + $0x18] ss:$48 sps:$4 sm:$0xff]   ;;  %v2534_v61 = vld [vmem:[%s2848_s17 + $0x7c] ss:$48 sps:$4 sm:$0xff]  }
 0x15d   : > { %v2537_v62 = vld [vmem:[%s2848_s17 + $0x24] ss:$48 sps:$4 sm:$0xff]   ;;  %v2535_v63 = vld [vmem:[%s2848_s17 + $0x20] ss:$48 sps:$4 sm:$0xff]   ;;  %v2532_v0 = vld [vmem:[%s2848_s17 + $0x78] ss:$48 sps:$4 sm:$0xff]  }
 0x15e   : > { %299 = vmatpush1.bf16.msra.mxu0 %v2516_v49  ;;  %342 = vmatpush1.bf16.msra.mxu1 %v2528_v57  ;;  %v2540_v1 = vld [vmem:[%s2848_s17 + $0x2c] ss:$48 sps:$4 sm:$0xff]   ;;  %v2538_v2 = vld [vmem:[%s2848_s17 + $0x28] ss:$48 sps:$4 sm:$0xff]   ;;  %v2543_v3 = vld [vmem:[%s2848_s17 + $0x84] ss:$48 sps:$4 sm:$0xff]  }
 0x15f   : > { %382 = vmatprep.subr.bf16.mxu0 %v2519_v50  ;;  %425 = vmatprep.subr.bf16.mxu1 %v2531_v58  ;;  %v2541_v4 = vld [vmem:[%s2848_s17 + $0x80] ss:$48 sps:$4 sm:$0xff]   ;;  %v2546_v5 = vld [vmem:[%s2848_s17 + $0x8c] ss:$48 sps:$4 sm:$0xff]   ;;  %v2544_v6 = vld [vmem:[%s2848_s17 + $0x88] ss:$48 sps:$4 sm:$0xff]   ;;  %s1859_s17 = scalar_lea.vmem %s3210_s10, %s2695_s24 }
 0x160   : > { %s2202_s0 = sshll.u32 %s2695_s24, 5 }
 0x161   : > { %2133 = vmatmul.mubr.msk.bf16.vlgmr.msra.gmra.mrb[0].mxu0 %vm75_vm0, %v145_v51  ;;  %2134 = vmatmul.mubr.msk.bf16.vlgmr.msra.gmra.mrb[0].mxu1 %vm75_vm0, %v145_v51  ;;  %s3136_s19 = scalar_lea.vmem %s3211_s11, %s2202_s0 }
 0x162   : > { %383 = vmatpush1.bf16.msra.mxu0 %v2517_v54  ;;  %414 = vmatprep.mubr.bf16.mxu0 %v2701_v45 }
 0x163   : > { %384 = vmatprep.subr.bf16.mxu0 %v2522_v56  ;;  %426 = vmatpush1.bf16.msra.mxu1 %v2529_v60 }
 0x164   : > { %457 = vmatprep.mubr.bf16.mxu1 %v2701_v45  ;;  %427 = vmatprep.subr.bf16.mxu1 %v2534_v61 }
 0x166   : > { %385 = vmatpush1.bf16.msra.mxu0 %v2520_v59 }
 0x167   : > { %468 = vmatprep.subr.bf16.mxu0 %v2537_v62  ;;  %428 = vmatpush1.bf16.msra.mxu1 %v2532_v0 }
 0x168   : > { %511 = vmatprep.subr.bf16.mxu1 %v2540_v1 }
 0x169   : > { %2135 = vmatmul.mubr.msk.bf16.vlgmr.msra.gmra.mrb[4].mxu0 %vm75_vm0, %v145_v51 }
 0x16a   : > { %469 = vmatpush1.bf16.msra.mxu0 %v2535_v63  ;;  %500 = vmatprep.mubr.bf16.mxu0 %v2701_v45 }
 0x16b   : > { %2136 = vmatmul.mubr.msk.bf16.vlgmr.msra.gmra.mrb[4].mxu1 %vm75_vm0, %v145_v51  ;;  %470 = vmatprep.subr.bf16.mxu0 %v2543_v3 }
 0x16c   : > { %512 = vmatpush1.bf16.msra.mxu1 %v2538_v2  ;;  %543 = vmatprep.mubr.bf16.mxu1 %v2701_v45 }
 0x16d   : > { %513 = vmatprep.subr.bf16.mxu1 %v2546_v5 }
 0x16e   : > { %471 = vmatpush1.bf16.msra.mxu0 %v2541_v4 }
 0x16f   : > { %2279 = vmatprep.subr.bf16.mxu0 %v2702_v7 }
 0x170   : > { %514 = vmatpush1.bf16.msra.mxu1 %v2544_v6 }
 0x171   : > { %2137 = vmatmul.mubr.msk.bf16.vlgmr.msra.gmra.mrb[8].mxu0 %vm75_vm0, %v145_v51  ;;  %2285 = vmatprep.subr.bf16.mxu1 %v2702_v7 }
 0x172   : > { %2281 = vmatprep.mubr.msk.bf16.mxu0 %vm2703_vm3, %v2702_v7 }
 0x173   : > { %2138 = vmatmul.mubr.msk.bf16.vlgmr.msra.gmra.mrb[8].mxu1 %vm75_vm0, %v145_v51 }
 0x174   : > { %2287 = vmatprep.mubr.msk.bf16.mxu1 %vm2703_vm3, %v2702_v7 }
 0x234   : > { %v330_v8 = vpop.f32.mrb[0].mxu0  ;;  %v2892_v12 = vpop.f32.mrb[0].mxu1 }
 0x235   : > { %v2888_v9 = vpop.f32.mrb[1].mxu0  ;;  %v2894_v15 = vpop.f32.mrb[1].mxu1  ;;  %v621_v24 = vmul.f32 0.35355338, %v330_v8 }
 0x236   : > { %v334_v10 = vpop.f32.mrb[2].mxu0  ;;  %v2896_v17 = vpop.f32.mrb[2].mxu1 }
 0x237   : > { %v2890_v11 = vpop.f32.mrb[3].mxu0  ;;  %v2900_v20 = vpop.f32.mrb[3].mxu1  ;;  %v622_v25 = vmul.f32 0.35355338, %v334_v10  ;;  %v623_v28 = vpack.c.bf16 %v621_v24, %v621_v24 }
 0x239   : > { %v624_v31 = vpack.c.bf16 %v622_v25, %v622_v25 }
 0x23c   : > { %v416_v16 = vpop.f32.mrb[4].mxu0 }
 0x23d   : > { %v625_v18 = vpack.c.bf16 %v416_v16, %v416_v16  ;;  %v2898_v19 = vpop.f32.mrb[5].mxu0 }
 0x23e   : > { %v420_v21 = vpop.f32.mrb[6].mxu0  ;;  %v2905_v26 = vpop.f32.mrb[4].mxu1 }
 0x23f   : > { %v626_v22 = vpack.c.bf16 %v420_v21, %v420_v21  ;;  %v2902_v23 = vpop.f32.mrb[7].mxu0  ;;  %2280 = vmatpush3.bf16.xpose.msra.mxu0 %v625_v18  ;;  %v2908_v27 = vpop.f32.mrb[5].mxu1 }
 0x240   : > { %2291 = vmatprep.subr.bf16.mxu0 %v2702_v7  ;;  %v2910_v29 = vpop.f32.mrb[6].mxu1 }
 0x241   : > { %2286 = vmatpush3.bf16.xpose.msra.mxu1 %v626_v22  ;;  %v2912_v30 = vpop.f32.mrb[7].mxu1 }
 0x242   : > { %2297 = vmatprep.subr.bf16.mxu1 %v2702_v7 }
 0x244   : > { %v502_v32 = vpop.f32.mrb[8].mxu0 }
 0x245   : > { %v627_v33 = vpack.c.bf16 %v502_v32, %v502_v32  ;;  %v504_v34 = vpop.f32.mrb[9].mxu0 }
 0x246   : > { %2282 = vmatmul.mubr.bf16.vlgmr.msra.gmra.mrb[12].mxu0 %v623_v28  ;;  %v545_v35 = vpop.f32.mrb[8].mxu1  ;;  %v834_v36 = vpack.c.bf16 %v504_v34, %v504_v34  ;;  %v506_v37 = vpop.f32.mrb[10].mxu0 }
 0x247   : > { %2293 = vmatprep.mubr.msk.bf16.mxu0 %vm2703_vm3, %v2702_v7  ;;  %v1217_v38 = vpack.c.bf16 %v545_v35, %v545_v35  ;;  %v547_v39 = vpop.f32.mrb[9].mxu1  ;;  %v739_v40 = vsel %vm737_vm4, %v627_v33, 0  ;;  %v628_v42 = vpack.c.bf16 %v506_v37, %v506_v37  ;;  %v508_v43 = vpop.f32.mrb[11].mxu0 }
 0x248   : > { %2288 = vmatmul.mubr.bf16.vlgmr.msra.gmra.mrb[12].mxu1 %v624_v31  ;;  %v1513_v45 = vpack.c.bf16 %v547_v39, %v547_v39  ;;  %v549_v46 = vpop.f32.mrb[10].mxu1  ;;  %v2920_v47 = vsel %vm737_vm4, %v834_v36, 0  ;;  %v835_v48 = vpack.c.bf16 %v508_v43, %v508_v43  ;;  %2292 = vmatpush3.bf16.msra.mxu0 %v739_v40  ;;  %v833_v40 = vpack.c.bf16 %v2902_v23, %v2902_v23 }
 0x249   : > { %2299 = vmatprep.mubr.msk.bf16.mxu1 %vm2703_vm3, %v2702_v7  ;;  %v2923_v49 = vsel %vm737_vm4, %v1217_v38, 0  ;;  %v1218_v50 = vpack.c.bf16 %v549_v46, %v549_v46  ;;  %v551_v51 = vpop.f32.mrb[11].mxu1  ;;  %v785_v52 = vsel %vm737_vm4, %v628_v42, 0  ;;  %2303 = vmatprep.subr.bf16.mxu0 %v2702_v7  ;;  %v832_v38 = vpack.c.bf16 %v2898_v19, %v2898_v19 }
 0x24a   : > { %v2928_v53 = vsel %vm737_vm4, %v1513_v45, 0  ;;  %v1514_v54 = vpack.c.bf16 %v551_v51, %v551_v51  ;;  %v990_v55 = vsel %vm737_vm4, %v835_v48, 0  ;;  %2298 = vmatpush3.bf16.msra.mxu1 %v785_v52  ;;  %v828_v42 = vmul.f32 0.35355338, %v2888_v9 }
 0x24b   : > { %v2932_v56 = vsel %vm737_vm4, %v1218_v50, 0  ;;  %2309 = vmatprep.subr.bf16.mxu1 %v2702_v7  ;;  %v829_v19 = vmul.f32 0.35355338, %v2890_v11 }
 0x24c   : > { %v2936_v57 = vsel %vm737_vm4, %v1514_v54, 0  ;;  %v830_v43 = vpack.c.bf16 %v828_v42, %v828_v42  ;;  %v2556_v42 = vld [vmem:[%s2843_s27 + $0x48] sm:$0xff]  }
 0x24d   : > { %v831_v23 = vpack.c.bf16 %v829_v19, %v829_v19  ;;  %v2550_v19 = vld [vmem:[%s2843_s27 + $0x18] sm:$0xff]  }
 0x319   : > { %v663_v58 = vpop.f32.mrb[12].mxu0 }
 0x31a   : > { %v664_v59 = vadd.f32 %v663_v58, %v2809_v13  ;;  %v2283_v60 = vpop.f32.mrb[13].mxu0 }
 0x31b   : > { %v666_v61 = vpop.f32.mrb[14].mxu0  ;;  %v703_v62 = vpop.f32.mrb[12].mxu1 }
 0x31c   : > { %v704_v63 = vadd.f32 %v703_v62, %v2811_v14  ;;  %v2284_v0 = vpop.f32.mrb[15].mxu0  ;;  %v2289_v1 = vpop.f32.mrb[13].mxu1  ;;  %v710_v2 = vsel %vm709_vm5, %v664_v59, -inf }
 0x31d   : > { %v706_v3 = vpop.f32.mrb[14].mxu1  ;;  %711 = vmax.xlane.f32.xlu1 %v710_v2 }
 0x31e   : > { %v2290_v4 = vpop.f32.mrb[15].mxu1  ;;  %v713_v5 = vsel %vm709_vm5, %v704_v63, -inf }
 0x31f   : > { %714 = vmax.xlane.f32.xlu0 %v713_v5 }
 0x3aa   : > { %v712_v6 = vpop.xlane.xlu1 %711 }
 0x3ab   : > { %v716_v8 = vsub.f32 %v664_v59, %v712_v6 }
 0x3ac   : > { %v715_v10 = vpop.xlane.xlu0 %714 }
 0x3ad   : > { %v718_v16 = vmul.f32 1.442695, %v716_v8  ;;  %v717_v18 = vsub.f32 %v704_v63, %v715_v10 }
 0x3af   : > { %2585 = vpow2.f32 %v718_v16  ;;  %v720_v21 = vmul.f32 1.442695, %v717_v18 }
 0x3b1   : > { %2587 = vpow2.f32 %v720_v21 }
 0x3b9   : > { %v2586_v22 = vpop.eup %2585 }
 0x3ba   : > { %v722_v24 = vsel %vm709_vm5, %v2586_v22, 0.0 }
 0x3bb   : > { %v2588_v25 = vpop.eup %2587  ;;  %723 = vadd.xlane.f32.xlu1 %v722_v24 }
 0x3bc   : > { %v725_v28 = vsel %vm709_vm5, %v2588_v25, 0.0 }
 0x3bd   : > { %726 = vadd.xlane.f32.xlu0 %v725_v28 }
 0x448   : > { %v724_v31 = vpop.xlane.xlu1 %723 }
 0x449   : > { %2589 = vrcp.f32 %v724_v31 }
 0x44a   : > { %v727_v32 = vpop.xlane.xlu0 %726 }
 0x44b   : > { %2591 = vrcp.f32 %v727_v32 }
 0x453   : > { %v2590_v33 = vpop.eup %2589 }
 0x454   : > { %v730_v34 = vmul.f32 %v2590_v33, %v2586_v22  ;;  %v2547_v33 = vld [vmem:[%s2843_s27] sm:$0xff]  }
 0x455   : > { %v2592_v35 = vpop.eup %2591 }
 0x456   : > { %v731_v36 = vmul.f32 %v2592_v35, %v2588_v25  ;;  %v732_v37 = vpack.c.bf16 %v730_v34, %v730_v34 }
 0x458   : > { %2294 = vmatmul.mubr.msk.bf16.vlgmr.msra.gmra.mrb[16].mxu0 %vm709_vm5, %v732_v37  ;;  %v733_v39 = vpack.c.bf16 %v731_v36, %v731_v36  ;;  %v2548_v37 = vld [vmem:[%s2843_s27 + $0x8] sm:$0xff]  }
 0x459   : > { %2304 = vmatpush3.bf16.xpose.msra.mxu0 %v832_v38  ;;  %2305 = vmatprep.mubr.msk.bf16.mxu0 %vm2703_vm3, %v2702_v7  ;;  %v2555_v38 = vld [vmem:[%s2843_s27 + $0x40] sm:$0xff]  }
 0x45a   : > { %2300 = vmatmul.mubr.msk.bf16.vlgmr.msra.gmra.mrb[16].mxu1 %vm709_vm5, %v733_v39  ;;  %2315 = vmatprep.subr.bf16.mxu0 %v2702_v7 }
 0x45b   : > { %2310 = vmatpush3.bf16.xpose.msra.mxu1 %v833_v40  ;;  %2311 = vmatprep.mubr.msk.bf16.mxu1 %vm2703_vm3, %v2702_v7  ;;  %v2549_v40 = vld [vmem:[%s2843_s27 + $0x10] sm:$0xff]  }
 0x45c   : > { %2321 = vmatprep.subr.bf16.mxu1 %v2702_v7 }
 0x460   : > { %2306 = vmatmul.mubr.bf16.vlgmr.msra.gmra.mrb[20].mxu0 %v830_v43  ;;  %v2557_v43 = vld [vmem:[%s2843_s27 + $0x50] sm:$0xff]  }
 0x461   : > { %2316 = vmatpush3.bf16.msra.mxu0 %v2920_v47  ;;  %2317 = vmatprep.mubr.msk.bf16.mxu0 %vm2703_vm3, %v2702_v7 }
 0x462   : > { %2312 = vmatmul.mubr.bf16.vlgmr.msra.gmra.mrb[20].mxu1 %v831_v23  ;;  %2327 = vmatprep.subr.bf16.mxu0 %v2702_v7  ;;  %v2551_v23 = vld [vmem:[%s2843_s27 + $0x20] sm:$0xff]  }
 0x463   : > { %2322 = vmatpush3.bf16.msra.mxu1 %v990_v55  ;;  %2323 = vmatprep.mubr.msk.bf16.mxu1 %vm2703_vm3, %v2702_v7 }
 0x464   : > { %2347 = vmatprep.subr.bf16.mxu1 %v2702_v7 }
 0x52b   : > { %v2965_v9 = vpop.f32.mrb[16].mxu0 }
 0x52c   : > { %v2295_v11 = vpop.f32.mrb[17].mxu0 }
 0x52d   : > { %v778_v45 = vpop.f32.mrb[18].mxu0  ;;  %v2967_v46 = vpop.f32.mrb[16].mxu1  ;;  %v2558_v11 = vld [vmem:[%s2843_s27 + $0x58] sm:$0xff]  }
 0x52e   : > { %v827_v47 = vpack.c.bf16 %v2967_v46, %v2965_v9  ;;  %v2296_v48 = vpop.f32.mrb[19].mxu0  ;;  %v2301_v50 = vpop.f32.mrb[17].mxu1  ;;  %v2552_v45 = vld [vmem:[%s2843_s27 + $0x28] sm:$0xff]  }
 0x52f   : > { %v824_v51 = vpop.f32.mrb[18].mxu1  ;;  %v2559_v48 = vld [vmem:[%s2843_s27 + $0x60] sm:$0xff]   ;;  %v2553_v50 = vld [vmem:[%s2843_s27 + $0x30] sm:$0xff]  }
 0x530   : > { %v2302_v52 = vpop.f32.mrb[19].mxu1  ;;  %v2560_v51 = vld [vmem:[%s2843_s27 + $0x68] sm:$0xff]  }
 0x531   : > { %v2554_v52 = vld [vmem:[%s2843_s27 + $0x38] sm:$0xff]  }
 0x533   : > { %v870_v54 = vpop.f32.mrb[20].mxu0 }
 0x534   : > { %v2307_v55 = vpop.f32.mrb[21].mxu0  ;;  %v871_v0 = vadd.f32 %v870_v54, %v2809_v13  ;;  %v2561_v54 = vld [vmem:[%s2843_s27 + $0x70] sm:$0xff]  }
 0x535   : > { %v873_v58 = vpop.f32.mrb[22].mxu0  ;;  %v910_v59 = vpop.f32.mrb[20].mxu1  ;;  %v2562_v55 = vld [vmem:[%s2843_s27 + $0x78] sm:$0xff]  }
 0x536   : > { %v911_v60 = vadd.f32 %v910_v59, %v2811_v14  ;;  %v2308_v61 = vpop.f32.mrb[23].mxu0  ;;  %v2313_v62 = vpop.f32.mrb[21].mxu1  ;;  %v916_v3 = vsel %vm709_vm5, %v871_v0, -inf  ;;  %v1216_v58 = vpack.c.bf16 %v2910_v29, %v2910_v29  ;;  %v1212_v59 = vmul.f32 0.35355338, %v2896_v17 }
 0x537   : > { %v913_v63 = vpop.f32.mrb[22].mxu1  ;;  %v1215_v17 = vpack.c.bf16 %v2905_v26, %v2905_v26 }
 0x538   : > { %v2314_v1 = vpop.f32.mrb[23].mxu1  ;;  %v919_v2 = vsel %vm709_vm5, %v911_v60, -inf }
 0x539   : > { %920 = vmax.xlane.f32.xlu0 %v919_v2 }
 0x53d   : > { %917 = vmax.xlane.f32.xlu0 %v916_v3 }
 0x5c6   : > { %v921_v4 = vpop.xlane.xlu0 %920 }
 0x5c7   : > { %v923_v5 = vsub.f32 %v911_v60, %v921_v4  ;;  %v1214_v60 = vpack.c.bf16 %v1212_v59, %v1212_v59 }
 0x5c9   : > { %v926_v6 = vmul.f32 1.442695, %v923_v5 }
 0x5ca   : > { %v918_v8 = vpop.xlane.xlu0 %917 }
 0x5cb   : > { %2593 = vpow2.f32 %v926_v6  ;;  %v922_v10 = vsub.f32 %v871_v0, %v918_v8 }
 0x5cd   : > { %v924_v16 = vmul.f32 1.442695, %v922_v10 }
 0x5cf   : > { %2595 = vpow2.f32 %v924_v16 }
 0x5d5   : > { %v2594_v18 = vpop.eup %2593 }
 0x5d6   : > { %v931_v21 = vsel %vm709_vm5, %v2594_v18, 0.0 }
 0x5d7   : > { %932 = vadd.xlane.f32.xlu1 %v931_v21 }
 0x5d9   : > { %v2596_v22 = vpop.eup %2595 }
 0x5da   : > { %v928_v24 = vsel %vm709_vm5, %v2596_v22, 0.0 }
 0x5db   : > { %929 = vadd.xlane.f32.xlu1 %v928_v24 }
 0x664   : > { %v933_v25 = vpop.xlane.xlu1 %932 }
 0x665   : > { %2597 = vrcp.f32 %v933_v25 }
 0x668   : > { %v930_v28 = vpop.xlane.xlu1 %929 }
 0x669   : > { %2599 = vrcp.f32 %v930_v28 }
 0x66f   : > { %v2598_v31 = vpop.eup %2597 }
 0x670   : > { %v937_v32 = vmul.f32 %v2598_v31, %v2594_v18 }
 0x672   : > { %v939_v34 = vpack.c.bf16 %v937_v32, %v937_v32 }
 0x673   : > { %v2600_v35 = vpop.eup %2599 }
 0x674   : > { %v936_v36 = vmul.f32 %v2600_v35, %v2596_v22  ;;  %2324 = vmatmul.mubr.msk.bf16.vlgmr.msra.gmra.mrb[24].mxu1 %vm709_vm5, %v939_v34 }
 0x675   : > { %2348 = vmatpush3.bf16.msra.mxu1 %v2547_v33  ;;  %2363 = vmatprep.mubr.msk.bf16.mxu1 %vm2703_vm3, %v2702_v7 }
 0x676   : > { %2349 = vmatprep.subr.bf16.mxu1 %v2702_v7  ;;  %v938_v39 = vpack.c.bf16 %v936_v36, %v936_v36 }
 0x678   : > { %2318 = vmatmul.mubr.msk.bf16.vlgmr.msra.gmra.mrb[24].mxu0 %vm709_vm5, %v938_v39 }
 0x679   : > { %2350 = vmatpush3.bf16.msra.mxu1 %v2548_v37  ;;  %2328 = vmatpush3.bf16.msra.mxu0 %v2555_v38 }
 0x67a   : > { %2351 = vmatprep.subr.bf16.mxu1 %v2702_v7  ;;  %2329 = vmatprep.subr.bf16.mxu0 %v2702_v7 }
 0x67b   : > { %2343 = vmatprep.mubr.msk.bf16.mxu0 %vm2703_vm3, %v2702_v7 }
 0x67d   : > { %2352 = vmatpush3.bf16.msra.mxu1 %v2549_v40  ;;  %2330 = vmatpush3.bf16.msra.mxu0 %v2556_v42 }
 0x67e   : > { %2353 = vmatprep.subr.bf16.mxu1 %v2702_v7  ;;  %2331 = vmatprep.subr.bf16.mxu0 %v2702_v7 }
 0x681   : > { %2354 = vmatpush3.bf16.msra.mxu1 %v2550_v19  ;;  %2332 = vmatpush3.bf16.msra.mxu0 %v2557_v43 }
 0x682   : > { %2355 = vmatprep.subr.bf16.mxu1 %v2702_v7  ;;  %2333 = vmatprep.subr.bf16.mxu0 %v2702_v7 }
 0x685   : > { %2356 = vmatpush3.bf16.msra.mxu1 %v2551_v23  ;;  %2334 = vmatpush3.bf16.msra.mxu0 %v2558_v11 }
 0x686   : > { %2357 = vmatprep.subr.bf16.mxu1 %v2702_v7  ;;  %2335 = vmatprep.subr.bf16.mxu0 %v2702_v7 }
 0x689   : > { %2358 = vmatpush3.bf16.msra.mxu1 %v2552_v45  ;;  %2336 = vmatpush3.bf16.msra.mxu0 %v2559_v48  ;;  %v1511_v45 = vpack.c.bf16 %v2908_v27, %v2908_v27  ;;  %v1507_v48 = vmul.f32 0.35355338, %v2894_v15  ;;  %v1508_v27 = vmul.f32 0.35355338, %v2900_v20 }
 0x68a   : > { %2359 = vmatprep.subr.bf16.mxu1 %v2702_v7  ;;  %2337 = vmatprep.subr.bf16.mxu0 %v2702_v7 }
 0x68d   : > { %2360 = vmatpush3.bf16.msra.mxu1 %v2553_v50  ;;  %2338 = vmatpush3.bf16.msra.mxu0 %v2560_v51  ;;  %v1509_v50 = vpack.c.bf16 %v1507_v48, %v1507_v48  ;;  %v1512_v51 = vpack.c.bf16 %v2912_v30, %v2912_v30 }
 0x68e   : > { %2361 = vmatprep.subr.bf16.mxu1 %v2702_v7  ;;  %2339 = vmatprep.subr.bf16.mxu0 %v2702_v7 }
 0x691   : > { %2362 = vmatpush3.bf16.msra.mxu1 %v2554_v52  ;;  %2340 = vmatpush3.bf16.msra.mxu0 %v2561_v54  ;;  %v1510_v52 = vpack.c.bf16 %v1508_v27, %v1508_v27 }
 0x692   : > { %2373 = vmatprep.subr.bf16.mxu1 %v2702_v7  ;;  %2341 = vmatprep.subr.bf16.mxu0 %v2702_v7 }
 0x694   : > { %2364 = vmatmul.mubr.bf16.vlgmr.msra.gmra.mrb[28].mxu1 %v827_v47 }
 0x695   : > { %2375 = vmatprep.mubr.msk.bf16.mxu1 %vm2703_vm3, %v2702_v7  ;;  %2342 = vmatpush3.bf16.msra.mxu0 %v2562_v55 }
 0x696   : > { %2367 = vmatprep.subr.bf16.mxu0 %v2702_v7 }
 0x69a   : > { %2374 = vmatpush3.bf16.xpose.msra.mxu1 %v1216_v58 }
 0x69b   : > { %2385 = vmatprep.subr.bf16.mxu1 %v2702_v7 }
 0x6a1   : > { %2376 = vmatmul.mubr.bf16.vlgmr.msra.gmra.mrb[32].mxu1 %v1214_v60 }
 0x6a2   : > { %2386 = vmatpush3.bf16.msra.mxu1 %v2932_v56  ;;  %2387 = vmatprep.mubr.msk.bf16.mxu1 %vm2703_vm3, %v2702_v7  ;;  %v1211_v56 = vmul.f32 0.35355338, %v2892_v12 }
 0x6a3   : > { %2411 = vmatprep.subr.bf16.mxu1 %v2702_v7 }
 0x6a4   : > { %v1213_v2 = vpack.c.bf16 %v1211_v56, %v1211_v56 }
 0x747   : > { %v1026_v9 = vpop.f32.mrb[24].mxu1 }
 0x748   : > { %v2325_v46 = vpop.f32.mrb[25].mxu1 }
 0x749   : > { %v1029_v47 = vpop.f32.mrb[26].mxu1 }
 0x74a   : > { %v2326_v61 = vpop.f32.mrb[27].mxu1 }
 0x74b   : > { %v980_v62 = vpop.f32.mrb[24].mxu0 }
 0x74c   : > { %v1032_v29 = vpack.c.bf16 %v1026_v9, %v980_v62  ;;  %v2319_v63 = vpop.f32.mrb[25].mxu0 }
 0x74d   : > { %v983_v0 = vpop.f32.mrb[26].mxu0 }
 0x74e   : > { %v2320_v1 = vpop.f32.mrb[27].mxu0  ;;  %2344 = vmatmul.mubr.bf16.vlgmr.msra.gmra.mrb[28].mxu0 %v1032_v29 }
 0x74f   : > { %2368 = vmatpush3.bf16.xpose.msra.mxu0 %v1215_v17  ;;  %2369 = vmatprep.mubr.msk.bf16.mxu0 %vm2703_vm3, %v2702_v7 }
 0x750   : > { %2379 = vmatprep.subr.bf16.mxu0 %v2702_v7 }
 0x756   : > { %2370 = vmatmul.mubr.bf16.vlgmr.msra.gmra.mrb[32].mxu0 %v1213_v2 }
 0x757   : > { %2380 = vmatpush3.bf16.msra.mxu0 %v2923_v49  ;;  %2381 = vmatprep.mubr.msk.bf16.mxu0 %vm2703_vm3, %v2702_v7 }
 0x758   : > { %2391 = vmatprep.subr.bf16.mxu0 %v2702_v7 }
 0x767   : > { %v1204_v26 = vpop.f32.mrb[28].mxu1 }
 0x768   : > { %v2365_v3 = vpop.f32.mrb[29].mxu1 }
 0x769   : > { %v1207_v4 = vpop.f32.mrb[30].mxu1 }
 0x76a   : > { %v2366_v5 = vpop.f32.mrb[31].mxu1 }
 0x774   : > { %v1293_v6 = vpop.f32.mrb[32].mxu1 }
 0x775   : > { %v1294_v8 = vadd.f32 %v1293_v6, %v2811_v14  ;;  %v2377_v10 = vpop.f32.mrb[33].mxu1 }
 0x776   : > { %v1296_v12 = vpop.f32.mrb[34].mxu1 }
 0x777   : > { %v2378_v16 = vpop.f32.mrb[35].mxu1  ;;  %v1302_v18 = vsel %vm709_vm5, %v1294_v8, -inf }
 0x778   : > { %1303 = vmax.xlane.f32.xlu0 %v1302_v18 }
 0x805   : > { %v1304_v21 = vpop.xlane.xlu0 %1303 }
 0x806   : > { %v1306_v49 = vsub.f32 %v1294_v8, %v1304_v21 }
 0x808   : > { %v1309_v22 = vmul.f32 1.442695, %v1306_v49 }
 0x80a   : > { %2601 = vpow2.f32 %v1309_v22 }
 0x814   : > { %v2602_v24 = vpop.eup %2601 }
 0x815   : > { %v1314_v25 = vsel %vm709_vm5, %v2602_v24, 0.0 }
 0x816   : > { %1315 = vadd.xlane.f32.xlu1 %v1314_v25  ;;  %v2563_v25 = vld [vmem:[%s2843_s27 + $0x80] sm:$0xff]  }
 0x821   : > { %v1115_v28 = vpop.f32.mrb[28].mxu0 }
 0x822   : > { %v3041_v31 = vadd.f32 %v1204_v26, %v1115_v28  ;;  %v2345_v32 = vpop.f32.mrb[29].mxu0  ;;  %v2564_v28 = vld [vmem:[%s2843_s27 + $0x88] sm:$0xff]  }
 0x823   : > { %v1118_v33 = vpop.f32.mrb[30].mxu0  ;;  %v2565_v32 = vld [vmem:[%s2843_s27 + $0x90] sm:$0xff]  }
 0x824   : > { %v3043_v34 = vadd.f32 %v1207_v4, %v1118_v33  ;;  %v2346_v35 = vpop.f32.mrb[31].mxu0  ;;  %v2566_v33 = vld [vmem:[%s2843_s27 + $0x98] sm:$0xff]  }
 0x825   : > { %v2567_v35 = vld [vmem:[%s2843_s27 + $0xa0] sm:$0xff]  }
 0x829   : > { %v1253_v36 = vpop.f32.mrb[32].mxu0 }
 0x82a   : > { %v1254_v37 = vadd.f32 %v1253_v36, %v2809_v13  ;;  %v2371_v38 = vpop.f32.mrb[33].mxu0  ;;  %v2568_v36 = vld [vmem:[%s2843_s27 + $0xa8] sm:$0xff]  }
 0x82b   : > { %v1256_v39 = vpop.f32.mrb[34].mxu0  ;;  %v2570_v38 = vld [vmem:[%s2843_s27 + $0xb8] sm:$0xff]  }
 0x82c   : > { %v2372_v40 = vpop.f32.mrb[35].mxu0  ;;  %v1299_v42 = vsel %vm709_vm5, %v1254_v37, -inf }
 0x82d   : > { %1300 = vmax.xlane.f32.xlu0 %v1299_v42 }
 0x8a3   : > { %v1316_v19 = vpop.xlane.xlu1 %1315 }
 0x8a4   : > { %2603 = vrcp.f32 %v1316_v19 }
 0x8ae   : > { %v2604_v43 = vpop.eup %2603 }
 0x8af   : > { %v1320_v23 = vmul.f32 %v2604_v43, %v2602_v24 }
 0x8b1   : > { %v1322_v11 = vpack.c.bf16 %v1320_v23, %v1320_v23 }
 0x8b3   : > { %2388 = vmatmul.mubr.msk.bf16.vlgmr.msra.gmra.mrb[36].mxu1 %vm709_vm5, %v1322_v11 }
 0x8b4   : > { %2412 = vmatpush3.bf16.xpose.msra.mxu1 %v1511_v45  ;;  %2413 = vmatprep.mubr.msk.bf16.mxu1 %vm2703_vm3, %v2702_v7 }
 0x8b5   : > { %2417 = vmatprep.subr.bf16.mxu1 %v2702_v7 }
 0x8ba   : > { %v1301_v15 = vpop.xlane.xlu0 %1300 }
 0x8bb   : > { %2414 = vmatmul.mubr.bf16.vlgmr.msra.gmra.mrb[40].mxu1 %v1509_v50  ;;  %v1305_v30 = vsub.f32 %v1254_v37, %v1301_v15  ;;  %v2569_v37 = vld [vmem:[%s2843_s27 + $0xb0] sm:$0xff]   ;;  %v2571_v50 = vld [vmem:[%s2843_s27 + $0xc0] sm:$0xff]   ;;  %v2572_v15 = vld [vmem:[%s2843_s27 + $0xc8] sm:$0xff]  }
 0x8bc   : > { %2418 = vmatpush3.bf16.xpose.msra.mxu1 %v1512_v51  ;;  %2419 = vmatprep.mubr.msk.bf16.mxu1 %vm2703_vm3, %v2702_v7 }
 0x8bd   : > { %2423 = vmatprep.subr.bf16.mxu1 %v2702_v7  ;;  %v1307_v54 = vmul.f32 1.442695, %v1305_v30  ;;  %v2573_v30 = vld [vmem:[%s2843_s27 + $0xd0] sm:$0xff]  }
 0x8bf   : > { %2605 = vpow2.f32 %v1307_v54  ;;  %v2574_v54 = vld [vmem:[%s2843_s27 + $0xd8] sm:$0xff]  }
 0x8c3   : > { %2420 = vmatmul.mubr.bf16.vlgmr.msra.gmra.mrb[44].mxu1 %v1510_v52 }
 0x8c4   : > { %2424 = vmatpush3.bf16.msra.mxu1 %v2928_v53  ;;  %2425 = vmatprep.mubr.msk.bf16.mxu1 %vm2703_vm3, %v2702_v7 }
 0x8c5   : > { %2429 = vmatprep.subr.bf16.mxu1 %v2702_v7 }
 0x8c9   : > { %v2606_v62 = vpop.eup %2605 }
 0x8ca   : > { %v1311_v29 = vsel %vm709_vm5, %v2606_v62, 0.0 }
 0x986   : > { %v3064_v55 = vpop.f32.mrb[36].mxu1 }
 0x987   : > { %v2389_v58 = vpop.f32.mrb[37].mxu1 }
 0x988   : > { %v1412_v59 = vpop.f32.mrb[38].mxu1  ;;  %v2576_v58 = vld [vmem:[%s2843_s27 + $0xe8] sm:$0xff]  }
 0x989   : > { %v2390_v20 = vpop.f32.mrb[39].mxu1  ;;  %v2577_v59 = vld [vmem:[%s2843_s27 + $0xf0] sm:$0xff]  }
 0x98a   : > { %v2578_v20 = vld [vmem:[%s2843_s27 + $0xf8] sm:$0xff]  }
 0x98e   : > { %v1549_v60 = vpop.f32.mrb[40].mxu1 }
 0x98f   : > { %v1550_v9 = vadd.f32 %v1549_v60, %v2809_v13  ;;  %v2415_v46 = vpop.f32.mrb[41].mxu1 }
 0x990   : > { %v1552_v47 = vpop.f32.mrb[42].mxu1 }
 0x991   : > { %v2416_v53 = vpop.f32.mrb[43].mxu1  ;;  %v1595_v61 = vsel %vm709_vm5, %v1550_v9, -inf }
 0x992   : > { %1596 = vmax.xlane.f32.xlu1 %v1595_v61 }
 0x996   : > { %v1589_v63 = vpop.f32.mrb[44].mxu1  ;;  %1312 = vadd.xlane.f32.xlu1 %v1311_v29 }
 0x997   : > { %v1590_v17 = vadd.f32 %v1589_v63, %v2811_v14  ;;  %v2421_v0 = vpop.f32.mrb[45].mxu1 }
 0x998   : > { %v1592_v1 = vpop.f32.mrb[46].mxu1 }
 0x999   : > { %v2422_v56 = vpop.f32.mrb[47].mxu1  ;;  %v1598_v2 = vsel %vm709_vm5, %v1590_v17, -inf }
 0x99a   : > { %1599 = vmax.xlane.f32.xlu0 %v1598_v2 }
 0xa1f   : > { %v1597_v26 = vpop.xlane.xlu1 %1596 }
 0xa20   : > { %v1601_v3 = vsub.f32 %v1550_v9, %v1597_v26 }
 0xa22   : > { %v1603_v4 = vmul.f32 1.442695, %v1601_v3 }
 0xa23   : > { %v1313_v5 = vpop.xlane.xlu1 %1312 }
 0xa24   : > { %2607 = vpow2.f32 %v1603_v4 }
 0xa25   : > { %2609 = vrcp.f32 %v1313_v5 }
 0xa27   : > { %v1600_v6 = vpop.xlane.xlu0 %1599 }
 0xa28   : > { %v1602_v8 = vsub.f32 %v1590_v17, %v1600_v6 }
 0xa2a   : > { %v1605_v10 = vmul.f32 1.442695, %v1602_v8 }
 0xa2c   : > { %2611 = vpow2.f32 %v1605_v10 }
 0xa2e   : > { %v2608_v12 = vpop.eup %2607 }
 0xa2f   : > { %v2610_v16 = vpop.eup %2609  ;;  %v1607_v18 = vsel %vm709_vm5, %v2608_v12, 0.0 }
 0xa30   : > { %v1319_v21 = vmul.f32 %v2610_v16, %v2606_v62  ;;  %1608 = vadd.xlane.f32.xlu0 %v1607_v18 }
 0xa32   : > { %v1321_v49 = vpack.c.bf16 %v1319_v21, %v1319_v21 }
 0xa34   : > { %2382 = vmatmul.mubr.msk.bf16.vlgmr.msra.gmra.mrb[36].mxu0 %vm709_vm5, %v1321_v49 }
 0xa35   : > { %2407 = vmatprep.mubr.msk.bf16.mxu0 %vm2703_vm3, %v2702_v7  ;;  %2392 = vmatpush3.bf16.msra.mxu0 %v2563_v25 }
 0xa36   : > { %v2612_v22 = vpop.eup %2611  ;;  %2393 = vmatprep.subr.bf16.mxu0 %v2702_v7 }
 0xa37   : > { %v1610_v24 = vsel %vm709_vm5, %v2612_v22, 0.0 }
 0xa38   : > { %1611 = vadd.xlane.f32.xlu1 %v1610_v24 }
 0xa39   : > { %2394 = vmatpush3.bf16.msra.mxu0 %v2564_v28 }
 0xa3a   : > { %2395 = vmatprep.subr.bf16.mxu0 %v2702_v7 }
 0xa3d   : > { %2396 = vmatpush3.bf16.msra.mxu0 %v2565_v32 }
 0xa3e   : > { %2397 = vmatprep.subr.bf16.mxu0 %v2702_v7 }
 0xa41   : > { %2398 = vmatpush3.bf16.msra.mxu0 %v2566_v33 }
 0xa42   : > { %2399 = vmatprep.subr.bf16.mxu0 %v2702_v7 }
 0xa45   : > { %2400 = vmatpush3.bf16.msra.mxu0 %v2567_v35  ;;  %v2580_v35 = vld [vmem:[%s1854_s22 + $0x8] sm:$0xff]  }
 0xa46   : > { %2401 = vmatprep.subr.bf16.mxu0 %v2702_v7 }
 0xa49   : > { %2402 = vmatpush3.bf16.msra.mxu0 %v2568_v36 }
 0xa4a   : > { %2403 = vmatprep.subr.bf16.mxu0 %v2702_v7 }
 0xa4d   : > { %2404 = vmatpush3.bf16.msra.mxu0 %v2569_v37 }
 0xa4e   : > { %2405 = vmatprep.subr.bf16.mxu0 %v2702_v7 }
 0xa51   : > { %2406 = vmatpush3.bf16.msra.mxu0 %v2570_v38 }
 0xa52   : > { %2435 = vmatprep.subr.bf16.mxu0 %v2702_v7 }
 0xabd   : > { %v1609_v39 = vpop.xlane.xlu0 %1608 }
 0xabe   : > { %2613 = vrcp.f32 %v1609_v39 }
 0xac5   : > { %v1612_v40 = vpop.xlane.xlu1 %1611 }
 0xac6   : > { %2615 = vrcp.f32 %v1612_v40 }
 0xac8   : > { %v2614_v42 = vpop.eup %2613 }
 0xac9   : > { %v1615_v19 = vmul.f32 %v2614_v42, %v2608_v12 }
 0xacb   : > { %v1617_v43 = vpack.c.bf16 %v1615_v19, %v1615_v19 }
 0xacd   : > { %2426 = vmatmul.mubr.msk.bf16.vlgmr.msra.gmra.mrb[48].mxu1 %vm709_vm5, %v1617_v43  ;;  %v2181_v43 = vld [vmem:[%s1805_s4] ss:$0 sm:$0xff] }
 0xace   : > { %2430 = vmatpush3.bf16.msra.mxu1 %v2936_v57  ;;  %2431 = vmatprep.mubr.msk.bf16.mxu1 %vm2703_vm3, %v2702_v7 }
 0xacf   : > { %2455 = vmatprep.subr.bf16.mxu1 %v2702_v7 }
 0xad0   : > { %v2616_v23 = vpop.eup %2615 }
 0xad1   : > { %v1616_v11 = vmul.f32 %v2616_v23, %v2612_v22 }
 0xad3   : > { %v1618_v45 = vpack.c.bf16 %v1616_v11, %v1616_v11 }
 0xad5   : > { %2432 = vmatmul.mubr.msk.bf16.vlgmr.msra.gmra.mrb[52].mxu1 %vm709_vm5, %v1618_v45 }
 0xad6   : > { %2459 = vmatprep.mubr.msk.bf16.mxu1 %vm2703_vm3, %v2702_v7 }
 0xb07   : > { %v1363_v48 = vpop.f32.mrb[36].mxu0 }
 0xb08   : > { %v1415_v57 = vpack.c.bf16 %v3064_v55, %v1363_v48  ;;  %v2383_v51 = vpop.f32.mrb[37].mxu0  ;;  %v2575_v55 = vld [vmem:[%s2843_s27 + $0xe0] sm:$0xff]   ;;  %s1807_s27 = scalar_lea.vmem %s3208_s8, %s2695_s24  ;;  %s142_s24 = sadd.s32 1, %s2695_s24  }
 0xb09   : > { %v1366_v27 = vpop.f32.mrb[38].mxu0  ;;  %p139_p8 = scmp.ge.s32.totalorder %s142_s24, 2  }
 0xb0a   : > { %v2384_v52 = vpop.f32.mrb[39].mxu0  ;;  %2408 = vmatmul.mubr.bf16.vlgmr.msra.gmra.mrb[40].mxu0 %v1415_v57  ;;  %s2704_s3 = smov (%p139_p8), [#allocation5]  }
 0xb0b   : > { %2436 = vmatpush3.bf16.msra.mxu0 %v2571_v50  ;;  %2451 = vmatprep.mubr.msk.bf16.mxu0 %vm2703_vm3, %v2702_v7  ;;  %v2182_v50 = vld [vmem:[%s1807_s27] ss:$0 sm:$0xff]  ;;  %s2069_s4 = sshll.u32 (%p139_p8), %s2704_s3, 4  ;;  %s2070_s4 = int_to_ptr.vmem [resolvable:$true] %s2069_s4 }
 0xb0c   : > { %2437 = vmatprep.subr.bf16.mxu0 %v2702_v7  ;;  %v2581_v52 = vld [vmem:[%s3136_s19] sm:$0xff]   ;;  %s2647_s25 = scalar_lea.vmem (%p139_p8), %s2070_s4, 256  ;;  %p2652_p10 = scmp.lt.s32.totalorder (%p139_p8), %s2070_s4, %s2070_s4 }
 0xb0d   :  { %p2648_p9 = scmp.ne.s32.totalorder (%p139_p8), %s2070_s4, %s2647_s25  ;;  %p2653_p11 = scmp.lt.s32.totalorder (%p139_p8), %s2647_s25, %s2647_s25 }
 0xb0f   : > { %2438 = vmatpush3.bf16.msra.mxu0 %v2572_v15  ;;  %p2654_p12 = por (%p139_p8), %p2653_p11, %p2652_p10 }
 0xb10   : > { %2439 = vmatprep.subr.bf16.mxu0 %v2702_v7 }
 0xb11   :  { %p2655_p13 = pnand (%p139_p8), %p2654_p12, %p2648_p9 }
 0xb13   : > { %2440 = vmatpush3.bf16.msra.mxu0 %v2573_v30  ;;  %v2582_v30 = vld [vmem:[%s3136_s19 + $0x8] sm:$0xff]  }
 0xb14   : > { %2441 = vmatprep.subr.bf16.mxu0 %v2702_v7 }
 0xb17   : > { %2442 = vmatpush3.bf16.msra.mxu0 %v2574_v54  ;;  %v2583_v54 = vld [vmem:[%s3136_s19 + $0x10] sm:$0xff]  }
 0xb18   : > { %2443 = vmatprep.subr.bf16.mxu0 %v2702_v7 }
 0xb1b   : > { %2444 = vmatpush3.bf16.msra.mxu0 %v2575_v55  ;;  %v2584_v55 = vld [vmem:[%s3136_s19 + $0x18] sm:$0xff]  }
 0xb1c   : > { %2445 = vmatprep.subr.bf16.mxu0 %v2702_v7 }
 0xb1f   : > { %2446 = vmatpush3.bf16.msra.mxu0 %v2576_v58  ;;  %v2185_v58 = vld [vmem:[%s1859_s17] ss:$0 sm:$0xff] }
 0xb20   : > { %2447 = vmatprep.subr.bf16.mxu0 %v2702_v7 }
 0xb23   : > { %2448 = vmatpush3.bf16.msra.mxu0 %v2577_v59 }
 0xb24   : > { %2449 = vmatprep.subr.bf16.mxu0 %v2702_v7 }
 0xb27   : > { %2450 = vmatpush3.bf16.msra.mxu0 %v2578_v20 }
 0xba0   : > { %v1659_v60 = vpop.f32.mrb[48].mxu1 }
 0xba1   : > { %v2427_v9 = vpop.f32.mrb[49].mxu1 }
 0xba2   : > { %v1662_v46 = vpop.f32.mrb[50].mxu1 }
 0xba3   : > { %v2428_v47 = vpop.f32.mrb[51].mxu1 }
 0xba8   : > { %v1705_v53 = vpop.f32.mrb[52].mxu1 }
 0xba9   : > { %v1711_v61 = vpack.c.bf16 %v1705_v53, %v1659_v60  ;;  %v2433_v62 = vpop.f32.mrb[53].mxu1 }
 0xbaa   : > { %v1708_v29 = vpop.f32.mrb[54].mxu1 }
 0xbab   : > { %v2434_v63 = vpop.f32.mrb[55].mxu1  ;;  %2452 = vmatmul.mubr.bf16.vlgmr.msra.gmra.mrb[44].mxu0 %v1711_v61 }
 0xbdd   : > { %v1498_v17 = vpop.f32.mrb[40].mxu0 }
 0xbde   : > { %v1505_v0 = vadd.f32 %v1498_v17, %v3041_v31  ;;  %v2409_v1 = vpop.f32.mrb[41].mxu0 }
 0xbdf   : > { %v1501_v56 = vpop.f32.mrb[42].mxu0 }
 0xbe0   : > { %v1506_v2 = vadd.f32 %v1501_v56, %v3043_v34  ;;  %v2410_v26 = vpop.f32.mrb[43].mxu0 }
 0xc7e   : > { %v1794_v3 = vpop.f32.mrb[44].mxu0 }
 0xc7f   : > { %v1801_v4 = vadd.f32 %v1794_v3, %v1505_v0  ;;  %v2453_v5 = vpop.f32.mrb[45].mxu0 }
 0xc80   : > { %v1797_v6 = vpop.f32.mrb[46].mxu0 }
 0xc81   : > { %v1802_v8 = vadd.f32 %v1797_v6, %v1506_v2  ;;  %v2454_v10 = vpop.f32.mrb[47].mxu0  ;;  %v1803_v12 = vadd.f32 %v2691_v41, %v1801_v4 }
 0xc83   : > { %v1809_v16 = vsel %vm75_vm0, %v1803_v12, 0.0  ;;  %v1804_v18 = vadd.f32 %v2687_v44, %v1802_v8  ;;  %v2579_v44 = vld [vmem:[%s1854_s22] sm:$0xff]  }
 0xc84   : > { %1810 = vadd.xlane.f32.xlu0 %v1809_v16  ;;  %2456 = vmatpush3.bf16.msra.mxu1 %v2579_v44 }
 0xc85   : > { %v1812_v31 = vsel %vm75_vm0, %v1804_v18, 0.0  ;;  %2457 = vmatprep.subr.bf16.mxu1 %v2702_v7 }
 0xc86   : > { %1813 = vadd.xlane.f32.xlu1 %v1812_v31 }
 0xc88   : > { %2458 = vmatpush3.bf16.msra.mxu1 %v2580_v35 }
 0xc89   : > { %2463 = vmatprep.subr.bf16.mxu1 %v2702_v7 }
 0xd11   : > { %v1811_v21 = vpop.xlane.xlu0 %1810 }
 0xd12   : > { %v1815_v34 = vmul.f32 0.03125, %v1811_v21 }
 0xd13   : > { %v1814_v49 = vpop.xlane.xlu1 %1813 }
 0xd14   : > { %v1817_v22 = vsub.f32 %v1803_v12, %v1815_v34  ;;  %v1816_v24 = vmul.f32 0.03125, %v1814_v49 }
 0xd16   : > { %v1818_v25 = vsub.f32 %v1804_v18, %v1816_v24  ;;  %v1819_v28 = vmul.f32 %v1817_v22, %v1817_v22 }
 0xd18   : > { %v1821_v32 = vsel %vm75_vm0, %v1819_v28, 0.0  ;;  %v1820_v41 = vmul.f32 %v1818_v25, %v1818_v25 }
 0xd19   : > { %1822 = vadd.xlane.f32.xlu0 %v1821_v32 }
 0xd1a   : > { %v1824_v33 = vsel %vm75_vm0, %v1820_v41, 0.0 }
 0xd1b   : > { %1825 = vadd.xlane.f32.xlu1 %v1824_v33  ;;  %v2197_v33 = vld [vmem:[%s2016_s1] ss:$0 sm:$0xff] }
 0xda6   : > { %v1823_v36 = vpop.xlane.xlu0 %1822 }
 0xda7   : > { %v1827_v37 = vmul.f32 0.03125, %v1823_v36  ;;  %v2198_v36 = vld [vmem:[%s2018_s23] ss:$0 sm:$0xff] }
 0xda8   : > { %v1826_v38 = vpop.xlane.xlu1 %1825 }
 0xda9   : > { %v1829_v39 = vadd.f32 1e-06, %v1827_v37  ;;  %v1828_v40 = vmul.f32 0.03125, %v1826_v38 }
 0xdab   : > { %2617 = vrsqrt.f32 %v1829_v39  ;;  %v1830_v42 = vadd.f32 1e-06, %v1828_v40 }
 0xdad   : > { %2619 = vrsqrt.f32 %v1830_v42 }
 0xdb5   : > { %v2618_v19 = vpop.eup %2617 }
 0xdb6   : > { %v1833_v23 = vmul.f32 %v2618_v19, %v1817_v22 }
 0xdb7   : > { %v2620_v11 = vpop.eup %2619 }
 0xdb8   : > { %v1834_v45 = vmul.f32 %v2620_v11, %v1818_v25  ;;  %v1841_v48 = vmul.f32 %v2181_v43, %v1833_v23 }
 0xdba   : > { %v1842_v57 = vmul.f32 %v2181_v43, %v1834_v45  ;;  %v1849_v51 = vadd.f32 %v2182_v50, %v1841_v48 }
 0xdbc   : > { %v1850_v27 = vadd.f32 %v2182_v50, %v1842_v57 }
 0xdbe   : > { %v1851_v15 = vpack.c.bf16 %v1850_v27, %v1849_v51 }
 0xdc0   : > { %2460 = vmatmul.mubr.msk.bf16.vlgmr.msra.gmra.mrb[56].mxu1 %vm75_vm0, %v1851_v15 }
 0xdc1   : > { %2464 = vmatpush3.bf16.msra.mxu1 %v2581_v52  ;;  %2471 = vmatprep.mubr.msk.bf16.mxu1 %vm2703_vm3, %v2702_v7 }
 0xdc2   : > { %2465 = vmatprep.subr.bf16.mxu1 %v2702_v7 }
 0xdc5   : > { %2466 = vmatpush3.bf16.msra.mxu1 %v2582_v30 }
 0xdc6   : > { %2467 = vmatprep.subr.bf16.mxu1 %v2702_v7 }
 0xdc9   : > { %2468 = vmatpush3.bf16.msra.mxu1 %v2583_v54 }
 0xdca   : > { %2469 = vmatprep.subr.bf16.mxu1 %v2702_v7  ;;  %v2191_v7 = vld [vmem:[%s1937_s21] ss:$0 sm:$0xff] }
 0xdcd   : > { %2470 = vmatpush3.bf16.msra.mxu1 %v2584_v55 }
 0xe93   : > { %v1916_v59 = vpop.f32.mrb[56].mxu1 }
 0xe94   : > { %v1917_v20 = vadd.f32 %v2185_v58, %v1916_v59  ;;  %v2461_v60 = vpop.f32.mrb[57].mxu1 }
 0xe95   : > { %v1919_v9 = vpop.f32.mrb[58].mxu1 }
 0xe96   : > { %v1920_v46 = vadd.f32 %v2185_v58, %v1919_v9  ;;  %v2462_v47 = vpop.f32.mrb[59].mxu1  ;;  %v1923_v53 = vmax.f32 %v1917_v20, 0.0 }
 0xe98   : > { %v1924_v61 = vmax.f32 %v1920_v46, 0.0 }
 0xe9a   : > { %v1925_v62 = vpack.c.bf16 %v1924_v61, %v1923_v53 }
 0xe9c   : > { %2472 = vmatmul.mubr.msk.bf16.vlgmr.msra.gmra.mrb[60].mxu1 %vm1969_vm6, %v1925_v62 }
 0xf6f   : > { %v2007_v29 = vpop.f32.mrb[60].mxu1 }
 0xf70   : > { %v2008_v63 = vadd.f32 %v2191_v7, %v2007_v29  ;;  %v2473_v17 = vpop.f32.mrb[61].mxu1 }
 0xf71   : > { %v2010_v0 = vpop.f32.mrb[62].mxu1 }
 0xf72   : > { %v2011_v1 = vadd.f32 %v2191_v7, %v2010_v0  ;;  %v2474_v56 = vpop.f32.mrb[63].mxu1  ;;  %v2014_v2 = vadd.f32 %v2008_v63, %v1849_v51 }
 0xf74   : > { %v2020_v26 = vsel %vm75_vm0, %v2014_v2, 0.0  ;;  %v2015_v3 = vadd.f32 %v2011_v1, %v1850_v27 }
 0xf75   : > { %2021 = vadd.xlane.f32.xlu0 %v2020_v26 }
 0xf76   : > { %v2023_v4 = vsel %vm75_vm0, %v2015_v3, 0.0 }
 0xf77   : > { %2024 = vadd.xlane.f32.xlu1 %v2023_v4 }
0x1002   : > { %v2022_v5 = vpop.xlane.xlu0 %2021 }
0x1003   : > { %v2026_v6 = vmul.f32 0.03125, %v2022_v5 }
0x1004   : > { %v2025_v8 = vpop.xlane.xlu1 %2024 }
0x1005   : > { %v2028_v10 = vsub.f32 %v2014_v2, %v2026_v6  ;;  %v2027_v12 = vmul.f32 0.03125, %v2025_v8 }
0x1007   : > { %v2029_v16 = vsub.f32 %v2015_v3, %v2027_v12  ;;  %v2030_v18 = vmul.f32 %v2028_v10, %v2028_v10 }
0x1009   : > { %v2032_v31 = vsel %vm75_vm0, %v2030_v18, 0.0  ;;  %v2031_v21 = vmul.f32 %v2029_v16, %v2029_v16 }
0x100a   : > { %2033 = vadd.xlane.f32.xlu0 %v2032_v31 }
0x100b   : > { %v2035_v34 = vsel %vm75_vm0, %v2031_v21, 0.0 }
0x100c   : > { %2036 = vadd.xlane.f32.xlu1 %v2035_v34 }
0x1097   : > { %v2034_v49 = vpop.xlane.xlu0 %2033 }
0x1098   : > { %v2038_v22 = vmul.f32 0.03125, %v2034_v49 }
0x1099   : > { %v2037_v24 = vpop.xlane.xlu1 %2036 }
0x109a   : > { %v2040_v25 = vadd.f32 1e-06, %v2038_v22  ;;  %v2039_v28 = vmul.f32 0.03125, %v2037_v24 }
0x109c   : > { %2621 = vrsqrt.f32 %v2040_v25  ;;  %v2041_v32 = vadd.f32 1e-06, %v2039_v28 }
0x109e   : > { %2623 = vrsqrt.f32 %v2041_v32 }
0x10a6   : > { %v2622_v41 = vpop.eup %2621 }
0x10a7   : > { %v2044_v44 = vmul.f32 %v2622_v41, %v2028_v10 }
0x10a8   : > { %v2624_v35 = vpop.eup %2623 }
0x10a9   : > { %v2052_v37 = vmul.f32 %v2197_v33, %v2044_v44  ;;  %v2045_v38 = vmul.f32 %v2624_v35, %v2029_v16  ;;  %141 = sbr.rel (!%p139_p8) target bundleno = 341 (0x155), region = 101 }
0x10ab   : > { %v2060_v39 = vadd.f32 %v2198_v36, %v2052_v37   ;;  %v2053_v40 = vmul.f32 %v2197_v33, %v2045_v38 }
0x10ad   : > { %v2061_v42 = vadd.f32 %v2198_v36, %v2053_v40   ;;  %v3217_v41 = vmov %v2060_v39  ;;  %2062 = vst.msk [vmem:[#allocation5] sm:$0xff] (%p139_p8), %vm75_vm0, %v2060_v39 }
0x10af   : > { %v3216_v44 = vmov %v2061_v42  ;;  %2063 = vst.msk [vmem:[#allocation5 + $0x8] sm:$0xff] (%p139_p8), %vm75_vm0, %v2061_v42 }
0x10b0   :  { %2658 = shalt.err (!%p2655_p13)
}
0x10b1   :  { %s2659_s30 = scalar_lea.hbm %s3215_s15, 256 }
0x10b2   :  { %p2660_p0 = scmp.ne.s32.totalorder %s3215_s15, %s2659_s30  ;;  %p2663_p1 = scmp.lt.u32.totalorder %s2659_s30, %s3215_s15 }
0x10b4   :  { %p2665_p2 = pnand %p2663_p1, %p2660_p0 }
0x10b6   :  { %2668 = shalt.err (!%p2665_p2)
}
0x10b7   :  { %2075 = dma.vmem_to_hbm [thread:$0]  %s2070_s4, 256, %s3215_s15, [#allocation4], %s2698_s28, %s2698_s28, %s2699_s29  }
0x10b8   :  { %2683 = dma.done.wait [#allocation4], 256  }
0x10b9   :  { %2684 = vsyncadd [#allocation4], 4294967040 }
0x10ba   :  { %2079 = vsyncpa [#allocation3], 1 }
0x10bb   :  { %2080 = vsyncpa [#allocation4], 1 }

</bundles_post_ra>
